<compile_context>
chip_gen: v6e
topology: v6e:2x2x1
jax: 0.10.0
libtpu: 0.0.40
codegen_flags: <defaults>
</compile_context>

<pallas_src>
import jax
import jax.numpy as jnp
from jax.experimental import pallas as pl
from jax.experimental.pallas import tpu as pltpu

NEG_SLOPE = 0.01              # PyTorch LeakyReLU default
BN_EPS = 1e-4                 # BatchNorm1d eps from the module
COMPUTE_DTYPE = jnp.bfloat16  # matmul-operand dtype (f32 accumulation everywhere)


# ------------------------------ fused kernel --------------------------------

def fused_encoder_kernel(
    x_ref, s_ref, adj_ref, ahat_ref, pool_ref,
    w1_ref, w2_ref, gcnw_ref, gcnb_ref,
    bng_ref, bnb_ref, whp_w_ref, whp_b_ref,
    pooled_ref, xloc_ref,
    xs_sc,
):
    f32 = jnp.float32
    cdt = COMPUTE_DTYPE
    num_layers = w2_ref.shape[0]
    dim = w2_ref.shape[1]
    inv_n = 1.0 / x_ref.shape[0]   # true node count (no padded nodes at these shapes)

    # Load activations once into the fused [x | s] VMEM scratch; they stay
    # resident across all layers (no HBM round trips of activations).
    xs_sc[:, :dim] = x_ref[...]
    xs_sc[:, dim:] = s_ref[...]

    def layer(i, carry):
        # Re-read the dense operators from VMEM each iteration (scaling guard:
        # keeps them out of vregs across unrolled layers; VMEM reloads are
        # cheap and hidden under the MXU work).
        adj = adj_ref[...]     # bf16; integer edge multiplicities -> exact
        ahat = ahat_ref[...]   # bf16 normalized adjacency

        xs = xs_sc[...]                       # [N, 2D] f32
        xs_b = xs.astype(cdt)

        # GINConv(eps=0): nn(xcat + adj @ xcat), xcat = cat([x, s], -1), fused:
        # one [N,N]@[N,2D] MXU pass + one [N,2D]@[2D,D] (K = 2D = 256) pass.
        h = xs + jnp.dot(adj, xs_b, preferred_element_type=f32)
        h1 = jnp.dot(h.astype(cdt), w1_ref[i], preferred_element_type=f32)
        h1 = jnp.where(h1 >= 0, h1, NEG_SLOPE * h1)               # LeakyReLU
        x_new = jnp.dot(h1.astype(cdt), w2_ref[i], preferred_element_type=f32)

        # tanh(GCNConv(s)) = tanh(Ahat @ (s @ W) + b)
        sw = jnp.dot(xs_b[:, dim:], gcnw_ref[i], preferred_element_type=f32)
        s_new = jnp.tanh(jnp.dot(ahat, sw.astype(cdt), preferred_element_type=f32)
                         + gcnb_ref[i])

        xs_sc[:, :dim] = x_new
        xs_sc[:, dim:] = s_new
        return carry

    jax.lax.fori_loop(0, num_layers, layer, 0, unroll=True)

    # BatchNorm1d(eps=1e-4), training-mode batch stats, shifted two-pass form.
    # Per-layer BN outputs for i < L-1 are dead in forward() (x is never
    # replaced by the BN output in the module); only bns[-1](x) is observable.
    x = xs_sc[:, :dim]
    mean = jnp.sum(x, axis=0, keepdims=True) * inv_n
    xc = x - mean
    var = jnp.sum(xc * xc, axis=0, keepdims=True) * inv_n
    x_local = xc * jax.lax.rsqrt(var + BN_EPS) * bng_ref[...] + bnb_ref[...]
    xloc_ref[...] = x_local
    # TODO(synk): BatchNorm running-stat (momentum) update is a training-time
    # side effect and is not emitted (inference semantics only).

    # Whp(cat(x_local, s)) + global_add_pool, fused: overwrite the x half of the
    # scratch with x_local and do ONE [N,2D]@[2D,D] dot, then the pool matmul.
    xs_sc[:, :dim] = x_local
    h = (jnp.dot(xs_sc[...].astype(cdt), whp_w_ref[...], preferred_element_type=f32)
         + whp_b_ref[...])
    pooled_ref[...] = jnp.dot(pool_ref[...], h.astype(cdt), preferred_element_type=f32)


# ------------------------------ wrapper --------------------------------------

def prepare_params(params):
    """One-time weight prep: stack per-layer weights and pre-cast matmul
    operands to COMPUTE_DTYPE.  Weights are static across calls, so this stays
    OUT of the per-step jitted forward (no per-call copy/convert HBM traffic)."""
    cdt = COMPUTE_DTYPE
    return {
        "w1": jnp.stack(params["gin_w1"]).astype(cdt),      # [L, 2D, D]
        "w2": jnp.stack(params["gin_w2"]).astype(cdt),      # [L, D, D]
        "gcn_w": jnp.stack(params["gcn_w"]).astype(cdt),    # [L, D, D]
        "gcn_b": jnp.stack(params["gcn_b"]),                 # [L, 1, D] f32
        "bn_gamma": params["bn_gamma"][-1],                  # [1, D] f32
        "bn_beta": params["bn_beta"][-1],                    # [1, D] f32
        "whp_w": params["whp_w"].astype(cdt),                # [2D, D]
        "whp_b": params["whp_b"],                            # [1, D] f32
    }


def encoder_fedstar_forward(x, s, adj, ahat, pool, prep):
    """Mirrors Encoder_fedstar.forward; returns (pooled, x_local). One pallas_call."""
    # TODO(synk): the x-is-None -> ones((N, 1)) fallback of the PyTorch forward
    # is not implemented; the demo always provides x with D features.
    n, dim = x.shape
    g = pool.shape[0]
    cdt = COMPUTE_DTYPE

    # Pad the pooled leading dim to an f32-sublane multiple so the final store
    # is unmasked; the padded pool rows are all-zero and sliced off afterwards.
    g_pad = max(8, -(-g // 8) * 8)
    pool_p = pool if g_pad == g else jnp.pad(pool, ((0, g_pad - g), (0, 0)))

    args = (x, s, adj.astype(cdt), ahat.astype(cdt), pool_p.astype(cdt),
            prep["w1"], prep["w2"], prep["gcn_w"], prep["gcn_b"],
            prep["bn_gamma"], prep["bn_beta"], prep["whp_w"], prep["whp_b"])

    vmem = pl.BlockSpec(memory_space=pltpu.MemorySpace.VMEM)
    pooled, x_local = pl.pallas_call(
        fused_encoder_kernel,
        out_shape=(jax.ShapeDtypeStruct((g_pad, dim), jnp.float32),
                   jax.ShapeDtypeStruct((n, dim), jnp.float32)),
        in_specs=[vmem] * len(args),
        out_specs=(vmem, vmem),
        scratch_shapes=[pltpu.VMEM((n, 2 * dim), jnp.float32)],
    )(*args)
    # TODO(synk): for large N the dense [N, N] operators must be streamed from
    # HBM via gridded BlockSpecs (node-row axis "parallel" to engage both v7x
    # TensorCores, adj-column reduction axis "arbitrary"), with an f32
    # accumulator scratch and explicit pltpu.CompilerParams(vmem_limit_bytes=...):
    # resident bf16 adj+ahat hits the 32 MiB scoped default near N~2.9K and
    # physical VMEM near N~4K on v7x (~5.8K on v5e/v6e).  At these demo shapes
    # everything fits in one VMEM block, so no grid is used.
    return pooled[:g], x_local


# ------------------------------ reference (plain JAX) ------------------------

def reference_forward(x, s, adj, ahat, pool, params, compute_dtype=jnp.float32):
    """Plain-JAX Encoder_fedstar.forward. compute_dtype selects matmul-operand
    precision (accumulation is always f32); bf16 mirrors the kernel's policy."""
    f32 = jnp.float32
    cdt = compute_dtype
    adj_c = adj.astype(cdt)
    ahat_c = ahat.astype(cdt)
    pool_c = pool.astype(cdt)
    num_layers = len(params["gin_w1"])
    for i in range(num_layers):
        xcat = jnp.concatenate([x, s], axis=-1)
        h = xcat + jnp.dot(adj_c, xcat.astype(cdt), preferred_element_type=f32)
        h1 = jnp.dot(h.astype(cdt), params["gin_w1"][i].astype(cdt),
                     preferred_element_type=f32)
        h1 = jnp.where(h1 >= 0, h1, NEG_SLOPE * h1)
        x = jnp.dot(h1.astype(cdt), params["gin_w2"][i].astype(cdt),
                    preferred_element_type=f32)
        sw = jnp.dot(s.astype(cdt), params["gcn_w"][i].astype(cdt),
                     preferred_element_type=f32)
        s = jnp.tanh(jnp.dot(ahat_c, sw.astype(cdt), preferred_element_type=f32)
                     + params["gcn_b"][i])
    mean = x.mean(0, keepdims=True)
    xc = x - mean
    var = (xc * xc).mean(0, keepdims=True)
    x_local = xc * jax.lax.rsqrt(var + BN_EPS) * params["bn_gamma"][-1] \
        + params["bn_beta"][-1]
    xls = jnp.concatenate([x_local, s], axis=-1)
    hh = jnp.dot(xls.astype(cdt), params["whp_w"].astype(cdt),
                 preferred_element_type=f32) + params["whp_b"]
    pooled = jnp.dot(pool_c, hh.astype(cdt), preferred_element_type=f32)
    return pooled, x_local


# ------------------------------ params / operators ---------------------------

def init_params(key, dim, num_layers):
    params = {"gin_w1": [], "gin_w2": [], "gcn_w": [], "gcn_b": [],
              "bn_gamma": [], "bn_beta": []}
    s1 = (2.0 * dim) ** -0.5
    s2 = dim ** -0.5
    for _ in range(num_layers):
        key, k1, k2, k3, k4 = jax.random.split(key, 5)
        params["gin_w1"].append(s1 * jax.random.normal(k1, (2 * dim, dim), jnp.float32))
        params["gin_w2"].append(s2 * jax.random.normal(k2, (dim, dim), jnp.float32))
        params["gcn_w"].append(s2 * jax.random.normal(k3, (dim, dim), jnp.float32))
        params["gcn_b"].append(0.1 * jax.random.normal(k4, (1, dim), jnp.float32))
        params["bn_gamma"].append(jnp.ones((1, dim), jnp.float32))   # PyTorch default affine init
        params["bn_beta"].append(jnp.zeros((1, dim), jnp.float32))
    key, kw, kb = jax.random.split(key, 3)
    params["whp_w"] = s1 * jax.random.normal(kw, (2 * dim, dim), jnp.float32)
    params["whp_b"] = 0.1 * jax.random.normal(kb, (1, dim), jnp.float32)
    return params


def build_dense_operators(edge_index, batch, num_nodes, num_graphs):
    src, dst = edge_index[0], edge_index[1]
    # GIN sum-aggregation: adj[i, j] = #edges j -> i
    adj = jnp.zeros((num_nodes, num_nodes), jnp.float32).at[dst, src].add(1.0)
    # GCN normalization: D^-1/2 (A + I) D^-1/2
    a_self = adj + jnp.eye(num_nodes, dtype=jnp.float32)
    deg = a_self.sum(axis=1)
    dinv = jax.lax.rsqrt(deg)
    ahat = dinv[:, None] * a_self * dinv[None, :]
    # global_add_pool matrix: pool[g, n] = 1 if batch[n] == g
    pool = (batch[None, :] == jnp.arange(num_graphs)[:, None]).astype(jnp.float32)
    return adj, ahat, pool


# ---------------------------------- main -------------------------------------

if __name__ == "__main__":
    # nodes (>=128 to fill the MXU rows), dim (lane-dense = 128), graphs, layers, edges
    N, D, G, L, E = 128, 128, 2, 3, 512

    key = jax.random.PRNGKey(0)
    key, kx, ks, ke1, ke2 = jax.random.split(key, 5)

    x = jax.random.normal(kx, (N, D), jnp.float32)
    s = jax.random.normal(ks, (N, D), jnp.float32)
    src = jax.random.randint(ke1, (E,), 0, N)
    dst = jax.random.randint(ke2, (E,), 0, N)
    edge_index = jnp.stack([src, dst], axis=0)
    batch = jnp.concatenate(
        [jnp.zeros(N // 2, jnp.int32), jnp.ones(N - N // 2, jnp.int32)]
    )

    params = init_params(key, D, L)
    adj, ahat, pool = build_dense_operators(edge_index, batch, N, G)
    # bf16 is exact for integer edge multiplicities only up to 256.
    assert float(jnp.max(adj)) <= 256.0

    prep = prepare_params(params)   # one-time weight prep (outside the jit)

    fwd = jax.jit(encoder_fedstar_forward)
    pooled, x_local = fwd(x, s, adj, ahat, pool, prep)
    pooled = jax.block_until_ready(pooled)
    x_local = jax.block_until_ready(x_local)

    assert pooled.shape == (G, D) and x_local.shape == (N, D)
    assert jnp.all(jnp.isfinite(pooled)) and jnp.all(jnp.isfinite(x_local))

    # Tight check against a plain-JAX reference with the SAME precision policy
    # (bf16 operands, f32 accumulation) -> verifies the fused kernel structure.
    bref_pooled, bref_x_local = reference_forward(
        x, s, adj, ahat, pool, params, compute_dtype=COMPUTE_DTYPE)
    assert jnp.allclose(pooled, bref_pooled, rtol=2e-2, atol=2e-2)
    assert jnp.allclose(x_local, bref_x_local, rtol=2e-2, atol=2e-2)

    # Looser norm-based check against the pure-f32 reference -> bounds the bf16
    # precision loss of the kernel's compute policy.
    fref_pooled, fref_x_local = reference_forward(
        x, s, adj, ahat, pool, params, compute_dtype=jnp.float32)

    def rel_err(a, b):
        return float(jnp.linalg.norm(a - b) / (jnp.linalg.norm(b) + 1e-12))

    assert rel_err(pooled, fref_pooled) < 5e-2
    assert rel_err(x_local, fref_x_local) < 5e-2

    print("KERNEL_OK")
</pallas_src>

<mosaic_0001>
module attributes {stable_mosaic.version = 11 : i64} {
  func.func @fused_encoder_kernel(%arg0: memref<128x128xf32, #tpu.memory_space<vmem>>, %arg1: memref<128x128xf32, #tpu.memory_space<vmem>>, %arg2: memref<128x128xbf16, #tpu.memory_space<vmem>>, %arg3: memref<128x128xbf16, #tpu.memory_space<vmem>>, %arg4: memref<8x128xbf16, #tpu.memory_space<vmem>>, %arg5: memref<3x256x128xbf16, #tpu.memory_space<vmem>>, %arg6: memref<3x128x128xbf16, #tpu.memory_space<vmem>>, %arg7: memref<3x128x128xbf16, #tpu.memory_space<vmem>>, %arg8: memref<3x1x128xf32, #tpu.memory_space<vmem>>, %arg9: memref<1x128xf32, #tpu.memory_space<vmem>>, %arg10: memref<1x128xf32, #tpu.memory_space<vmem>>, %arg11: memref<256x128xbf16, #tpu.memory_space<vmem>>, %arg12: memref<1x128xf32, #tpu.memory_space<vmem>>, %arg13: memref<8x128xf32, #tpu.memory_space<vmem>>, %arg14: memref<128x128xf32, #tpu.memory_space<vmem>>, %arg15: memref<128x256xf32, #tpu.memory_space<vmem>>) attributes {dimension_semantics = [], scalar_prefetch = 0 : i64, scratch_operands = 1 : i64, tpu.core_type = #tpu.core_type<tc>} {
    %c0 = arith.constant 0 : index
    %c0_0 = arith.constant 0 : index
    %0 = vector.load %arg0[%c0, %c0_0] : memref<128x128xf32, #tpu.memory_space<vmem>>, vector<128x128xf32>
    %c0_1 = arith.constant 0 : index
    %c0_2 = arith.constant 0 : index
    %1 = vector.load %arg15[%c0_1, %c0_2] : memref<128x256xf32, #tpu.memory_space<vmem>>, vector<128x128xf32>
    tpu.vector_store %arg15[%c0_1, %c0_2], %0 {strides = array<i32>} : memref<128x256xf32, #tpu.memory_space<vmem>>, vector<128x128xf32>,
    %c0_3 = arith.constant 0 : index
    %c0_4 = arith.constant 0 : index
    %2 = vector.load %arg1[%c0_3, %c0_4] : memref<128x128xf32, #tpu.memory_space<vmem>>, vector<128x128xf32>
    %c0_5 = arith.constant 0 : index
    %c128 = arith.constant 128 : index
    %3 = vector.load %arg15[%c0_5, %c128] : memref<128x256xf32, #tpu.memory_space<vmem>>, vector<128x128xf32>
    tpu.vector_store %arg15[%c0_5, %c128], %2 {strides = array<i32>} : memref<128x256xf32, #tpu.memory_space<vmem>>, vector<128x128xf32>,
    %c0_i32 = arith.constant 0 : i32
    %c0_6 = arith.constant 0 : index
    %c0_7 = arith.constant 0 : index
    %4 = vector.load %arg2[%c0_6, %c0_7] : memref<128x128xbf16, #tpu.memory_space<vmem>>, vector<128x128xbf16>
    %c0_8 = arith.constant 0 : index
    %c0_9 = arith.constant 0 : index
    %5 = vector.load %arg3[%c0_8, %c0_9] : memref<128x128xbf16, #tpu.memory_space<vmem>>, vector<128x128xbf16>
    %c0_10 = arith.constant 0 : index
    %c0_11 = arith.constant 0 : index
    %6 = vector.load %arg15[%c0_10, %c0_11] : memref<128x256xf32, #tpu.memory_space<vmem>>, vector<128x256xf32>
    %7 = arith.truncf %6 : vector<128x256xf32> to vector<128x256xbf16>
    %cst = arith.constant dense<0.000000e+00> : vector<128x256xf32>
    %8 = tpu.matmul %4, %7, %cst {dimension_numbers = #tpu.dot_dimension_numbers<[1], [0], [0], [1], [0, 0, 1, 1], [], []>} : vector<128x128xbf16>, vector<128x256xbf16>, vector<128x256xf32> -> vector<128x256xf32>
    %9 = arith.addf %6, %8 : vector<128x256xf32>
    %10 = arith.truncf %9 : vector<128x256xf32> to vector<128x256xbf16>
    %11 = arith.index_cast %c0_i32 : i32 to index
    %c0_12 = arith.constant 0 : index
    %c0_13 = arith.constant 0 : index
    %12 = vector.load %arg5[%11, %c0_12, %c0_13] : memref<3x256x128xbf16, #tpu.memory_space<vmem>>, vector<1x256x128xbf16>
    %13 = vector.shape_cast %12 : vector<1x256x128xbf16> to vector<256x128xbf16>
    %cst_14 = arith.constant dense<0.000000e+00> : vector<128x128xf32>
    %14 = tpu.matmul %10, %13, %cst_14 {dimension_numbers = #tpu.dot_dimension_numbers<[1], [0], [0], [1], [0, 0, 1, 1], [], []>} : vector<128x256xbf16>, vector<256x128xbf16>, vector<128x128xf32> -> vector<128x128xf32>
    %cst_15 = arith.constant 0.000000e+00 : f32
    %15 = vector.broadcast %cst_15 : f32 to vector<128x128xf32>
    %16 = arith.cmpf oge, %14, %15 : vector<128x128xf32>
    %cst_16 = arith.constant 0.00999999977 : f32
    %17 = vector.broadcast %cst_16 : f32 to vector<128x128xf32>
    %18 = arith.mulf %17, %14 : vector<128x128xf32>
    %19 = arith.select %16, %14, %18 : vector<128x128xi1>, vector<128x128xf32>
    %20 = arith.truncf %19 : vector<128x128xf32> to vector<128x128xbf16>
    %21 = arith.index_cast %c0_i32 : i32 to index
    %c0_17 = arith.constant 0 : index
    %c0_18 = arith.constant 0 : index
    %22 = vector.load %arg6[%21, %c0_17, %c0_18] : memref<3x128x128xbf16, #tpu.memory_space<vmem>>, vector<1x128x128xbf16>
    %23 = vector.shape_cast %22 : vector<1x128x128xbf16> to vector<128x128xbf16>
    %cst_19 = arith.constant dense<0.000000e+00> : vector<128x128xf32>
    %24 = tpu.matmul %20, %23, %cst_19 {dimension_numbers = #tpu.dot_dimension_numbers<[1], [0], [0], [1], [0, 0, 1, 1], [], []>} : vector<128x128xbf16>, vector<128x128xbf16>, vector<128x128xf32> -> vector<128x128xf32>
    %25 = vector.extract_strided_slice %7 {offsets = [0, 128], sizes = [128, 128], strides = [1, 1]} : vector<128x256xbf16> to vector<128x128xbf16>
    %26 = arith.index_cast %c0_i32 : i32 to index
    %c0_20 = arith.constant 0 : index
    %c0_21 = arith.constant 0 : index
    %27 = vector.load %arg7[%26, %c0_20, %c0_21] : memref<3x128x128xbf16, #tpu.memory_space<vmem>>, vector<1x128x128xbf16>
    %28 = vector.shape_cast %27 : vector<1x128x128xbf16> to vector<128x128xbf16>
    %cst_22 = arith.constant dense<0.000000e+00> : vector<128x128xf32>
    %29 = tpu.matmul %25, %28, %cst_22 {dimension_numbers = #tpu.dot_dimension_numbers<[1], [0], [0], [1], [0, 0, 1, 1], [], []>} : vector<128x128xbf16>, vector<128x128xbf16>, vector<128x128xf32> -> vector<128x128xf32>
    %30 = arith.truncf %29 : vector<128x128xf32> to vector<128x128xbf16>
    %cst_23 = arith.constant dense<0.000000e+00> : vector<128x128xf32>
    %31 = tpu.matmul %5, %30, %cst_23 {dimension_numbers = #tpu.dot_dimension_numbers<[1], [0], [0], [1], [0, 0, 1, 1], [], []>} : vector<128x128xbf16>, vector<128x128xbf16>, vector<128x128xf32> -> vector<128x128xf32>
    %32 = arith.index_cast %c0_i32 : i32 to index
    %c0_24 = arith.constant 0 : index
    %c0_25 = arith.constant 0 : index
    %33 = vector.load %arg8[%32, %c0_24, %c0_25] : memref<3x1x128xf32, #tpu.memory_space<vmem>>, vector<1x1x128xf32>
    %34 = vector.shape_cast %33 : vector<1x1x128xf32> to vector<1x128xf32>
    %35 = vector.broadcast %34 : vector<1x128xf32> to vector<128x128xf32>
    %36 = arith.addf %31, %35 : vector<128x128xf32>
    %37 = math.tanh %36 : vector<128x128xf32>
    %c0_26 = arith.constant 0 : index
    %c0_27 = arith.constant 0 : index
    %38 = vector.load %arg15[%c0_26, %c0_27] : memref<128x256xf32, #tpu.memory_space<vmem>>, vector<128x128xf32>
    tpu.vector_store %arg15[%c0_26, %c0_27], %24 {strides = array<i32>} : memref<128x256xf32, #tpu.memory_space<vmem>>, vector<128x128xf32>,
    %c0_28 = arith.constant 0 : index
    %c128_29 = arith.constant 128 : index
    %39 = vector.load %arg15[%c0_28, %c128_29] : memref<128x256xf32, #tpu.memory_space<vmem>>, vector<128x128xf32>
    tpu.vector_store %arg15[%c0_28, %c128_29], %37 {strides = array<i32>} : memref<128x256xf32, #tpu.memory_space<vmem>>, vector<128x128xf32>,
    %c1_i32 = arith.constant 1 : i32
    %c0_30 = arith.constant 0 : index
    %c0_31 = arith.constant 0 : index
    %40 = vector.load %arg2[%c0_30, %c0_31] : memref<128x128xbf16, #tpu.memory_space<vmem>>, vector<128x128xbf16>
    %c0_32 = arith.constant 0 : index
    %c0_33 = arith.constant 0 : index
    %41 = vector.load %arg3[%c0_32, %c0_33] : memref<128x128xbf16, #tpu.memory_space<vmem>>, vector<128x128xbf16>
    %c0_34 = arith.constant 0 : index
    %c0_35 = arith.constant 0 : index
    %42 = vector.load %arg15[%c0_34, %c0_35] : memref<128x256xf32, #tpu.memory_space<vmem>>, vector<128x256xf32>
    %43 = arith.truncf %42 : vector<128x256xf32> to vector<128x256xbf16>
    %cst_36 = arith.constant dense<0.000000e+00> : vector<128x256xf32>
    %44 = tpu.matmul %40, %43, %cst_36 {dimension_numbers = #tpu.dot_dimension_numbers<[1], [0], [0], [1], [0, 0, 1, 1], [], []>} : vector<128x128xbf16>, vector<128x256xbf16>, vector<128x256xf32> -> vector<128x256xf32>
    %45 = arith.addf %42, %44 : vector<128x256xf32>
    %46 = arith.truncf %45 : vector<128x256xf32> to vector<128x256xbf16>
    %47 = arith.index_cast %c1_i32 : i32 to index
    %c0_37 = arith.constant 0 : index
    %c0_38 = arith.constant 0 : index
    %48 = vector.load %arg5[%47, %c0_37, %c0_38] : memref<3x256x128xbf16, #tpu.memory_space<vmem>>, vector<1x256x128xbf16>
    %49 = vector.shape_cast %48 : vector<1x256x128xbf16> to vector<256x128xbf16>
    %cst_39 = arith.constant dense<0.000000e+00> : vector<128x128xf32>
    %50 = tpu.matmul %46, %49, %cst_39 {dimension_numbers = #tpu.dot_dimension_numbers<[1], [0], [0], [1], [0, 0, 1, 1], [], []>} : vector<128x256xbf16>, vector<256x128xbf16>, vector<128x128xf32> -> vector<128x128xf32>
    %cst_40 = arith.constant 0.000000e+00 : f32
    %51 = vector.broadcast %cst_40 : f32 to vector<128x128xf32>
    %52 = arith.cmpf oge, %50, %51 : vector<128x128xf32>
    %cst_41 = arith.constant 0.00999999977 : f32
    %53 = vector.broadcast %cst_41 : f32 to vector<128x128xf32>
    %54 = arith.mulf %53, %50 : vector<128x128xf32>
    %55 = arith.select %52, %50, %54 : vector<128x128xi1>, vector<128x128xf32>
    %56 = arith.truncf %55 : vector<128x128xf32> to vector<128x128xbf16>
    %57 = arith.index_cast %c1_i32 : i32 to index
    %c0_42 = arith.constant 0 : index
    %c0_43 = arith.constant 0 : index
    %58 = vector.load %arg6[%57, %c0_42, %c0_43] : memref<3x128x128xbf16, #tpu.memory_space<vmem>>, vector<1x128x128xbf16>
    %59 = vector.shape_cast %58 : vector<1x128x128xbf16> to vector<128x128xbf16>
    %cst_44 = arith.constant dense<0.000000e+00> : vector<128x128xf32>
    %60 = tpu.matmul %56, %59, %cst_44 {dimension_numbers = #tpu.dot_dimension_numbers<[1], [0], [0], [1], [0, 0, 1, 1], [], []>} : vector<128x128xbf16>, vector<128x128xbf16>, vector<128x128xf32> -> vector<128x128xf32>
    %61 = vector.extract_strided_slice %43 {offsets = [0, 128], sizes = [128, 128], strides = [1, 1]} : vector<128x256xbf16> to vector<128x128xbf16>
    %62 = arith.index_cast %c1_i32 : i32 to index
    %c0_45 = arith.constant 0 : index
    %c0_46 = arith.constant 0 : index
    %63 = vector.load %arg7[%62, %c0_45, %c0_46] : memref<3x128x128xbf16, #tpu.memory_space<vmem>>, vector<1x128x128xbf16>
    %64 = vector.shape_cast %63 : vector<1x128x128xbf16> to vector<128x128xbf16>
    %cst_47 = arith.constant dense<0.000000e+00> : vector<128x128xf32>
    %65 = tpu.matmul %61, %64, %cst_47 {dimension_numbers = #tpu.dot_dimension_numbers<[1], [0], [0], [1], [0, 0, 1, 1], [], []>} : vector<128x128xbf16>, vector<128x128xbf16>, vector<128x128xf32> -> vector<128x128xf32>
    %66 = arith.truncf %65 : vector<128x128xf32> to vector<128x128xbf16>
    %cst_48 = arith.constant dense<0.000000e+00> : vector<128x128xf32>
    %67 = tpu.matmul %41, %66, %cst_48 {dimension_numbers = #tpu.dot_dimension_numbers<[1], [0], [0], [1], [0, 0, 1, 1], [], []>} : vector<128x128xbf16>, vector<128x128xbf16>, vector<128x128xf32> -> vector<128x128xf32>
    %68 = arith.index_cast %c1_i32 : i32 to index
    %c0_49 = arith.constant 0 : index
    %c0_50 = arith.constant 0 : index
    %69 = vector.load %arg8[%68, %c0_49, %c0_50] : memref<3x1x128xf32, #tpu.memory_space<vmem>>, vector<1x1x128xf32>
    %70 = vector.shape_cast %69 : vector<1x1x128xf32> to vector<1x128xf32>
    %71 = vector.broadcast %70 : vector<1x128xf32> to vector<128x128xf32>
    %72 = arith.addf %67, %71 : vector<128x128xf32>
    %73 = math.tanh %72 : vector<128x128xf32>
    %c0_51 = arith.constant 0 : index
    %c0_52 = arith.constant 0 : index
    %74 = vector.load %arg15[%c0_51, %c0_52] : memref<128x256xf32, #tpu.memory_space<vmem>>, vector<128x128xf32>
    tpu.vector_store %arg15[%c0_51, %c0_52], %60 {strides = array<i32>} : memref<128x256xf32, #tpu.memory_space<vmem>>, vector<128x128xf32>,
    %c0_53 = arith.constant 0 : index
    %c128_54 = arith.constant 128 : index
    %75 = vector.load %arg15[%c0_53, %c128_54] : memref<128x256xf32, #tpu.memory_space<vmem>>, vector<128x128xf32>
    tpu.vector_store %arg15[%c0_53, %c128_54], %73 {strides = array<i32>} : memref<128x256xf32, #tpu.memory_space<vmem>>, vector<128x128xf32>,
    %c2_i32 = arith.constant 2 : i32
    %c0_55 = arith.constant 0 : index
    %c0_56 = arith.constant 0 : index
    %76 = vector.load %arg2[%c0_55, %c0_56] : memref<128x128xbf16, #tpu.memory_space<vmem>>, vector<128x128xbf16>
    %c0_57 = arith.constant 0 : index
    %c0_58 = arith.constant 0 : index
    %77 = vector.load %arg3[%c0_57, %c0_58] : memref<128x128xbf16, #tpu.memory_space<vmem>>, vector<128x128xbf16>
    %c0_59 = arith.constant 0 : index
    %c0_60 = arith.constant 0 : index
    %78 = vector.load %arg15[%c0_59, %c0_60] : memref<128x256xf32, #tpu.memory_space<vmem>>, vector<128x256xf32>
    %79 = arith.truncf %78 : vector<128x256xf32> to vector<128x256xbf16>
    %cst_61 = arith.constant dense<0.000000e+00> : vector<128x256xf32>
    %80 = tpu.matmul %76, %79, %cst_61 {dimension_numbers = #tpu.dot_dimension_numbers<[1], [0], [0], [1], [0, 0, 1, 1], [], []>} : vector<128x128xbf16>, vector<128x256xbf16>, vector<128x256xf32> -> vector<128x256xf32>
    %81 = arith.addf %78, %80 : vector<128x256xf32>
    %82 = arith.truncf %81 : vector<128x256xf32> to vector<128x256xbf16>
    %83 = arith.index_cast %c2_i32 : i32 to index
    %c0_62 = arith.constant 0 : index
    %c0_63 = arith.constant 0 : index
    %84 = vector.load %arg5[%83, %c0_62, %c0_63] : memref<3x256x128xbf16, #tpu.memory_space<vmem>>, vector<1x256x128xbf16>
    %85 = vector.shape_cast %84 : vector<1x256x128xbf16> to vector<256x128xbf16>
    %cst_64 = arith.constant dense<0.000000e+00> : vector<128x128xf32>
    %86 = tpu.matmul %82, %85, %cst_64 {dimension_numbers = #tpu.dot_dimension_numbers<[1], [0], [0], [1], [0, 0, 1, 1], [], []>} : vector<128x256xbf16>, vector<256x128xbf16>, vector<128x128xf32> -> vector<128x128xf32>
    %cst_65 = arith.constant 0.000000e+00 : f32
    %87 = vector.broadcast %cst_65 : f32 to vector<128x128xf32>
    %88 = arith.cmpf oge, %86, %87 : vector<128x128xf32>
    %cst_66 = arith.constant 0.00999999977 : f32
    %89 = vector.broadcast %cst_66 : f32 to vector<128x128xf32>
    %90 = arith.mulf %89, %86 : vector<128x128xf32>
    %91 = arith.select %88, %86, %90 : vector<128x128xi1>, vector<128x128xf32>
    %92 = arith.truncf %91 : vector<128x128xf32> to vector<128x128xbf16>
    %93 = arith.index_cast %c2_i32 : i32 to index
    %c0_67 = arith.constant 0 : index
    %c0_68 = arith.constant 0 : index
    %94 = vector.load %arg6[%93, %c0_67, %c0_68] : memref<3x128x128xbf16, #tpu.memory_space<vmem>>, vector<1x128x128xbf16>
    %95 = vector.shape_cast %94 : vector<1x128x128xbf16> to vector<128x128xbf16>
    %cst_69 = arith.constant dense<0.000000e+00> : vector<128x128xf32>
    %96 = tpu.matmul %92, %95, %cst_69 {dimension_numbers = #tpu.dot_dimension_numbers<[1], [0], [0], [1], [0, 0, 1, 1], [], []>} : vector<128x128xbf16>, vector<128x128xbf16>, vector<128x128xf32> -> vector<128x128xf32>
    %97 = vector.extract_strided_slice %79 {offsets = [0, 128], sizes = [128, 128], strides = [1, 1]} : vector<128x256xbf16> to vector<128x128xbf16>
    %98 = arith.index_cast %c2_i32 : i32 to index
    %c0_70 = arith.constant 0 : index
    %c0_71 = arith.constant 0 : index
    %99 = vector.load %arg7[%98, %c0_70, %c0_71] : memref<3x128x128xbf16, #tpu.memory_space<vmem>>, vector<1x128x128xbf16>
    %100 = vector.shape_cast %99 : vector<1x128x128xbf16> to vector<128x128xbf16>
    %cst_72 = arith.constant dense<0.000000e+00> : vector<128x128xf32>
    %101 = tpu.matmul %97, %100, %cst_72 {dimension_numbers = #tpu.dot_dimension_numbers<[1], [0], [0], [1], [0, 0, 1, 1], [], []>} : vector<128x128xbf16>, vector<128x128xbf16>, vector<128x128xf32> -> vector<128x128xf32>
    %102 = arith.truncf %101 : vector<128x128xf32> to vector<128x128xbf16>
    %cst_73 = arith.constant dense<0.000000e+00> : vector<128x128xf32>
    %103 = tpu.matmul %77, %102, %cst_73 {dimension_numbers = #tpu.dot_dimension_numbers<[1], [0], [0], [1], [0, 0, 1, 1], [], []>} : vector<128x128xbf16>, vector<128x128xbf16>, vector<128x128xf32> -> vector<128x128xf32>
    %104 = arith.index_cast %c2_i32 : i32 to index
    %c0_74 = arith.constant 0 : index
    %c0_75 = arith.constant 0 : index
    %105 = vector.load %arg8[%104, %c0_74, %c0_75] : memref<3x1x128xf32, #tpu.memory_space<vmem>>, vector<1x1x128xf32>
    %106 = vector.shape_cast %105 : vector<1x1x128xf32> to vector<1x128xf32>
    %107 = vector.broadcast %106 : vector<1x128xf32> to vector<128x128xf32>
    %108 = arith.addf %103, %107 : vector<128x128xf32>
    %109 = math.tanh %108 : vector<128x128xf32>
    %c0_76 = arith.constant 0 : index
    %c0_77 = arith.constant 0 : index
    %110 = vector.load %arg15[%c0_76, %c0_77] : memref<128x256xf32, #tpu.memory_space<vmem>>, vector<128x128xf32>
    tpu.vector_store %arg15[%c0_76, %c0_77], %96 {strides = array<i32>} : memref<128x256xf32, #tpu.memory_space<vmem>>, vector<128x128xf32>,
    %c0_78 = arith.constant 0 : index
    %c128_79 = arith.constant 128 : index
    %111 = vector.load %arg15[%c0_78, %c128_79] : memref<128x256xf32, #tpu.memory_space<vmem>>, vector<128x128xf32>
    tpu.vector_store %arg15[%c0_78, %c128_79], %109 {strides = array<i32>} : memref<128x256xf32, #tpu.memory_space<vmem>>, vector<128x128xf32>,
    %c3_i32 = arith.constant 3 : i32
    %c0_80 = arith.constant 0 : index
    %c0_81 = arith.constant 0 : index
    %112 = vector.load %arg15[%c0_80, %c0_81] : memref<128x256xf32, #tpu.memory_space<vmem>>, vector<128x128xf32>
    %cst_82 = arith.constant dense<0.000000e+00> : vector<128xf32>
    %113 = vector.multi_reduction <add>, %112, %cst_82 [0] : vector<128x128xf32> to vector<128xf32>
    %114 = vector.shape_cast %113 : vector<128xf32> to vector<1x128xf32>
    %cst_83 = arith.constant 7.812500e-03 : f32
    %115 = vector.broadcast %cst_83 : f32 to vector<1x128xf32>
    %116 = arith.mulf %114, %115 : vector<1x128xf32>
    %117 = vector.broadcast %116 : vector<1x128xf32> to vector<128x128xf32>
    %118 = arith.subf %112, %117 : vector<128x128xf32>
    %119 = arith.mulf %118, %118 : vector<128x128xf32>
    %cst_84 = arith.constant dense<0.000000e+00> : vector<128xf32>
    %120 = vector.multi_reduction <add>, %119, %cst_84 [0] : vector<128x128xf32> to vector<128xf32>
    %121 = vector.shape_cast %120 : vector<128xf32> to vector<1x128xf32>
    %cst_85 = arith.constant 7.812500e-03 : f32
    %122 = vector.broadcast %cst_85 : f32 to vector<1x128xf32>
    %123 = arith.mulf %121, %122 : vector<1x128xf32>
    %cst_86 = arith.constant 9.99999974E-5 : f32
    %124 = vector.broadcast %cst_86 : f32 to vector<1x128xf32>
    %125 = arith.addf %123, %124 : vector<1x128xf32>
    %126 = math.rsqrt %125 : vector<1x128xf32>
    %127 = vector.broadcast %126 : vector<1x128xf32> to vector<128x128xf32>
    %128 = arith.mulf %118, %127 : vector<128x128xf32>
    %c0_87 = arith.constant 0 : index
    %c0_88 = arith.constant 0 : index
    %129 = vector.load %arg9[%c0_87, %c0_88] : memref<1x128xf32, #tpu.memory_space<vmem>>, vector<1x128xf32>
    %130 = vector.broadcast %129 : vector<1x128xf32> to vector<128x128xf32>
    %131 = arith.mulf %128, %130 : vector<128x128xf32>
    %c0_89 = arith.constant 0 : index
    %c0_90 = arith.constant 0 : index
    %132 = vector.load %arg10[%c0_89, %c0_90] : memref<1x128xf32, #tpu.memory_space<vmem>>, vector<1x128xf32>
    %133 = vector.broadcast %132 : vector<1x128xf32> to vector<128x128xf32>
    %134 = arith.addf %131, %133 : vector<128x128xf32>
    %c0_91 = arith.constant 0 : index
    %c0_92 = arith.constant 0 : index
    %135 = vector.load %arg14[%c0_91, %c0_92] : memref<128x128xf32, #tpu.memory_space<vmem>>, vector<128x128xf32>
    tpu.vector_store %arg14[%c0_91, %c0_92], %134 {strides = array<i32>} : memref<128x128xf32, #tpu.memory_space<vmem>>, vector<128x128xf32>,
    %c0_93 = arith.constant 0 : index
    %c0_94 = arith.constant 0 : index
    %136 = vector.load %arg15[%c0_93, %c0_94] : memref<128x256xf32, #tpu.memory_space<vmem>>, vector<128x128xf32>
    tpu.vector_store %arg15[%c0_93, %c0_94], %134 {strides = array<i32>} : memref<128x256xf32, #tpu.memory_space<vmem>>, vector<128x128xf32>,
    %c0_95 = arith.constant 0 : index
    %c0_96 = arith.constant 0 : index
    %137 = vector.load %arg15[%c0_95, %c0_96] : memref<128x256xf32, #tpu.memory_space<vmem>>, vector<128x256xf32>
    %138 = arith.truncf %137 : vector<128x256xf32> to vector<128x256xbf16>
    %c0_97 = arith.constant 0 : index
    %c0_98 = arith.constant 0 : index
    %139 = vector.load %arg11[%c0_97, %c0_98] : memref<256x128xbf16, #tpu.memory_space<vmem>>, vector<256x128xbf16>
    %cst_99 = arith.constant dense<0.000000e+00> : vector<128x128xf32>
    %140 = tpu.matmul %138, %139, %cst_99 {dimension_numbers = #tpu.dot_dimension_numbers<[1], [0], [0], [1], [0, 0, 1, 1], [], []>} : vector<128x256xbf16>, vector<256x128xbf16>, vector<128x128xf32> -> vector<128x128xf32>
    %c0_100 = arith.constant 0 : index
    %c0_101 = arith.constant 0 : index
    %141 = vector.load %arg12[%c0_100, %c0_101] : memref<1x128xf32, #tpu.memory_space<vmem>>, vector<1x128xf32>
    %142 = vector.broadcast %141 : vector<1x128xf32> to vector<128x128xf32>
    %143 = arith.addf %140, %142 : vector<128x128xf32>
    %c0_102 = arith.constant 0 : index
    %c0_103 = arith.constant 0 : index
    %144 = vector.load %arg4[%c0_102, %c0_103] : memref<8x128xbf16, #tpu.memory_space<vmem>>, vector<8x128xbf16>
    %145 = arith.truncf %143 : vector<128x128xf32> to vector<128x128xbf16>
    %cst_104 = arith.constant dense<0.000000e+00> : vector<8x128xf32>
    %146 = tpu.matmul %144, %145, %cst_104 {dimension_numbers = #tpu.dot_dimension_numbers<[1], [0], [0], [1], [0, 0, 1, 1], [], []>} : vector<8x128xbf16>, vector<128x128xbf16>, vector<8x128xf32> -> vector<8x128xf32>
    %c0_105 = arith.constant 0 : index
    %c0_106 = arith.constant 0 : index
    %147 = vector.load %arg13[%c0_105, %c0_106] : memref<8x128xf32, #tpu.memory_space<vmem>>, vector<8x128xf32>
    tpu.vector_store %arg13[%c0_105, %c0_106], %146 {strides = array<i32>} : memref<8x128xf32, #tpu.memory_space<vmem>>, vector<8x128xf32>,
    return
  }
}

</mosaic_0001>

<bundles_post_ra>
// kernel: encoder_fedstar_forward.1
= control target key start
LH: loop header
LB: loop body
LE: loop exit
PB: predicated region body
PF: predicated region fallthrough
CT: control target
= control target key end

     0   :  { %20 = vsyncpa [#allocation4], 0  ;;  %s6503_s0 = inlined_call_operand.hbm [shape: f32[128,128], index: 0, kind: input, shape index: {}]   ;;  %s6504_s1 = inlined_call_operand.hbm [shape: f32[128,128], index: 1, kind: input, shape index: {}]   ;;  %s6505_s2 = inlined_call_operand.vmem [shape: bf16[128,128], index: 2, kind: input, shape index: {}]   ;;  %s6506_s3 = inlined_call_operand.vmem [shape: bf16[128,128], index: 3, kind: input, shape index: {}]   ;;  %s6507_s4 = inlined_call_operand.vmem [shape: bf16[8,128], index: 4, kind: input, shape index: {}]   ;;  %s6508_s5 = inlined_call_operand.vmem [shape: bf16[3,256,128], index: 5, kind: input, shape index: {}]   ;;  %s6509_s6 = inlined_call_operand.hbm [shape: bf16[3,128,128], index: 6, kind: input, shape index: {}]   ;;  %s6510_s7 = inlined_call_operand.hbm [shape: bf16[3,128,128], index: 7, kind: input, shape index: {}]   ;;  %s6511_s8 = inlined_call_operand.vmem [shape: f32[3,1,128], index: 8, kind: input, shape index: {}]   ;;  %s6512_s9 = inlined_call_operand.vmem [shape: f32[1,128], index: 9, kind: input, shape index: {}]   ;;  %s6513_s10 = inlined_call_operand.vmem [shape: f32[1,128], index: 10, kind: input, shape index: {}]   ;;  %s6514_s11 = inlined_call_operand.hbm [shape: bf16[256,128], index: 11, kind: input, shape index: {}]   ;;  %s6515_s12 = inlined_call_operand.vmem [shape: f32[1,128], index: 12, kind: input, shape index: {}]   ;;  %s6516_s13 = inlined_call_operand.vmem [shape: f32[8,128], index: 13, kind: output, shape index: {0}]   ;;  %s6517_s14 = inlined_call_operand.hbm [shape: f32[128,128], index: 14, kind: output, shape index: {1}]  }
   0x1   :  { %21 = vsyncpa [#allocation7], 0 }
   0x2   :  { %22 = vsyncpa [#allocation10], 0 }
   0x3   :  { %23 = vsyncpa [#allocation5], 0  ;;  %s5389_s29 = smov [#allocation6]  }
   0x4   :  { %s41_s30 = sshll.u32 %s5389_s29, 4  ;;  %s42_s30 = int_to_ptr.vmem [resolvable:$true] %s41_s30 }
   0x5   :  { %s5269_s15 = scalar_lea.vmem %s42_s30, 2048  ;;  %p5274_p1 = scmp.lt.s32.totalorder %s42_s30, %s42_s30 }
   0x6   :  { %p5270_p0 = scmp.ne.s32.totalorder %s42_s30, %s5269_s15  ;;  %p5275_p2 = scmp.lt.s32.totalorder %s5269_s15, %s5269_s15 }
   0x8   :  { %p5276_p3 = por %p5275_p2, %p5274_p1 }
   0xa   :  { %p5277_p4 = pnand %p5276_p3, %p5270_p0 }
   0xc   :  { %5280 = shalt.err (!%p5277_p4)
}
   0xd   :  { %s5390_s16 = smov 128   ;;  %s5391_s17 = smov 8  }
   0xe   :  { %47 = dma.hbm_to_vmem [thread:$0]  %s6504_s1, 2048, %s42_s30, [#allocation7], %s5390_s16, %s5390_s16, %s5391_s17  }
   0xf   :  { %s5392_s20 = smov [#allocation9]   ;;  %s5393_s22 = smov [#allocation3]  }
  0x10   :  { %s73_s21 = sshll.u32 %s5392_s20, 4  ;;  %s29_s23 = sshll.u32 %s5393_s22, 4  ;;  %s74_s21 = int_to_ptr.vmem [resolvable:$true] %s73_s21  ;;  %s30_s23 = int_to_ptr.vmem [resolvable:$true] %s29_s23 }
  0x11   :  { %s5289_s24 = scalar_lea.vmem %s74_s21, 3072  ;;  %p5294_p6 = scmp.lt.s32.totalorder %s74_s21, %s74_s21 }
  0x12   :  { %p5290_p5 = scmp.ne.s32.totalorder %s74_s21, %s5289_s24  ;;  %p5295_p7 = scmp.lt.s32.totalorder %s5289_s24, %s5289_s24 }
  0x14   :  { %p5296_p8 = por %p5295_p7, %p5294_p6 }
  0x16   :  { %p5297_p9 = pnand %p5296_p8, %p5290_p5 }
  0x18   :  { %5300 = shalt.err (!%p5297_p9)
}
  0x19   :  { %s5394_s25 = smov 64   ;;  %s5395_s26 = smov 4  }
  0x1a   :  { %79 = dma.hbm_to_vmem [thread:$0]  %s6510_s7, 3072, %s74_s21, [#allocation10], %s5394_s25, %s5394_s25, %s5395_s26  }
  0x1b   :  { %s5309_s1 = scalar_lea.vmem %s30_s23, 2048  ;;  %p5314_p11 = scmp.lt.s32.totalorder %s30_s23, %s30_s23 }
  0x1c   :  { %p5310_p10 = scmp.ne.s32.totalorder %s30_s23, %s5309_s1  ;;  %p5315_p12 = scmp.lt.s32.totalorder %s5309_s1, %s5309_s1 }
  0x1e   :  { %p5316_p13 = por %p5315_p12, %p5314_p11 }
  0x20   :  { %p5317_p0 = pnand %p5316_p13, %p5310_p10 }
  0x22   :  { %5320 = shalt.err (!%p5317_p0)
}
  0x23   :  { %35 = dma.hbm_to_vmem [thread:$0]  %s6503_s0, 2048, %s30_s23, [#allocation4], %s5390_s16, %s5390_s16, %s5391_s17  }
  0x24   :  { %s5396_s15 = smov [#allocation8]   ;;  %s5397_s19 = smov [#allocation11]  }
  0x25   :  { %s61_s18 = sshll.u32 %s5396_s15, 4  ;;  %s91_s7 = sshll.u32 %s5397_s19, 4  ;;  %s62_s18 = int_to_ptr.vmem [resolvable:$true] %s61_s18  ;;  %s92_s7 = int_to_ptr.vmem [resolvable:$true] %s91_s7 }
  0x26   :  { %s5329_s20 = scalar_lea.vmem %s62_s18, 3072  ;;  %p5334_p2 = scmp.lt.s32.totalorder %s62_s18, %s62_s18 }
  0x27   :  { %p5330_p1 = scmp.ne.s32.totalorder %s62_s18, %s5329_s20  ;;  %p5335_p3 = scmp.lt.s32.totalorder %s5329_s20, %s5329_s20 }
  0x29   :  { %p5336_p4 = por %p5335_p3, %p5334_p2 }
  0x2b   :  { %p5337_p5 = pnand %p5336_p4, %p5330_p1 }
  0x2d   :  { %5340 = shalt.err (!%p5337_p5)
}
  0x2e   :  { %67 = dma.hbm_to_vmem [thread:$0]  %s6509_s6, 3072, %s62_s18, [#allocation7], %s5394_s25, %s5394_s25, %s5395_s26  }
  0x2f   :  { %s5349_s0 = scalar_lea.vmem %s92_s7, 2048  ;;  %p5354_p7 = scmp.lt.s32.totalorder %s92_s7, %s92_s7 }
  0x30   :  { %p5350_p6 = scmp.ne.s32.totalorder %s92_s7, %s5349_s0  ;;  %p5355_p8 = scmp.lt.s32.totalorder %s5349_s0, %s5349_s0 }
  0x32   :  { %p5356_p9 = por %p5355_p8, %p5354_p7 }
  0x34   :  { %p5357_p10 = pnand %p5356_p9, %p5350_p6 }
  0x36   :  { %5360 = shalt.err (!%p5357_p10)
}
  0x37   :  { %97 = dma.hbm_to_vmem [thread:$0]  %s6514_s11, 2048, %s92_s7, [#allocation10], %s5394_s25, %s5394_s25, %s5395_s26  }
  0x38   :  { %5381 = dma.done.wait [#allocation4], 2048  }
  0x39   :  { %5382 = vsyncadd [#allocation4], 4294965248 }
  0x3a   :  { %5383 = dma.done.wait [#allocation7], 5120  }
  0x3b   :  { %5384 = vsyncadd [#allocation7], 4294962176 }
  0x3c   :  { %5385 = dma.done.wait [#allocation10], 5120  }
  0x3d   :  { %5386 = vsyncadd [#allocation10], 4294962176  ;;  %v5398_v0 = vmov 0   ;;  %v162_v1 = vld [vmem:[#allocation6 + $0x70] sm:$0xff]  ;;  %v163_v2 = vld [vmem:[#allocation6 + $0x78] sm:$0xff] }
  0x3e   :  { %340 = vmatprep.mubr.bf16.mxu0 %v5398_v0  ;;  %v130_v3 = vld [vmem:[#allocation3 + $0x70] sm:$0xff]  ;;  %v5508_v4 = vpack.c.bf16 %v163_v2, %v162_v1  ;;  %v131_v5 = vld [vmem:[#allocation3 + $0x78] sm:$0xff]  ;;  %v160_v6 = vld [vmem:[#allocation6 + $0x60] sm:$0xff] }
  0x3f   :  { %v161_v7 = vld [vmem:[#allocation6 + $0x68] sm:$0xff]  ;;  %v258_v8 = vpack.c.bf16 %v131_v5, %v130_v3  ;;  %v128_v10 = vld [vmem:[#allocation3 + $0x60] sm:$0xff]  ;;  %v158_v12 = vld [vmem:[#allocation6 + $0x50] sm:$0xff] }
  0x40   :  { %v5510_v9 = vpack.c.bf16 %v161_v7, %v160_v6  ;;  %v129_v11 = vld [vmem:[#allocation3 + $0x68] sm:$0xff]  ;;  %308 = vmatprep.subr.bf16.mxu0 %v5508_v4  ;;  %v159_v13 = vld [vmem:[#allocation6 + $0x58] sm:$0xff]  ;;  %v126_v16 = vld [vmem:[#allocation3 + $0x50] sm:$0xff] }
  0x41   :  { %309 = vmatpush1.bf16.msra.mxu0 %v258_v8  ;;  %v256_v14 = vpack.c.bf16 %v129_v11, %v128_v10  ;;  %v5514_v15 = vpack.c.bf16 %v159_v13, %v158_v12  ;;  %v127_v17 = vld [vmem:[#allocation3 + $0x58] sm:$0xff]  ;;  %v5516_v18 = vld [vmem:[#allocation6 + $0x40] sm:$0xff]  ;;  %v5518_v19 = vld [vmem:[#allocation6 + $0x48] sm:$0xff] }
  0x42   :  { %310 = vmatprep.subr.bf16.mxu0 %v5510_v9  ;;  %v254_v20 = vpack.c.bf16 %v127_v17, %v126_v16  ;;  %v5523_v21 = vpack.c.bf16 %v5518_v19, %v5516_v18  ;;  %v5525_v22 = vld [vmem:[#allocation3 + $0x40] sm:$0xff]  ;;  %v5527_v23 = vld [vmem:[#allocation3 + $0x48] sm:$0xff]  ;;  %v5529_v24 = vld [vmem:[#allocation6 + $0x30] sm:$0xff] }
  0x43   :  { %v5531_v25 = vld [vmem:[#allocation6 + $0x38] sm:$0xff]  ;;  %v5533_v26 = vld [vmem:[#allocation3 + $0x30] sm:$0xff]  ;;  %v252_v27 = vpack.c.bf16 %v5527_v23, %v5525_v22  ;;  %v5544_v30 = vld [vmem:[#allocation6 + $0x20] sm:$0xff] }
  0x44   :  { %v5537_v28 = vld [vmem:[#allocation3 + $0x38] sm:$0xff]  ;;  %v5542_v29 = vpack.c.bf16 %v5531_v25, %v5529_v24  ;;  %v5546_v31 = vld [vmem:[#allocation6 + $0x28] sm:$0xff]  ;;  %v5548_v32 = vld [vmem:[#allocation3 + $0x20] sm:$0xff] }
  0x45   :  { %311 = vmatpush1.bf16.msra.mxu0 %v256_v14  ;;  %v250_v33 = vpack.c.bf16 %v5537_v28, %v5533_v26  ;;  %v5552_v34 = vld [vmem:[#allocation3 + $0x28] sm:$0xff]  ;;  %v5557_v35 = vpack.c.bf16 %v5546_v31, %v5544_v30  ;;  %v5559_v36 = vld [vmem:[#allocation6 + $0x10] sm:$0xff]  ;;  %v5561_v37 = vld [vmem:[#allocation6 + $0x18] sm:$0xff] }
  0x46   :  { %312 = vmatprep.subr.bf16.mxu0 %v5514_v15  ;;  %v5563_v38 = vld [vmem:[#allocation3 + $0x10] sm:$0xff]  ;;  %v5565_v39 = vld [vmem:[#allocation3 + $0x18] sm:$0xff]  ;;  %v248_v41 = vpack.c.bf16 %v5552_v34, %v5548_v32  ;;  %v5572_v42 = vld [vmem:[#allocation6] sm:$0xff]  ;;  %v5582_v45 = vpack.c.bf16 %v5561_v37, %v5559_v36 }
  0x47   :  { %v4999_v40 = vld [vmem:[%s6508_s5 + $0x78] sm:$0xff]   ;;  %v5574_v43 = vld [vmem:[#allocation6 + $0x8] sm:$0xff]  ;;  %v5001_v46 = vld [vmem:[%s6508_s5 + $0x70] sm:$0xff]   ;;  %v246_v49 = vpack.c.bf16 %v5565_v39, %v5563_v38 }
  0x48   :  { %v5000_v44 = vld [vmem:[%s6508_s5 + $0x38] sm:$0xff]   ;;  %4261 = vmatprep.subr.bf16.mxu1 %v4999_v40  ;;  %v5002_v47 = vld [vmem:[%s6508_s5 + $0x30] sm:$0xff]   ;;  %v5003_v48 = vld [vmem:[%s6508_s5 + $0x68] sm:$0xff]   ;;  %v5600_v51 = vpack.c.bf16 %v5574_v43, %v5572_v42 }
  0x49   :  { %313 = vmatpush1.bf16.msra.mxu0 %v254_v20  ;;  %4262 = vmatpush3.bf16.msra.mxu1 %v5000_v44  ;;  %v5595_v50 = vld [vmem:[#allocation3] sm:$0xff]  ;;  %v5602_v52 = vld [vmem:[#allocation3 + $0x8] sm:$0xff]  ;;  %v5007_v58 = vld [vmem:[%s6508_s5 + $0x58] sm:$0xff]  }
  0x4a   :  { %314 = vmatprep.subr.bf16.mxu0 %v5523_v21  ;;  %4263 = vmatprep.subr.bf16.mxu1 %v5001_v46  ;;  %v5004_v53 = vld [vmem:[%s6508_s5 + $0x28] sm:$0xff]   ;;  %v5005_v54 = vld [vmem:[%s6508_s5 + $0x60] sm:$0xff]   ;;  %v244_v55 = vpack.c.bf16 %v5602_v52, %v5595_v50  ;;  %v5008_v59 = vld [vmem:[%s6508_s5 + $0x18] sm:$0xff]  }
  0x4b   :  { %v5006_v56 = vld [vmem:[%s6508_s5 + $0x20] sm:$0xff]   ;;  %v4992_v60 = vld [vmem:[%s6505_s2 + $0x8] sm:$0xff]   ;;  %v4993_v61 = vld [vmem:[%s6505_s2 + $0x10] sm:$0xff]  }
  0x4c   :  { %v4991_v57 = vld [vmem:[%s6505_s2] sm:$0xff]   ;;  %v4994_v62 = vld [vmem:[%s6505_s2 + $0x18] sm:$0xff]   ;;  %v4996_v1 = vld [vmem:[%s6505_s2 + $0x28] sm:$0xff]  }
  0x4d   :  { %315 = vmatpush1.bf16.msra.mxu0 %v252_v27  ;;  %4264 = vmatpush3.bf16.msra.mxu1 %v5002_v47  ;;  %v4995_v63 = vld [vmem:[%s6505_s2 + $0x20] sm:$0xff]   ;;  %v4997_v2 = vld [vmem:[%s6505_s2 + $0x30] sm:$0xff]   ;;  %v4998_v3 = vld [vmem:[%s6505_s2 + $0x38] sm:$0xff]  }
  0x4e   :  { %316 = vmatprep.subr.bf16.mxu0 %v5542_v29  ;;  %4265 = vmatprep.subr.bf16.mxu1 %v5003_v48  ;;  %v5009_v5 = vld [vmem:[%s6508_s5 + $0x50] sm:$0xff]   ;;  %v5011_v7 = vld [vmem:[%s6508_s5 + $0x48] sm:$0xff]   ;;  %v5013_v10 = vld [vmem:[%s6508_s5 + $0x40] sm:$0xff]  }
  0x4f   :  { %v5010_v6 = vld [vmem:[%s6508_s5 + $0x10] sm:$0xff]   ;;  %v5012_v8 = vld [vmem:[%s6508_s5 + $0x8] sm:$0xff]   ;;  %v5014_v11 = vld [vmem:[%s6508_s5] sm:$0xff]  }
  0x50   :  { %v5015_v12 = vld [vmem:[#allocation9 + $0x38] sm:$0xff]   ;;  %v5024_v14 = vld [vmem:[#allocation8 + $0x30] sm:$0xff]   ;;  %v5025_v16 = vld [vmem:[#allocation8 + $0x28] sm:$0xff]  }
  0x51   :  { %317 = vmatpush1.bf16.msra.mxu0 %v250_v33  ;;  %4266 = vmatpush3.bf16.msra.mxu1 %v5004_v53  ;;  %v5023_v13 = vld [vmem:[#allocation8 + $0x38] sm:$0xff]  }
  0x52   :  { %318 = vmatprep.subr.bf16.mxu0 %v5557_v35  ;;  %4267 = vmatprep.subr.bf16.mxu1 %v5005_v54  ;;  %v5016_v54 = vld [vmem:[#allocation9 + $0x30] sm:$0xff]  }
  0x55   :  { %319 = vmatpush1.bf16.msra.mxu0 %v248_v41  ;;  %4268 = vmatpush3.bf16.msra.mxu1 %v5006_v56 }
  0x56   :  { %320 = vmatprep.subr.bf16.mxu0 %v5582_v45  ;;  %4269 = vmatprep.subr.bf16.mxu1 %v5007_v58 }
  0x59   :  { %321 = vmatpush1.bf16.msra.mxu0 %v246_v49  ;;  %4270 = vmatpush3.bf16.msra.mxu1 %v5008_v59 }
  0x5a   :  { %322 = vmatprep.subr.bf16.mxu0 %v5600_v51  ;;  %4271 = vmatprep.subr.bf16.mxu1 %v5009_v5 }
  0x5d   :  { %323 = vmatpush1.bf16.msra.mxu0 %v244_v55  ;;  %4272 = vmatpush3.bf16.msra.mxu1 %v5010_v6 }
  0x5e   :  { %4273 = vmatprep.subr.bf16.mxu1 %v5011_v7  ;;  %4670 = vmatprep.subr.bf16.mxu0 %v5023_v13 }
  0x60   :  { %341 = vmatmul.mubr.bf16.vlgmr.msra.gmra.mxu0 %v4991_v57 }
  0x61   :  { %350 = vmatprep.mubr.bf16.mxu0 %v5398_v0  ;;  %4274 = vmatpush3.bf16.msra.mxu1 %v5012_v8  ;;  %v5020_v8 = vld [vmem:[#allocation9 + $0x10] sm:$0xff]  }
  0x62   :  { %4275 = vmatprep.subr.bf16.mxu1 %v5013_v10  ;;  %4671 = vmatpush3.bf16.msra.mxu0 %v5023_v13 }
  0x63   :  { %4672 = vmatprep.subr.bf16.mxu0 %v5024_v14 }
  0x65   :  { %4276 = vmatpush3.bf16.msra.mxu1 %v5014_v11 }
  0x66   :  { %4702 = vmatprep.subr.bf16.mxu1 %v5015_v12  ;;  %4673 = vmatpush3.bf16.msra.mxu0 %v5024_v14 }
  0x67   :  { %4674 = vmatprep.subr.bf16.mxu0 %v5025_v16 }
  0x68   :  { %351 = vmatmul.mubr.bf16.gmra.mxu0 %v4992_v60 }
  0x69   :  { %360 = vmatprep.mubr.bf16.mxu0 %v5398_v0 }
  0x6a   :  { %4675 = vmatpush3.bf16.msra.mxu0 %v5025_v16 }
  0x70   :  { %361 = vmatmul.mubr.bf16.gmra.mxu0 %v4993_v61 }
  0x71   :  { %370 = vmatprep.mubr.bf16.mxu0 %v5398_v0 }
  0x78   :  { %371 = vmatmul.mubr.bf16.gmra.mxu0 %v4994_v62  ;;  %v5018_v62 = vld [vmem:[#allocation9 + $0x20] sm:$0xff]  }
  0x79   :  { %380 = vmatprep.mubr.bf16.mxu0 %v5398_v0 }
  0x80   :  { %381 = vmatmul.mubr.bf16.gmra.mxu0 %v4995_v63 }
  0x81   :  { %390 = vmatprep.mubr.bf16.mxu0 %v5398_v0 }
  0x88   :  { %391 = vmatmul.mubr.bf16.gmra.mxu0 %v4996_v1 }
  0x89   :  { %400 = vmatprep.mubr.bf16.mxu0 %v5398_v0 }
  0x90   :  { %401 = vmatmul.mubr.bf16.gmra.mxu0 %v4997_v2 }
  0x91   :  { %410 = vmatprep.mubr.bf16.mxu0 %v5398_v0 }
  0x98   :  { %411 = vmatmul.mubr.bf16.gmra.mxu0 %v4998_v3 }
 0x120   :  { %v342_v17 = vpop.f32.mrf.mxu0 }
 0x121   :  { %v421_v46 = vadd.f32 %v342_v17, %v5595_v50 }
 0x122   :  { %v344_v20 = vpop.f32.mrf.mxu0 }
 0x123   :  { %v422_v41 = vadd.f32 %v344_v20, %v5572_v42  ;;  %v5022_v20 = vld [vmem:[#allocation9] sm:$0xff]  }
 0x124   :  { %v346_v27 = vpop.f32.mrf.mxu0 }
 0x125   :  { %v423_v33 = vadd.f32 %v346_v27, %v5602_v52  ;;  %v5017_v52 = vld [vmem:[#allocation9 + $0x28] sm:$0xff]  }
 0x126   :  { %v348_v40 = vpop.f32.mrf.mxu0 }
 0x127   :  { %v424_v44 = vadd.f32 %v348_v40, %v5574_v43  ;;  %v453_v49 = vpack.c.bf16 %v423_v33, %v421_v46 }
 0x128   :  { %v352_v47 = vpop.f32.mrf.mxu0 }
 0x129   :  { %v454_v48 = vpack.c.bf16 %v424_v44, %v422_v41  ;;  %v425_v50 = vadd.f32 %v352_v47, %v5563_v38 }
 0x12a   :  { %v354_v53 = vpop.f32.mrf.mxu0 }
 0x12b   :  { %629 = vmatprep.mubr.bf16.mxu1 %v454_v48  ;;  %v426_v42 = vadd.f32 %v354_v53, %v5559_v36  ;;  %v5019_v36 = vld [vmem:[#allocation9 + $0x18] sm:$0xff]  }
 0x12c   :  { %v356_v55 = vpop.f32.mrf.mxu0  ;;  %630 = vmatmul.mubr.bf16.vlgmr.msra.gmra.mxu1 %v453_v49  ;;  %v5249_v48 = vld [vmem:[#allocation3 + $0x58] sm:$0xff] }
 0x12d   :  { %4703 = vmatpush3.bf16.msra.mxu1 %v5015_v12  ;;  %v427_v56 = vadd.f32 %v356_v55, %v5565_v39  ;;  %v5251_v55 = vld [vmem:[#allocation6 + $0x58] sm:$0xff] }
 0x12e   :  { %v358_v57 = vpop.f32.mrf.mxu0  ;;  %4704 = vmatprep.subr.bf16.mxu1 %v5016_v54 }
 0x12f   :  { %v428_v43 = vadd.f32 %v358_v57, %v5561_v37  ;;  %v455_v60 = vpack.c.bf16 %v427_v56, %v425_v50  ;;  %v5253_v50 = vld [vmem:[#allocation3 + $0x68] sm:$0xff] }
 0x130   :  { %v362_v58 = vpop.f32.mrf.mxu0 }
 0x131   :  { %v456_v59 = vpack.c.bf16 %v428_v43, %v426_v42  ;;  %4705 = vmatpush3.bf16.msra.mxu1 %v5016_v54  ;;  %v429_v2 = vadd.f32 %v362_v58, %v5548_v32 }
 0x132   :  { %v364_v61 = vpop.f32.mrf.mxu0  ;;  %4706 = vmatprep.subr.bf16.mxu1 %v5017_v52 }
 0x133   :  { %637 = vmatprep.mubr.bf16.mxu1 %v456_v59  ;;  %v430_v37 = vadd.f32 %v364_v61, %v5544_v30  ;;  %v5021_v30 = vld [vmem:[#allocation9 + $0x8] sm:$0xff]  }
 0x134   :  { %v366_v63 = vpop.f32.mrf.mxu0  ;;  %638 = vmatmul.mubr.bf16.gmra.mxu1 %v455_v60  ;;  %v5254_v60 = vld [vmem:[#allocation6 + $0x60] sm:$0xff] }
 0x135   :  { %4707 = vmatpush3.bf16.msra.mxu1 %v5017_v52  ;;  %v431_v39 = vadd.f32 %v366_v63, %v5552_v34 }
 0x136   :  { %v368_v1 = vpop.f32.mrf.mxu0  ;;  %4708 = vmatprep.subr.bf16.mxu1 %v5018_v62 }
 0x137   :  { %v432_v38 = vadd.f32 %v368_v1, %v5546_v31  ;;  %v457_v6 = vpack.c.bf16 %v431_v39, %v429_v2  ;;  %v5256_v39 = vld [vmem:[#allocation3 + $0x60] sm:$0xff] }
 0x138   :  { %v372_v3 = vpop.f32.mrf.mxu0 }
 0x139   :  { %v458_v5 = vpack.c.bf16 %v432_v38, %v430_v37  ;;  %4709 = vmatpush3.bf16.msra.mxu1 %v5018_v62  ;;  %v433_v12 = vadd.f32 %v372_v3, %v5533_v26  ;;  %v5255_v62 = vld [vmem:[#allocation6 + $0x68] sm:$0xff] }
 0x13a   :  { %v374_v7 = vpop.f32.mrf.mxu0  ;;  %4710 = vmatprep.subr.bf16.mxu1 %v5019_v36 }
 0x13b   :  { %645 = vmatprep.mubr.bf16.mxu1 %v458_v5  ;;  %v434_v31 = vadd.f32 %v374_v7, %v5529_v24  ;;  %v5257_v5 = vld [vmem:[#allocation3 + $0x78] sm:$0xff] }
 0x13c   :  { %v376_v10 = vpop.f32.mrf.mxu0  ;;  %646 = vmatmul.mubr.bf16.gmra.mxu1 %v457_v6 }
 0x13d   :  { %4711 = vmatpush3.bf16.msra.mxu1 %v5019_v36  ;;  %v435_v34 = vadd.f32 %v376_v10, %v5537_v28 }
 0x13e   :  { %v378_v11 = vpop.f32.mrf.mxu0  ;;  %4712 = vmatprep.subr.bf16.mxu1 %v5020_v8 }
 0x13f   :  { %v436_v32 = vadd.f32 %v378_v11, %v5531_v25  ;;  %v459_v16 = vpack.c.bf16 %v435_v34, %v433_v12  ;;  %v5259_v34 = vld [vmem:[#allocation6 + $0x78] sm:$0xff] }
 0x140   :  { %v382_v13 = vpop.f32.mrf.mxu0 }
 0x141   :  { %v460_v14 = vpack.c.bf16 %v436_v32, %v434_v31  ;;  %4713 = vmatpush3.bf16.msra.mxu1 %v5020_v8  ;;  %v437_v26 = vadd.f32 %v382_v13, %v5525_v22  ;;  %v5258_v8 = vld [vmem:[#allocation6 + $0x70] sm:$0xff]  ;;  %v5026_v13 = vld [vmem:[#allocation8 + $0x20] sm:$0xff]  }
 0x142   :  { %v384_v17 = vpop.f32.mrf.mxu0  ;;  %4714 = vmatprep.subr.bf16.mxu1 %v5021_v30  ;;  %4676 = vmatprep.subr.bf16.mxu0 %v5026_v13 }
 0x143   :  { %653 = vmatprep.mubr.bf16.mxu1 %v460_v14  ;;  %v438_v24 = vadd.f32 %v384_v17, %v5516_v18  ;;  %v5252_v18 = vld [vmem:[#allocation3 + $0x50] sm:$0xff]  ;;  %4677 = vmatpush3.bf16.msra.mxu0 %v5026_v13  ;;  %v5027_v14 = vld [vmem:[#allocation8 + $0x18] sm:$0xff]   ;;  %v5029_v17 = vld [vmem:[#allocation8 + $0x8] sm:$0xff]  }
 0x144   :  { %v386_v27 = vpop.f32.mrf.mxu0  ;;  %654 = vmatmul.mubr.bf16.gmra.mxu1 %v459_v16  ;;  %4678 = vmatprep.subr.bf16.mxu0 %v5027_v14  ;;  %v5028_v16 = vld [vmem:[#allocation8 + $0x10] sm:$0xff]  }
 0x145   :  { %4715 = vmatpush3.bf16.msra.mxu1 %v5021_v30  ;;  %v439_v28 = vadd.f32 %v386_v27, %v5527_v23  ;;  %v5250_v23 = vld [vmem:[#allocation6 + $0x50] sm:$0xff] }
 0x146   :  { %v388_v33 = vpop.f32.mrf.mxu0  ;;  %4716 = vmatprep.subr.bf16.mxu1 %v5022_v20  ;;  %v5260_v30 = vld [vmem:[#allocation3 + $0x70] sm:$0xff] }
 0x147   :  { %v440_v25 = vadd.f32 %v388_v33, %v5518_v19  ;;  %v461_v44 = vpack.c.bf16 %v439_v28, %v437_v26  ;;  %4679 = vmatpush3.bf16.msra.mxu0 %v5027_v14 }
 0x148   :  { %v392_v40 = vpop.f32.mrf.mxu0  ;;  %4680 = vmatprep.subr.bf16.mxu0 %v5028_v16 }
 0x149   :  { %v462_v41 = vpack.c.bf16 %v440_v25, %v438_v24  ;;  %4717 = vmatpush3.bf16.msra.mxu1 %v5022_v20  ;;  %v441_v57 = vadd.f32 %v5252_v18, %v392_v40 }
 0x14a   :  { %v394_v46 = vpop.f32.mrf.mxu0 }
 0x14b   :  { %661 = vmatprep.mubr.bf16.mxu1 %v462_v41  ;;  %v442_v54 = vadd.f32 %v5250_v23, %v394_v46  ;;  %4681 = vmatpush3.bf16.msra.mxu0 %v5028_v16 }
 0x14c   :  { %v396_v47 = vpop.f32.mrf.mxu0  ;;  %662 = vmatmul.mubr.bf16.gmra.mxu1 %v461_v44  ;;  %4682 = vmatprep.subr.bf16.mxu0 %v5029_v17 }
 0x14d   :  { %v443_v49 = vadd.f32 %v5249_v48, %v396_v47 }
 0x14e   :  { %v398_v53 = vpop.f32.mrf.mxu0 }
 0x14f   :  { %v444_v56 = vadd.f32 %v5251_v55, %v398_v53  ;;  %v463_v22 = vpack.c.bf16 %v443_v49, %v441_v57  ;;  %4683 = vmatpush3.bf16.msra.mxu0 %v5029_v17 }
 0x150   :  { %v402_v19 = vpop.f32.mrf.mxu0 }
 0x151   :  { %v464_v52 = vpack.c.bf16 %v444_v56, %v442_v54  ;;  %v445_v1 = vadd.f32 %v5256_v39, %v402_v19 }
 0x152   :  { %v404_v42 = vpop.f32.mrf.mxu0 }
 0x153   :  { %669 = vmatprep.mubr.bf16.mxu1 %v464_v52  ;;  %v446_v61 = vadd.f32 %v5254_v60, %v404_v42 }
 0x154   :  { %v406_v43 = vpop.f32.mrf.mxu0  ;;  %670 = vmatmul.mubr.bf16.gmra.mxu1 %v463_v22 }
 0x155   :  { %v447_v58 = vadd.f32 %v5253_v50, %v406_v43 }
 0x156   :  { %v408_v59 = vpop.f32.mrf.mxu0 }
 0x157   :  { %v448_v63 = vadd.f32 %v5255_v62, %v408_v59  ;;  %v465_v38 = vpack.c.bf16 %v447_v58, %v445_v1 }
 0x158   :  { %v412_v36 = vpop.f32.mrf.mxu0 }
 0x159   :  { %v466_v37 = vpack.c.bf16 %v448_v63, %v446_v61  ;;  %v449_v31 = vadd.f32 %v5260_v30, %v412_v36 }
 0x15a   :  { %v414_v2 = vpop.f32.mrf.mxu0 }
 0x15b   :  { %677 = vmatprep.mubr.bf16.mxu1 %v466_v37  ;;  %v450_v10 = vadd.f32 %v5258_v8, %v414_v2 }
 0x15c   :  { %v416_v3 = vpop.f32.mrf.mxu0  ;;  %678 = vmatmul.mubr.bf16.gmra.mxu1 %v465_v38 }
 0x15d   :  { %v451_v6 = vadd.f32 %v5257_v5, %v416_v3 }
 0x15e   :  { %v418_v7 = vpop.f32.mrf.mxu0 }
 0x15f   :  { %v452_v11 = vadd.f32 %v5259_v34, %v418_v7  ;;  %v467_v12 = vpack.c.bf16 %v451_v6, %v449_v31 }
 0x161   :  { %v468_v32 = vpack.c.bf16 %v452_v11, %v450_v10 }
 0x163   :  { %685 = vmatprep.mubr.bf16.mxu1 %v468_v32 }
 0x164   :  { %686 = vmatmul.mubr.bf16.gmra.mxu1 %v467_v12 }
 0x165   :  { %4718 = vmatprep.mubr.bf16.mxu1 %v5600_v51 }
 0x16c   :  { %4719 = vmatmul.mubr.bf16.vlgmr.msra.gmra.mxu1 %v5582_v45  ;;  %v5030_v45 = vld [vmem:[#allocation8] sm:$0xff]  }
 0x16d   :  { %4722 = vmatprep.mubr.bf16.mxu1 %v5557_v35  ;;  %4684 = vmatprep.subr.bf16.mxu0 %v5030_v45 }
 0x16e   :  { %4685 = vmatpush3.bf16.msra.mxu0 %v5030_v45 }
 0x174   :  { %4723 = vmatmul.mubr.bf16.gmra.mxu1 %v5542_v29 }
 0x175   :  { %4726 = vmatprep.mubr.bf16.mxu1 %v5523_v21 }
 0x17c   :  { %4727 = vmatmul.mubr.bf16.gmra.mxu1 %v5514_v15 }
 0x17d   :  { %4730 = vmatprep.mubr.bf16.mxu1 %v5510_v9 }
 0x184   :  { %4731 = vmatmul.mubr.bf16.gmra.mxu1 %v5508_v4 }
 0x185   :  { %1440 = vmatprep.mubr.bf16.mxu1 %v5398_v0 }
 0x1ec   :  { %v4277_v29 = vpop.f32.mrf.mxu1 }
 0x1ee   :  { %v4278_v35 = vpop.f32.mrf.mxu1 }
 0x1ef   :  { %v4279_v51 = vadd.f32 %v4278_v35, %v4277_v29 }
 0x1f0   :  { %v4280_v21 = vpop.f32.mrf.mxu1 }
 0x1f1   :  { %v710_v27 = vmul.f32 0.01, %v4279_v51  ;;  %vm694_vm0 = vcmp.ge.f32.partialorder %v4279_v51, 0.0 }
 0x1f2   :  { %v4281_v20 = vpop.f32.mrf.mxu1 }
 0x1f3   :  { %v4282_v28 = vadd.f32 %v4281_v20, %v4280_v21  ;;  %v726_v9 = vsel %vm694_vm0, %v4279_v51, %v710_v27 }
 0x1f4   :  { %v4283_v33 = vpop.f32.mrf.mxu1 }
 0x1f5   :  { %vm695_vm1 = vcmp.ge.f32.partialorder %v4282_v28, 0.0  ;;  %v711_v15 = vmul.f32 0.01, %v4282_v28 }
 0x1f6   :  { %v4284_v24 = vpop.f32.mrf.mxu1 }
 0x1f7   :  { %v4285_v25 = vadd.f32 %v4284_v24, %v4283_v33  ;;  %v727_v26 = vsel %vm695_vm1, %v4282_v28, %v711_v15 }
 0x1f8   :  { %v4286_v40 = vpop.f32.mrf.mxu1  ;;  %v742_v41 = vpack.c.bf16 %v727_v26, %v726_v9 }
 0x1f9   :  { %v712_v44 = vmul.f32 0.01, %v4285_v25  ;;  %vm696_vm2 = vcmp.ge.f32.partialorder %v4285_v25, 0.0 }
 0x1fa   :  { %v4287_v4 = vpop.f32.mrf.mxu1  ;;  %4686 = vmatprep.mubr.bf16.mxu0 %v742_v41 }
 0x1fb   :  { %v4288_v46 = vadd.f32 %v4287_v4, %v4286_v40  ;;  %v728_v53 = vsel %vm696_vm2, %v4285_v25, %v712_v44 }
 0x1fc   :  { %v4289_v47 = vpop.f32.mrf.mxu1 }
 0x1fd   :  { %vm697_vm3 = vcmp.ge.f32.partialorder %v4288_v46, 0.0  ;;  %v713_v48 = vmul.f32 0.01, %v4288_v46 }
 0x1fe   :  { %v4290_v49 = vpop.f32.mrf.mxu1 }
 0x1ff   :  { %v729_v23 = vsel %vm697_vm3, %v4288_v46, %v713_v48  ;;  %v4291_v54 = vadd.f32 %v4290_v49, %v4289_v47 }
 0x200   :  { %v743_v55 = vpack.c.bf16 %v729_v23, %v728_v53  ;;  %v4292_v56 = vpop.f32.mrf.mxu1 }
 0x201   :  { %v714_v57 = vmul.f32 0.01, %v4291_v54  ;;  %vm698_vm4 = vcmp.ge.f32.partialorder %v4291_v54, 0.0 }
 0x202   :  { %v4293_v18 = vpop.f32.mrf.mxu1  ;;  %4687 = vmatmul.mubr.bf16.vlgmr.msra.gmra.mxu0 %v743_v55 }
 0x203   :  { %v4294_v19 = vadd.f32 %v4293_v18, %v4292_v56  ;;  %v730_v50 = vsel %vm698_vm4, %v4291_v54, %v714_v57  ;;  %v5031_v18 = vld [vmem:[%s6506_s3] sm:$0xff]  }
 0x204   :  { %v4295_v52 = vpop.f32.mrf.mxu1 }
 0x205   :  { %vm699_vm5 = vcmp.ge.f32.partialorder %v4294_v19, 0.0  ;;  %v715_v22 = vmul.f32 0.01, %v4294_v19 }
 0x206   :  { %v4296_v42 = vpop.f32.mrf.mxu1 }
 0x207   :  { %v4297_v43 = vadd.f32 %v4296_v42, %v4295_v52  ;;  %v731_v58 = vsel %vm699_vm5, %v4294_v19, %v715_v22 }
 0x208   :  { %v4298_v59 = vpop.f32.mrf.mxu1  ;;  %v744_v60 = vpack.c.bf16 %v731_v58, %v730_v50 }
 0x209   :  { %v716_v62 = vmul.f32 0.01, %v4297_v43  ;;  %vm700_vm6 = vcmp.ge.f32.partialorder %v4297_v43, 0.0 }
 0x20a   :  { %v4299_v61 = vpop.f32.mrf.mxu1  ;;  %4690 = vmatprep.mubr.bf16.mxu0 %v744_v60 }
 0x20b   :  { %v4300_v63 = vadd.f32 %v4299_v61, %v4298_v59  ;;  %v732_v38 = vsel %vm700_vm6, %v4297_v43, %v716_v62 }
 0x20c   :  { %v4301_v39 = vpop.f32.mrf.mxu1 }
 0x20d   :  { %vm701_vm7 = vcmp.ge.f32.partialorder %v4300_v63, 0.0  ;;  %v717_v1 = vmul.f32 0.01, %v4300_v63 }
 0x20e   :  { %v4302_v36 = vpop.f32.mrf.mxu1 }
 0x20f   :  { %v4303_v37 = vadd.f32 %v4302_v36, %v4301_v39  ;;  %v733_v2 = vsel %vm701_vm7, %v4300_v63, %v717_v1 }
 0x210   :  { %v4304_v3 = vpop.f32.mrf.mxu1  ;;  %v745_v5 = vpack.c.bf16 %v733_v2, %v732_v38 }
 0x211   :  { %v718_v7 = vmul.f32 0.01, %v4303_v37  ;;  %vm702_vm8 = vcmp.ge.f32.partialorder %v4303_v37, 0.0 }
 0x212   :  { %v4305_v6 = vpop.f32.mrf.mxu1  ;;  %4691 = vmatmul.mubr.bf16.gmra.mxu0 %v745_v5 }
 0x213   :  { %v4306_v8 = vadd.f32 %v4305_v6, %v4304_v3  ;;  %v734_v31 = vsel %vm702_vm8, %v4303_v37, %v718_v7 }
 0x214   :  { %v4307_v10 = vpop.f32.mrf.mxu1 }
 0x215   :  { %vm703_vm9 = vcmp.ge.f32.partialorder %v4306_v8, 0.0  ;;  %v719_v34 = vmul.f32 0.01, %v4306_v8 }
 0x216   :  { %v4308_v11 = vpop.f32.mrf.mxu1 }
 0x217   :  { %v4309_v30 = vadd.f32 %v4308_v11, %v4307_v10  ;;  %v735_v32 = vsel %vm703_vm9, %v4306_v8, %v719_v34  ;;  %v5032_v8 = vld [vmem:[%s6506_s3 + $0x8] sm:$0xff]   ;;  %v5033_v10 = vld [vmem:[%s6506_s3 + $0x10] sm:$0xff]   ;;  %v5034_v34 = vld [vmem:[%s6506_s3 + $0x18] sm:$0xff]  }
 0x218   :  { %v4310_v12 = vpop.f32.mrf.mxu1  ;;  %v746_v13 = vpack.c.bf16 %v735_v32, %v734_v31  ;;  %v5035_v11 = vld [vmem:[%s6506_s3 + $0x20] sm:$0xff]   ;;  %v5037_v31 = vld [vmem:[%s6506_s3 + $0x30] sm:$0xff]   ;;  %v5038_v32 = vld [vmem:[%s6506_s3 + $0x38] sm:$0xff]  }
 0x219   :  { %v720_v16 = vmul.f32 0.01, %v4309_v30  ;;  %vm704_vm10 = vcmp.ge.f32.partialorder %v4309_v30, 0.0 }
 0x21a   :  { %v4311_v14 = vpop.f32.mrf.mxu1  ;;  %4694 = vmatprep.mubr.bf16.mxu0 %v746_v13 }
 0x21b   :  { %v4312_v17 = vadd.f32 %v4311_v14, %v4310_v12  ;;  %v736_v21 = vsel %vm704_vm10, %v4309_v30, %v720_v16  ;;  %v5036_v30 = vld [vmem:[%s6506_s3 + $0x28] sm:$0xff]  }
 0x21c   :  { %v4313_v45 = vpop.f32.mrf.mxu1 }
 0x21d   :  { %vm705_vm11 = vcmp.ge.f32.partialorder %v4312_v17, 0.0  ;;  %v721_v29 = vmul.f32 0.01, %v4312_v17 }
 0x21e   :  { %v4314_v35 = vpop.f32.mrf.mxu1 }
 0x21f   :  { %v4315_v51 = vadd.f32 %v4314_v35, %v4313_v45  ;;  %v737_v20 = vsel %vm705_vm11, %v4312_v17, %v721_v29 }
 0x220   :  { %v4316_v27 = vpop.f32.mrf.mxu1  ;;  %v747_v28 = vpack.c.bf16 %v737_v20, %v736_v21 }
 0x221   :  { %v722_v15 = vmul.f32 0.01, %v4315_v51  ;;  %vm706_vm12 = vcmp.ge.f32.partialorder %v4315_v51, 0.0 }
 0x222   :  { %v4317_v33 = vpop.f32.mrf.mxu1  ;;  %4695 = vmatmul.mubr.bf16.gmra.mxu0 %v747_v28 }
 0x223   :  { %v4318_v24 = vadd.f32 %v4317_v33, %v4316_v27  ;;  %v738_v41 = vsel %vm706_vm12, %v4315_v51, %v722_v15 }
 0x224   :  { %v4319_v25 = vpop.f32.mrf.mxu1 }
 0x225   :  { %vm707_vm13 = vcmp.ge.f32.partialorder %v4318_v24, 0.0  ;;  %v723_v9 = vmul.f32 0.01, %v4318_v24 }
 0x226   :  { %v4320_v26 = vpop.f32.mrf.mxu1 }
 0x227   :  { %v4321_v40 = vadd.f32 %v4320_v26, %v4319_v25  ;;  %v739_v4 = vsel %vm707_vm13, %v4318_v24, %v723_v9 }
 0x228   :  { %v4322_v44 = vpop.f32.mrf.mxu1  ;;  %v748_v46 = vpack.c.bf16 %v739_v4, %v738_v41  ;;  %v5047_v41 = vld [vmem:[%s6508_s5 + $0xf8] sm:$0xff]  }
 0x229   :  { %v724_v48 = vmul.f32 0.01, %v4321_v40  ;;  %vm708_vm14 = vcmp.ge.f32.partialorder %v4321_v40, 0.0  ;;  %v5048_v4 = vld [vmem:[%s6508_s5 + $0xb8] sm:$0xff]  }
 0x22a   :  { %v4323_v47 = vpop.f32.mrf.mxu1  ;;  %4698 = vmatprep.mubr.bf16.mxu0 %v748_v46 }
 0x22b   :  { %v4324_v49 = vadd.f32 %v4323_v47, %v4322_v44  ;;  %v740_v55 = vsel %vm708_vm14, %v4321_v40, %v724_v48  ;;  %v5049_v44 = vld [vmem:[%s6508_s5 + $0xf0] sm:$0xff]  }
 0x22c   :  { %v4720_v53 = vpop.f32.mrf.mxu1  ;;  %v5050_v48 = vld [vmem:[%s6508_s5 + $0xb0] sm:$0xff]  }
 0x22d   :  { %vm709_vm15 = vcmp.ge.f32.partialorder %v4324_v49, 0.0  ;;  %v725_v23 = vmul.f32 0.01, %v4324_v49 }
 0x22e   :  { %v1009_v54 = vpop.f32.mrf.mxu1 }
 0x22f   :  { %v741_v56 = vsel %vm709_vm15, %v4324_v49, %v725_v23  ;;  %v5051_v49 = vld [vmem:[%s6508_s5 + $0xe8] sm:$0xff]  }
 0x230   :  { %v4721_v57 = vpop.f32.mrf.mxu1  ;;  %v749_v19 = vpack.c.bf16 %v741_v56, %v740_v55  ;;  %v5053_v55 = vld [vmem:[%s6508_s5 + $0xe0] sm:$0xff]  }
 0x231   :  { %v1073_v6 = vpack.c.bf16 %v4721_v57, %v4720_v53  ;;  %v5054_v57 = vld [vmem:[%s6508_s5 + $0xa0] sm:$0xff]  }
 0x232   :  { %4699 = vmatmul.mubr.bf16.gmra.mxu0 %v749_v19  ;;  %v1012_v52 = vpop.f32.mrf.mxu1  ;;  %v5055_v19 = vld [vmem:[%s6508_s5 + $0xd8] sm:$0xff]  }
 0x233   :  { %4750 = vmatprep.mubr.bf16.mxu0 %v5031_v18  ;;  %v1072_v7 = vpack.c.bf16 %v1012_v52, %v1009_v54  ;;  %v5052_v54 = vld [vmem:[%s6508_s5 + $0xa8] sm:$0xff]  }
 0x234   :  { %v4724_v22 = vpop.f32.mrf.mxu1 }
 0x236   :  { %v1025_v42 = vpop.f32.mrf.mxu1 }
 0x238   :  { %v4725_v43 = vpop.f32.mrf.mxu1 }
 0x239   :  { %v1075_v3 = vpack.c.bf16 %v4725_v43, %v4724_v22 }
 0x23a   :  { %v1028_v50 = vpop.f32.mrf.mxu1 }
 0x23b   :  { %v1074_v5 = vpack.c.bf16 %v1028_v50, %v1025_v42  ;;  %v5056_v42 = vld [vmem:[%s6508_s5 + $0x98] sm:$0xff]   ;;  %v4069_v50 = vld [vmem:[%s6511_s8] ss:$0 sm:$0xff] }
 0x23c   :  { %v4728_v58 = vpop.f32.mrf.mxu1 }
 0x23e   :  { %v1041_v59 = vpop.f32.mrf.mxu1 }
 0x240   :  { %v4729_v60 = vpop.f32.mrf.mxu1 }
 0x241   :  { %v1077_v38 = vpack.c.bf16 %v4729_v60, %v4728_v58 }
 0x242   :  { %v1044_v61 = vpop.f32.mrf.mxu1 }
 0x243   :  { %v1076_v2 = vpack.c.bf16 %v1044_v61, %v1041_v59 }
 0x244   :  { %v4732_v62 = vpop.f32.mrf.mxu1 }
 0x246   :  { %v1057_v63 = vpop.f32.mrf.mxu1 }
 0x248   :  { %v4733_v39 = vpop.f32.mrf.mxu1 }
 0x249   :  { %v1079_v1 = vpack.c.bf16 %v4733_v39, %v4732_v62 }
 0x24a   :  { %v1060_v36 = vpop.f32.mrf.mxu1 }
 0x24b   :  { %v1078_v37 = vpack.c.bf16 %v1060_v36, %v1057_v63  ;;  %4734 = vmatprep.subr.bf16.mxu0 %v1079_v1 }
 0x24c   :  { %4735 = vmatpush3.bf16.msra.mxu0 %v1079_v1 }
 0x24d   :  { %4736 = vmatprep.subr.bf16.mxu0 %v1078_v37 }
 0x250   :  { %4737 = vmatpush3.bf16.msra.mxu0 %v1078_v37 }
 0x251   :  { %4738 = vmatprep.subr.bf16.mxu0 %v1077_v38 }
 0x254   :  { %4739 = vmatpush3.bf16.msra.mxu0 %v1077_v38 }
 0x255   :  { %4740 = vmatprep.subr.bf16.mxu0 %v1076_v2 }
 0x258   :  { %4741 = vmatpush3.bf16.msra.mxu0 %v1076_v2 }
 0x259   :  { %4742 = vmatprep.subr.bf16.mxu0 %v1075_v3 }
 0x25c   :  { %4743 = vmatpush3.bf16.msra.mxu0 %v1075_v3 }
 0x25d   :  { %4744 = vmatprep.subr.bf16.mxu0 %v1074_v5 }
 0x260   :  { %4745 = vmatpush3.bf16.msra.mxu0 %v1074_v5 }
 0x261   :  { %4746 = vmatprep.subr.bf16.mxu0 %v1073_v6 }
 0x264   :  { %4747 = vmatpush3.bf16.msra.mxu0 %v1073_v6 }
 0x265   :  { %4748 = vmatprep.subr.bf16.mxu0 %v1072_v7 }
 0x268   :  { %4749 = vmatpush3.bf16.msra.mxu0 %v1072_v7 }
 0x269   :  { %4373 = vmatprep.subr.bf16.mxu0 %v5047_v41 }
 0x26b   :  { %4751 = vmatmul.mubr.bf16.vlgmr.msra.gmra.mxu0 %v5032_v8 }
 0x26c   :  { %4754 = vmatprep.mubr.bf16.mxu0 %v5033_v10  ;;  %4374 = vmatpush3.bf16.msra.mxu0 %v5048_v4 }
 0x26d   :  { %4375 = vmatprep.subr.bf16.mxu0 %v5049_v44 }
 0x270   :  { %4376 = vmatpush3.bf16.msra.mxu0 %v5050_v48 }
 0x271   :  { %4377 = vmatprep.subr.bf16.mxu0 %v5051_v49 }
 0x273   :  { %4755 = vmatmul.mubr.bf16.gmra.mxu0 %v5034_v34 }
 0x274   :  { %4758 = vmatprep.mubr.bf16.mxu0 %v5035_v11  ;;  %4378 = vmatpush3.bf16.msra.mxu0 %v5052_v54 }
 0x275   :  { %4379 = vmatprep.subr.bf16.mxu0 %v5053_v55 }
 0x278   :  { %4380 = vmatpush3.bf16.msra.mxu0 %v5054_v57 }
 0x279   :  { %4381 = vmatprep.subr.bf16.mxu0 %v5055_v19 }
 0x27b   :  { %4759 = vmatmul.mubr.bf16.gmra.mxu0 %v5036_v30 }
 0x27c   :  { %4762 = vmatprep.mubr.bf16.mxu0 %v5037_v31  ;;  %4382 = vmatpush3.bf16.msra.mxu0 %v5056_v42 }
 0x283   :  { %4763 = vmatmul.mubr.bf16.gmra.mxu0 %v5038_v32 }
 0x2c2   :  { %v5724_v12 = vpop.f32.mrf.mxu0 }
 0x2c4   :  { %v5726_v13 = vpop.f32.mrf.mxu0 }
 0x2c6   :  { %v5728_v14 = vpop.f32.mrf.mxu0 }
 0x2c8   :  { %v5730_v16 = vpop.f32.mrf.mxu0 }
 0x2d2   :  { %v5732_v17 = vpop.f32.mrf.mxu0 }
 0x2d4   :  { %v5734_v45 = vpop.f32.mrf.mxu0 }
 0x2d6   :  { %v5736_v29 = vpop.f32.mrf.mxu0 }
 0x2d7   :  { %v1350_v57 = vpack.c.bf16 %v5736_v29, %v5732_v17 }
 0x2d8   :  { %v5738_v35 = vpop.f32.mrf.mxu0 }
 0x2d9   :  { %v1348_v42 = vpack.c.bf16 %v5738_v35, %v5734_v45 }
 0x2e2   :  { %v5740_v51 = vpop.f32.mrf.mxu0 }
 0x2e4   :  { %v5742_v21 = vpop.f32.mrf.mxu0 }
 0x2e6   :  { %v5744_v20 = vpop.f32.mrf.mxu0 }
 0x2e8   :  { %v5746_v27 = vpop.f32.mrf.mxu0 }
 0x2f2   :  { %v5748_v28 = vpop.f32.mrf.mxu0 }
 0x2f4   :  { %v5750_v33 = vpop.f32.mrf.mxu0 }
 0x2f6   :  { %v5752_v15 = vpop.f32.mrf.mxu0 }
 0x2f7   :  { %v1358_v30 = vpack.c.bf16 %v5752_v15, %v5748_v28 }
 0x2f8   :  { %v5754_v24 = vpop.f32.mrf.mxu0 }
 0x32b   :  { %v5756_v25 = vpop.f32.mrf.mxu0 }
 0x32c   :  { %v1178_v4 = vadd.f32 %v5756_v25, %v4069_v50 }
 0x32d   :  { %v5758_v9 = vpop.f32.mrf.mxu0 }
 0x32e   :  { %v1170_v25 = vadd.f32 %v4069_v50, %v5758_v9  ;;  %v1352_v9 = vpack.c.bf16 %v5746_v27, %v5742_v21 }
 0x32f   :  { %v5760_v26 = vpop.f32.mrf.mxu0 }
 0x330   :  { %v1181_v31 = vadd.f32 %v5760_v26, %v4069_v50  ;;  %v1356_v26 = vpack.c.bf16 %v5754_v24, %v5750_v33 }
 0x331   :  { %v5762_v40 = vpop.f32.mrf.mxu0 }
 0x333   :  { %v4756_v46 = vpop.f32.mrf.mxu0 }
 0x334   :  { %v1194_v3 = vadd.f32 %v4756_v46, %v4069_v50  ;;  %v1173_v46 = vadd.f32 %v4069_v50, %v5762_v40 }
 0x335   :  { %v1185_v47 = vpop.f32.mrf.mxu0 }
 0x336   :  { %v1186_v10 = vadd.f32 %v4069_v50, %v1185_v47 }
 0x337   :  { %v4757_v53 = vpop.f32.mrf.mxu0 }
 0x338   :  { %v1197_v2 = vadd.f32 %v4757_v53, %v4069_v50  ;;  %v1354_v53 = vpack.c.bf16 %v5744_v20, %v5740_v51 }
 0x339   :  { %v1188_v23 = vpop.f32.mrf.mxu0 }
 0x33a   :  { %v1189_v6 = vadd.f32 %v4069_v50, %v1188_v23 }
 0x33b   :  { %v4760_v56 = vpop.f32.mrf.mxu0 }
 0x33c   :  { %v1210_v36 = vadd.f32 %v4760_v56, %v4069_v50 }
 0x33d   :  { %v1201_v18 = vpop.f32.mrf.mxu0 }
 0x33e   :  { %v1202_v38 = vadd.f32 %v4069_v50, %v1201_v18 }
 0x33f   :  { %v4761_v52 = vpop.f32.mrf.mxu0 }
 0x340   :  { %v1213_v39 = vadd.f32 %v4761_v52, %v4069_v50 }
 0x341   :  { %v1204_v22 = vpop.f32.mrf.mxu0 }
 0x342   :  { %v1205_v37 = vadd.f32 %v4069_v50, %v1204_v22 }
 0x343   :  { %v4764_v43 = vpop.f32.mrf.mxu0 }
 0x344   :  { %v1226_v58 = vadd.f32 %v4764_v43, %v4069_v50 }
 0x345   :  { %v1217_v59 = vpop.f32.mrf.mxu0 }
 0x346   :  { %v1218_v60 = vadd.f32 %v4069_v50, %v1217_v59  ;;  %5151 = vtanh.f32 %v1226_v58  ;;  %v1346_v59 = vpack.c.bf16 %v5728_v14, %v5724_v12 }
 0x347   :  { %v4765_v61 = vpop.f32.mrf.mxu0 }
 0x348   :  { %v1229_v62 = vadd.f32 %v4765_v61, %v4069_v50  ;;  %v1344_v61 = vpack.c.bf16 %v5730_v16, %v5726_v13 }
 0x349   :  { %v1220_v63 = vpop.f32.mrf.mxu0 }
 0x34a   :  { %5153 = vtanh.f32 %v1229_v62  ;;  %v1221_v1 = vadd.f32 %v4069_v50, %v1220_v63  ;;  %v5039_v62 = vld [vmem:[%s6505_s2] sm:$0xff]   ;;  %v5040_v63 = vld [vmem:[%s6505_s2 + $0x8] sm:$0xff]  }
 0x34b   :  { %5155 = vtanh.f32 %v1218_v60 }
 0x34c   :  { %5157 = vtanh.f32 %v1221_v1  ;;  %v5042_v1 = vld [vmem:[%s6505_s2 + $0x18] sm:$0xff]  }
 0x34d   :  { %5159 = vtanh.f32 %v1213_v39  ;;  %v5041_v39 = vld [vmem:[%s6505_s2 + $0x10] sm:$0xff]  }
 0x34e   :  { %5161 = vtanh.f32 %v1210_v36  ;;  %v5043_v36 = vld [vmem:[%s6505_s2 + $0x20] sm:$0xff]  }
 0x34f   :  { %5163 = vtanh.f32 %v1205_v37  ;;  %v5044_v37 = vld [vmem:[%s6505_s2 + $0x28] sm:$0xff]  }
 0x350   :  { %5165 = vtanh.f32 %v1202_v38  ;;  %v5045_v38 = vld [vmem:[%s6505_s2 + $0x30] sm:$0xff]  }
 0x351   :  { %5167 = vtanh.f32 %v1197_v2  ;;  %v5046_v2 = vld [vmem:[%s6505_s2 + $0x38] sm:$0xff]  }
 0x352   :  { %5169 = vtanh.f32 %v1194_v3  ;;  %v5057_v3 = vld [vmem:[%s6508_s5 + $0xd0] sm:$0xff]  }
 0x353   :  { %v5797_v5 = vpop.eup %5151  ;;  %5171 = vtanh.f32 %v1189_v6  ;;  %v5058_v6 = vld [vmem:[%s6508_s5 + $0x90] sm:$0xff]   ;;  %4383 = vmatprep.subr.bf16.mxu0 %v5057_v3 }
 0x354   :  { %5173 = vtanh.f32 %v1186_v10  ;;  %4384 = vmatpush3.bf16.msra.mxu0 %v5058_v6  ;;  %v5059_v10 = vld [vmem:[%s6508_s5 + $0xc8] sm:$0xff]  }
 0x355   :  { %5175 = vtanh.f32 %v1181_v31  ;;  %4385 = vmatprep.subr.bf16.mxu0 %v5059_v10  ;;  %v5061_v31 = vld [vmem:[%s6508_s5 + $0xc0] sm:$0xff]  }
 0x356   :  { %5177 = vtanh.f32 %v1178_v4  ;;  %v5062_v4 = vld [vmem:[%s6508_s5 + $0x80] sm:$0xff]  }
 0x357   :  { %v5799_v7 = vpop.eup %5153  ;;  %5179 = vtanh.f32 %v1173_v46  ;;  %v5071_v46 = vld [vmem:[#allocation8 + $0x78] sm:$0xff]  }
 0x358   :  { %v5801_v8 = vpop.eup %5155  ;;  %v5805_v34 = vpack.c.bf16 %v5799_v7, %v5797_v5  ;;  %5181 = vtanh.f32 %v1170_v25  ;;  %v5072_v25 = vld [vmem:[#allocation8 + $0x70] sm:$0xff]  }
 0x359   :  { %v5807_v11 = vpop.eup %5157 }
 0x35a   :  { %1408 = vmatprep.subr.bf16.mxu1 %v5805_v34  ;;  %v5815_v32 = vpack.c.bf16 %v5807_v11, %v5801_v8  ;;  %v5817_v41 = vpop.eup %5159 }
 0x35b   :  { %1409 = vmatpush1.bf16.msra.mxu1 %v1358_v30  ;;  %v5821_v44 = vpop.eup %5161  ;;  %v5060_v30 = vld [vmem:[%s6508_s5 + $0x88] sm:$0xff]  }
 0x35c   :  { %1410 = vmatprep.subr.bf16.mxu1 %v5815_v32  ;;  %v5828_v47 = vpack.c.bf16 %v5817_v41, %v5821_v44  ;;  %v5830_v48 = vpop.eup %5163  ;;  %4386 = vmatpush3.bf16.msra.mxu0 %v5060_v30  ;;  %v5065_v30 = vld [vmem:[#allocation9 + $0x68] sm:$0xff]  }
 0x35d   :  { %v5834_v49 = vpop.eup %5165  ;;  %4387 = vmatprep.subr.bf16.mxu0 %v5061_v31 }
 0x35e   :  { %v5840_v40 = vpack.c.bf16 %v5830_v48, %v5834_v49  ;;  %v5842_v23 = vpop.eup %5167 }
 0x35f   :  { %1411 = vmatpush1.bf16.msra.mxu1 %v1356_v26  ;;  %v5845_v54 = vpop.eup %5169  ;;  %v5063_v26 = vld [vmem:[#allocation9 + $0x78] sm:$0xff]  }
 0x360   :  { %1412 = vmatprep.subr.bf16.mxu1 %v5828_v47  ;;  %v5851_v55 = vpack.c.bf16 %v5842_v23, %v5845_v54  ;;  %v5853_v56 = vpop.eup %5171  ;;  %4388 = vmatpush3.bf16.msra.mxu0 %v5062_v4 }
 0x361   :  { %v5856_v18 = vpop.eup %5173  ;;  %4798 = vmatprep.subr.bf16.mxu0 %v5063_v26 }
 0x362   :  { %v5862_v19 = vpack.c.bf16 %v5853_v56, %v5856_v18  ;;  %v5864_v52 = vpop.eup %5175 }
 0x363   :  { %1413 = vmatpush1.bf16.msra.mxu1 %v1354_v53  ;;  %v5867_v22 = vpop.eup %5177  ;;  %v5073_v53 = vld [vmem:[#allocation8 + $0x68] sm:$0xff]  }
 0x364   :  { %1414 = vmatprep.subr.bf16.mxu1 %v5840_v40  ;;  %v5873_v43 = vpack.c.bf16 %v5864_v52, %v5867_v22  ;;  %v5180_v50 = vpop.eup %5179 }
 0x365   :  { %v5182_v58 = vpop.eup %5181 }
 0x366   :  { %v5878_v60 = vpack.c.bf16 %v5180_v50, %v5182_v58 }
 0x367   :  { %1415 = vmatpush1.bf16.msra.mxu1 %v1352_v9 }
 0x368   :  { %1416 = vmatprep.subr.bf16.mxu1 %v5851_v55 }
 0x36b   :  { %1417 = vmatpush1.bf16.msra.mxu1 %v1350_v57 }
 0x36c   :  { %1418 = vmatprep.subr.bf16.mxu1 %v5862_v19 }
 0x36f   :  { %1419 = vmatpush1.bf16.msra.mxu1 %v1348_v42 }
 0x370   :  { %1420 = vmatprep.subr.bf16.mxu1 %v5873_v43 }
 0x373   :  { %1421 = vmatpush1.bf16.msra.mxu1 %v1346_v59 }
 0x374   :  { %1422 = vmatprep.subr.bf16.mxu1 %v5878_v60 }
 0x377   :  { %1423 = vmatpush1.bf16.msra.mxu1 %v1344_v61 }
 0x378   :  { %4766 = vmatprep.subr.bf16.mxu1 %v5071_v46 }
 0x37a   :  { %1441 = vmatmul.mubr.bf16.vlgmr.msra.gmra.mxu1 %v5039_v62 }
 0x37b   :  { %1450 = vmatprep.mubr.bf16.mxu1 %v5398_v0  ;;  %4767 = vmatpush3.bf16.msra.mxu1 %v5071_v46 }
 0x37c   :  { %4768 = vmatprep.subr.bf16.mxu1 %v5072_v25 }
 0x37f   :  { %4769 = vmatpush3.bf16.msra.mxu1 %v5072_v25  ;;  %v5066_v25 = vld [vmem:[#allocation9 + $0x60] sm:$0xff]  }
 0x380   :  { %4770 = vmatprep.subr.bf16.mxu1 %v5073_v53 }
 0x382   :  { %1451 = vmatmul.mubr.bf16.gmra.mxu1 %v5040_v63 }
 0x383   :  { %1460 = vmatprep.mubr.bf16.mxu1 %v5398_v0  ;;  %4771 = vmatpush3.bf16.msra.mxu1 %v5073_v53 }
 0x38a   :  { %1461 = vmatmul.mubr.bf16.gmra.mxu1 %v5041_v39 }
 0x38b   :  { %1470 = vmatprep.mubr.bf16.mxu1 %v5398_v0 }
 0x392   :  { %1471 = vmatmul.mubr.bf16.gmra.mxu1 %v5042_v1 }
 0x393   :  { %1480 = vmatprep.mubr.bf16.mxu1 %v5398_v0 }
 0x39a   :  { %1481 = vmatmul.mubr.bf16.gmra.mxu1 %v5043_v36 }
 0x39b   :  { %1490 = vmatprep.mubr.bf16.mxu1 %v5398_v0 }
 0x3a2   :  { %1491 = vmatmul.mubr.bf16.gmra.mxu1 %v5044_v37 }
 0x3a3   :  { %1500 = vmatprep.mubr.bf16.mxu1 %v5398_v0 }
 0x3aa   :  { %1501 = vmatmul.mubr.bf16.gmra.mxu1 %v5045_v38 }
 0x3ab   :  { %1510 = vmatprep.mubr.bf16.mxu1 %v5398_v0 }
 0x3b2   :  { %1511 = vmatmul.mubr.bf16.gmra.mxu1 %v5046_v2  ;;  %v5064_v2 = vld [vmem:[#allocation9 + $0x70] sm:$0xff]  }
 0x43a   :  { %v1442_v9 = vpop.f32.mrf.mxu1 }
 0x43b   :  { %v1521_v39 = vadd.f32 %v1442_v9, %v5726_v13 }
 0x43c   :  { %v1444_v57 = vpop.f32.mrf.mxu1 }
 0x43d   :  { %v1522_v62 = vadd.f32 %v5182_v58, %v1444_v57 }
 0x43e   :  { %v1446_v42 = vpop.f32.mrf.mxu1 }
 0x43f   :  { %v1523_v59 = vadd.f32 %v1446_v42, %v5730_v16 }
 0x440   :  { %v1448_v61 = vpop.f32.mrf.mxu1 }
 0x441   :  { %v1524_v63 = vadd.f32 %v5180_v50, %v1448_v61  ;;  %v1553_v37 = vpack.c.bf16 %v1523_v59, %v1521_v39 }
 0x442   :  { %v1452_v1 = vpop.f32.mrf.mxu1 }
 0x443   :  { %v1554_v36 = vpack.c.bf16 %v1524_v63, %v1522_v62  ;;  %v1525_v13 = vadd.f32 %v5724_v12, %v1452_v1  ;;  %v5068_v62 = vld [vmem:[#allocation9 + $0x50] sm:$0xff]  }
 0x444   :  { %v1454_v38 = vpop.f32.mrf.mxu1 }
 0x445   :  { %1730 = vmatprep.mubr.bf16.mxu0 %v1554_v36  ;;  %v1526_v16 = vadd.f32 %v5867_v22, %v1454_v38  ;;  %v5067_v22 = vld [vmem:[#allocation9 + $0x58] sm:$0xff]  }
 0x446   :  { %v1456_v3 = vpop.f32.mrf.mxu1  ;;  %1731 = vmatmul.mubr.bf16.vlgmr.msra.gmra.mxu0 %v1553_v37 }
 0x447   :  { %4799 = vmatpush3.bf16.msra.mxu0 %v5063_v26  ;;  %v1527_v6 = vadd.f32 %v5728_v14, %v1456_v3  ;;  %v5070_v3 = vld [vmem:[#allocation9 + $0x40] sm:$0xff]  }
 0x448   :  { %v1458_v10 = vpop.f32.mrf.mxu1  ;;  %4800 = vmatprep.subr.bf16.mxu0 %v5064_v2 }
 0x449   :  { %v1528_v50 = vadd.f32 %v5864_v52, %v1458_v10  ;;  %v1555_v4 = vpack.c.bf16 %v1527_v6, %v1525_v13 }
 0x44a   :  { %v1462_v58 = vpop.f32.mrf.mxu1 }
 0x44b   :  { %v1556_v31 = vpack.c.bf16 %v1528_v50, %v1526_v16  ;;  %4801 = vmatpush3.bf16.msra.mxu0 %v5064_v2  ;;  %v1529_v9 = vadd.f32 %v1462_v58, %v5734_v45 }
 0x44c   :  { %v1464_v46 = vpop.f32.mrf.mxu1  ;;  %4802 = vmatprep.subr.bf16.mxu0 %v5065_v30 }
 0x44d   :  { %1738 = vmatprep.mubr.bf16.mxu0 %v1556_v31  ;;  %v1530_v52 = vadd.f32 %v5856_v18, %v1464_v46  ;;  %v5069_v18 = vld [vmem:[#allocation9 + $0x48] sm:$0xff]  }
 0x44e   :  { %v1466_v26 = vpop.f32.mrf.mxu1  ;;  %1739 = vmatmul.mubr.bf16.gmra.mxu0 %v1555_v4 }
 0x44f   :  { %4803 = vmatpush3.bf16.msra.mxu0 %v5065_v30  ;;  %v1531_v14 = vadd.f32 %v1466_v26, %v5738_v35 }
 0x450   :  { %v1468_v53 = vpop.f32.mrf.mxu1  ;;  %4804 = vmatprep.subr.bf16.mxu0 %v5066_v25 }
 0x451   :  { %v1532_v12 = vadd.f32 %v5853_v56, %v1468_v53  ;;  %v1557_v59 = vpack.c.bf16 %v1531_v14, %v1529_v9 }
 0x452   :  { %v1472_v57 = vpop.f32.mrf.mxu1 }
 0x453   :  { %v1558_v42 = vpack.c.bf16 %v1532_v12, %v1530_v52  ;;  %4805 = vmatpush3.bf16.msra.mxu0 %v5066_v25  ;;  %v1533_v1 = vadd.f32 %v5732_v17, %v1472_v57 }
 0x454   :  { %v1474_v61 = vpop.f32.mrf.mxu1  ;;  %4806 = vmatprep.subr.bf16.mxu0 %v5067_v22 }
 0x455   :  { %1746 = vmatprep.mubr.bf16.mxu0 %v1558_v42  ;;  %v1534_v56 = vadd.f32 %v5845_v54, %v1474_v61 }
 0x456   :  { %v1476_v63 = vpop.f32.mrf.mxu1  ;;  %1747 = vmatmul.mubr.bf16.gmra.mxu0 %v1557_v59 }
 0x457   :  { %4807 = vmatpush3.bf16.msra.mxu0 %v5067_v22  ;;  %v1535_v35 = vadd.f32 %v5736_v29, %v1476_v63 }
 0x458   :  { %v1478_v39 = vpop.f32.mrf.mxu1  ;;  %4808 = vmatprep.subr.bf16.mxu0 %v5068_v62 }
 0x459   :  { %v1536_v45 = vadd.f32 %v5842_v23, %v1478_v39  ;;  %v1559_v38 = vpack.c.bf16 %v1535_v35, %v1533_v1 }
 0x45a   :  { %v1482_v36 = vpop.f32.mrf.mxu1 }
 0x45b   :  { %v1560_v37 = vpack.c.bf16 %v1536_v45, %v1534_v56  ;;  %4809 = vmatpush3.bf16.msra.mxu0 %v5068_v62  ;;  %v1537_v17 = vadd.f32 %v1482_v36, %v5742_v21 }
 0x45c   :  { %v1484_v2 = vpop.f32.mrf.mxu1  ;;  %4810 = vmatprep.subr.bf16.mxu0 %v5069_v18 }
 0x45d   :  { %1754 = vmatprep.mubr.bf16.mxu0 %v1560_v37  ;;  %v1538_v54 = vadd.f32 %v5834_v49, %v1484_v2 }
 0x45e   :  { %v1486_v6 = vpop.f32.mrf.mxu1  ;;  %1755 = vmatmul.mubr.bf16.gmra.mxu0 %v1559_v38 }
 0x45f   :  { %4811 = vmatpush3.bf16.msra.mxu0 %v5069_v18  ;;  %v1539_v29 = vadd.f32 %v1486_v6, %v5746_v27 }
 0x460   :  { %v1488_v10 = vpop.f32.mrf.mxu1  ;;  %4812 = vmatprep.subr.bf16.mxu0 %v5070_v3 }
 0x461   :  { %v1540_v23 = vadd.f32 %v5830_v48, %v1488_v10  ;;  %v1561_v50 = vpack.c.bf16 %v1539_v29, %v1537_v17 }
 0x462   :  { %v1492_v30 = vpop.f32.mrf.mxu1 }
 0x463   :  { %v1562_v16 = vpack.c.bf16 %v1540_v23, %v1538_v54  ;;  %4813 = vmatpush3.bf16.msra.mxu0 %v5070_v3  ;;  %v1541_v49 = vadd.f32 %v5740_v51, %v1492_v30 }
 0x464   :  { %v1494_v13 = vpop.f32.mrf.mxu1 }
 0x465   :  { %1762 = vmatprep.mubr.bf16.mxu0 %v1562_v16  ;;  %v1542_v27 = vadd.f32 %v5821_v44, %v1494_v13 }
 0x466   :  { %v1496_v58 = vpop.f32.mrf.mxu1  ;;  %1763 = vmatmul.mubr.bf16.gmra.mxu0 %v1561_v50 }
 0x467   :  { %v1543_v31 = vadd.f32 %v5744_v20, %v1496_v58 }
 0x468   :  { %v1498_v4 = vpop.f32.mrf.mxu1 }
 0x469   :  { %v1544_v46 = vadd.f32 %v5817_v41, %v1498_v4  ;;  %v1563_v21 = vpack.c.bf16 %v1543_v31, %v1541_v49 }
 0x46a   :  { %v1502_v48 = vpop.f32.mrf.mxu1 }
 0x46b   :  { %v1564_v25 = vpack.c.bf16 %v1544_v46, %v1542_v27  ;;  %v1545_v44 = vadd.f32 %v1502_v48, %v5750_v33  ;;  %v5074_v33 = vld [vmem:[#allocation8 + $0x60] sm:$0xff]  }
 0x46c   :  { %v1504_v26 = vpop.f32.mrf.mxu1  ;;  %4772 = vmatprep.subr.bf16.mxu1 %v5074_v33 }
 0x46d   :  { %1770 = vmatprep.mubr.bf16.mxu0 %v1564_v25  ;;  %v1546_v52 = vadd.f32 %v5801_v8, %v1504_v26  ;;  %4773 = vmatpush3.bf16.msra.mxu1 %v5074_v33 }
 0x46e   :  { %v1506_v14 = vpop.f32.mrf.mxu1  ;;  %1771 = vmatmul.mubr.bf16.gmra.mxu0 %v1563_v21 }
 0x46f   :  { %v1547_v53 = vadd.f32 %v1506_v14, %v5754_v24 }
 0x470   :  { %v1508_v22 = vpop.f32.mrf.mxu1 }
 0x471   :  { %v1548_v20 = vadd.f32 %v5807_v11, %v1508_v22  ;;  %v1565_v9 = vpack.c.bf16 %v1547_v53, %v1545_v44 }
 0x472   :  { %v1512_v12 = vpop.f32.mrf.mxu1 }
 0x473   :  { %v1566_v41 = vpack.c.bf16 %v1548_v20, %v1546_v52  ;;  %v1549_v8 = vadd.f32 %v5748_v28, %v1512_v12  ;;  %v5077_v28 = vld [vmem:[#allocation8 + $0x48] sm:$0xff]  }
 0x474   :  { %v1514_v51 = vpop.f32.mrf.mxu1 }
 0x475   :  { %1778 = vmatprep.mubr.bf16.mxu0 %v1566_v41  ;;  %v1550_v61 = vadd.f32 %v5797_v5, %v1514_v51  ;;  %v5076_v5 = vld [vmem:[#allocation8 + $0x50] sm:$0xff]  }
 0x476   :  { %v1516_v57 = vpop.f32.mrf.mxu1  ;;  %1779 = vmatmul.mubr.bf16.gmra.mxu0 %v1565_v9 }
 0x477   :  { %v1551_v42 = vadd.f32 %v5752_v15, %v1516_v57  ;;  %v5075_v15 = vld [vmem:[#allocation8 + $0x58] sm:$0xff]  }
 0x478   :  { %v1518_v59 = vpop.f32.mrf.mxu1  ;;  %4774 = vmatprep.subr.bf16.mxu1 %v5075_v15 }
 0x479   :  { %v1552_v24 = vadd.f32 %v5799_v7, %v1518_v59  ;;  %v1567_v11 = vpack.c.bf16 %v1551_v42, %v1549_v8  ;;  %4775 = vmatpush3.bf16.msra.mxu1 %v5075_v15  ;;  %v5078_v7 = vld [vmem:[#allocation8 + $0x40] sm:$0xff]  }
 0x47a   :  { %4776 = vmatprep.subr.bf16.mxu1 %v5076_v5 }
 0x47b   :  { %v1568_v62 = vpack.c.bf16 %v1552_v24, %v1550_v61 }
 0x47d   :  { %1786 = vmatprep.mubr.bf16.mxu0 %v1568_v62  ;;  %4777 = vmatpush3.bf16.msra.mxu1 %v5076_v5 }
 0x47e   :  { %1787 = vmatmul.mubr.bf16.gmra.mxu0 %v1567_v11  ;;  %4778 = vmatprep.subr.bf16.mxu1 %v5077_v28 }
 0x47f   :  { %4814 = vmatprep.mubr.bf16.mxu0 %v5878_v60 }
 0x481   :  { %4779 = vmatpush3.bf16.msra.mxu1 %v5077_v28 }
 0x482   :  { %4780 = vmatprep.subr.bf16.mxu1 %v5078_v7 }
 0x485   :  { %4781 = vmatpush3.bf16.msra.mxu1 %v5078_v7 }
 0x486   :  { %4815 = vmatmul.mubr.bf16.vlgmr.msra.gmra.mxu0 %v5873_v43 }
 0x487   :  { %4818 = vmatprep.mubr.bf16.mxu0 %v5862_v19 }
 0x48e   :  { %4819 = vmatmul.mubr.bf16.gmra.mxu0 %v5851_v55 }
 0x48f   :  { %4822 = vmatprep.mubr.bf16.mxu0 %v5840_v40 }
 0x496   :  { %4823 = vmatmul.mubr.bf16.gmra.mxu0 %v5828_v47 }
 0x497   :  { %4826 = vmatprep.mubr.bf16.mxu0 %v5815_v32 }
 0x49e   :  { %4827 = vmatmul.mubr.bf16.gmra.mxu0 %v5805_v34 }
 0x49f   :  { %2544 = vmatprep.mubr.bf16.mxu0 %v5398_v0 }
 0x506   :  { %v4389_v55 = vpop.f32.mrf.mxu0 }
 0x508   :  { %v4390_v19 = vpop.f32.mrf.mxu0 }
 0x509   :  { %v4391_v43 = vadd.f32 %v4390_v19, %v4389_v55 }
 0x50a   :  { %v4392_v40 = vpop.f32.mrf.mxu0 }
 0x50b   :  { %v1811_v63 = vmul.f32 0.01, %v4391_v43  ;;  %vm1795_vm0 = vcmp.ge.f32.partialorder %v4391_v43, 0.0 }
 0x50c   :  { %v4393_v60 = vpop.f32.mrf.mxu0 }
 0x50d   :  { %v4394_v35 = vadd.f32 %v4393_v60, %v4392_v40  ;;  %v1827_v32 = vsel %vm1795_vm0, %v4391_v43, %v1811_v63 }
 0x50e   :  { %v4395_v39 = vpop.f32.mrf.mxu0 }
 0x50f   :  { %vm1796_vm1 = vcmp.ge.f32.partialorder %v4394_v35, 0.0  ;;  %v1812_v47 = vmul.f32 0.01, %v4394_v35 }
 0x510   :  { %v4396_v18 = vpop.f32.mrf.mxu0 }
 0x511   :  { %v4397_v56 = vadd.f32 %v4396_v18, %v4395_v39  ;;  %v1828_v45 = vsel %vm1796_vm1, %v4394_v35, %v1812_v47 }
 0x512   :  { %v4398_v1 = vpop.f32.mrf.mxu0  ;;  %v1843_v36 = vpack.c.bf16 %v1828_v45, %v1827_v32 }
 0x513   :  { %v1813_v37 = vmul.f32 0.01, %v4397_v56  ;;  %vm1797_vm2 = vcmp.ge.f32.partialorder %v4397_v56, 0.0 }
 0x514   :  { %v4399_v34 = vpop.f32.mrf.mxu0  ;;  %4782 = vmatprep.mubr.bf16.mxu1 %v1843_v36 }
 0x515   :  { %v4400_v38 = vadd.f32 %v4399_v34, %v4398_v1  ;;  %v1829_v29 = vsel %vm1797_vm2, %v4397_v56, %v1813_v37 }
 0x516   :  { %v4401_v2 = vpop.f32.mrf.mxu0 }
 0x517   :  { %vm1798_vm3 = vcmp.ge.f32.partialorder %v4400_v38, 0.0  ;;  %v1814_v3 = vmul.f32 0.01, %v4400_v38 }
 0x518   :  { %v4402_v6 = vpop.f32.mrf.mxu0 }
 0x519   :  { %v1830_v10 = vsel %vm1798_vm3, %v4400_v38, %v1814_v3  ;;  %v4403_v54 = vadd.f32 %v4402_v6, %v4401_v2 }
 0x51a   :  { %v1844_v23 = vpack.c.bf16 %v1830_v10, %v1829_v29  ;;  %v4404_v17 = vpop.f32.mrf.mxu0 }
 0x51b   :  { %v1815_v16 = vmul.f32 0.01, %v4403_v54  ;;  %vm1799_vm4 = vcmp.ge.f32.partialorder %v4403_v54, 0.0 }
 0x51c   :  { %v4405_v30 = vpop.f32.mrf.mxu0  ;;  %4783 = vmatmul.mubr.bf16.vlgmr.msra.gmra.mxu1 %v1844_v23 }
 0x51d   :  { %v4406_v50 = vadd.f32 %v4405_v30, %v4404_v17  ;;  %v1831_v27 = vsel %vm1799_vm4, %v4403_v54, %v1815_v16  ;;  %v5079_v30 = vld [vmem:[%s6506_s3] sm:$0xff]  }
 0x51e   :  { %v4407_v13 = vpop.f32.mrf.mxu0 }
 0x51f   :  { %vm1800_vm5 = vcmp.ge.f32.partialorder %v4406_v50, 0.0  ;;  %v1816_v58 = vmul.f32 0.01, %v4406_v50 }
 0x520   :  { %v4408_v31 = vpop.f32.mrf.mxu0 }
 0x521   :  { %v4409_v4 = vadd.f32 %v4408_v31, %v4407_v13  ;;  %v1832_v46 = vsel %vm1800_vm5, %v4406_v50, %v1816_v58 }
 0x522   :  { %v4410_v49 = vpop.f32.mrf.mxu0  ;;  %v1845_v48 = vpack.c.bf16 %v1832_v46, %v1831_v27 }
 0x523   :  { %v1817_v21 = vmul.f32 0.01, %v4409_v4  ;;  %vm1801_vm6 = vcmp.ge.f32.partialorder %v4409_v4, 0.0 }
 0x524   :  { %v4411_v25 = vpop.f32.mrf.mxu0  ;;  %4786 = vmatprep.mubr.bf16.mxu1 %v1845_v48 }
 0x525   :  { %v4412_v26 = vadd.f32 %v4411_v25, %v4410_v49  ;;  %v1833_v20 = vsel %vm1801_vm6, %v4409_v4, %v1817_v21 }
 0x526   :  { %v4413_v14 = vpop.f32.mrf.mxu0 }
 0x527   :  { %vm1802_vm7 = vcmp.ge.f32.partialorder %v4412_v26, 0.0  ;;  %v1818_v53 = vmul.f32 0.01, %v4412_v26 }
 0x528   :  { %v4414_v22 = vpop.f32.mrf.mxu0 }
 0x529   :  { %v4415_v52 = vadd.f32 %v4414_v22, %v4413_v14  ;;  %v1834_v44 = vsel %vm1802_vm7, %v4412_v26, %v1818_v53 }
 0x52a   :  { %v4416_v12 = vpop.f32.mrf.mxu0  ;;  %v1846_v41 = vpack.c.bf16 %v1834_v44, %v1833_v20 }
 0x52b   :  { %v1819_v51 = vmul.f32 0.01, %v4415_v52  ;;  %vm1803_vm8 = vcmp.ge.f32.partialorder %v4415_v52, 0.0 }
 0x52c   :  { %v4417_v9 = vpop.f32.mrf.mxu0  ;;  %4787 = vmatmul.mubr.bf16.gmra.mxu1 %v1846_v41 }
 0x52d   :  { %v4418_v57 = vadd.f32 %v4417_v9, %v4416_v12  ;;  %v1835_v8 = vsel %vm1803_vm8, %v4415_v52, %v1819_v51 }
 0x52e   :  { %v4419_v42 = vpop.f32.mrf.mxu0 }
 0x52f   :  { %vm1804_vm9 = vcmp.ge.f32.partialorder %v4418_v57, 0.0  ;;  %v1820_v59 = vmul.f32 0.01, %v4418_v57 }
 0x530   :  { %v4420_v61 = vpop.f32.mrf.mxu0 }
 0x531   :  { %v4421_v24 = vadd.f32 %v4420_v61, %v4419_v42  ;;  %v1836_v62 = vsel %vm1804_vm9, %v4418_v57, %v1820_v59  ;;  %v5080_v57 = vld [vmem:[%s6506_s3 + $0x8] sm:$0xff]   ;;  %v5081_v42 = vld [vmem:[%s6506_s3 + $0x10] sm:$0xff]   ;;  %v5082_v59 = vld [vmem:[%s6506_s3 + $0x18] sm:$0xff]  }
 0x532   :  { %v4422_v11 = vpop.f32.mrf.mxu0  ;;  %v1847_v33 = vpack.c.bf16 %v1836_v62, %v1835_v8  ;;  %v5083_v61 = vld [vmem:[%s6506_s3 + $0x20] sm:$0xff]   ;;  %v5085_v8 = vld [vmem:[%s6506_s3 + $0x30] sm:$0xff]   ;;  %v5086_v62 = vld [vmem:[%s6506_s3 + $0x38] sm:$0xff]  }
 0x533   :  { %v1821_v5 = vmul.f32 0.01, %v4421_v24  ;;  %vm1805_vm10 = vcmp.ge.f32.partialorder %v4421_v24, 0.0 }
 0x534   :  { %v4423_v15 = vpop.f32.mrf.mxu0  ;;  %4790 = vmatprep.mubr.bf16.mxu1 %v1847_v33 }
 0x535   :  { %v4424_v28 = vadd.f32 %v4423_v15, %v4422_v11  ;;  %v1837_v40 = vsel %vm1805_vm10, %v4421_v24, %v1821_v5  ;;  %v5084_v24 = vld [vmem:[%s6506_s3 + $0x28] sm:$0xff]  }
 0x536   :  { %v4425_v7 = vpop.f32.mrf.mxu0 }
 0x537   :  { %vm1806_vm11 = vcmp.ge.f32.partialorder %v4424_v28, 0.0  ;;  %v1822_v55 = vmul.f32 0.01, %v4424_v28 }
 0x538   :  { %v4426_v19 = vpop.f32.mrf.mxu0 }
 0x539   :  { %v4427_v43 = vadd.f32 %v4426_v19, %v4425_v7  ;;  %v1838_v60 = vsel %vm1806_vm11, %v4424_v28, %v1822_v55 }
 0x53a   :  { %v4428_v63 = vpop.f32.mrf.mxu0  ;;  %v1848_v35 = vpack.c.bf16 %v1838_v60, %v1837_v40 }
 0x53b   :  { %v1823_v47 = vmul.f32 0.01, %v4427_v43  ;;  %vm1807_vm12 = vcmp.ge.f32.partialorder %v4427_v43, 0.0 }
 0x53c   :  { %v4429_v39 = vpop.f32.mrf.mxu0  ;;  %4791 = vmatmul.mubr.bf16.gmra.mxu1 %v1848_v35 }
 0x53d   :  { %v4430_v18 = vadd.f32 %v4429_v39, %v4428_v63  ;;  %v1839_v36 = vsel %vm1807_vm12, %v4427_v43, %v1823_v47 }
 0x53e   :  { %v4431_v56 = vpop.f32.mrf.mxu0 }
 0x53f   :  { %vm1808_vm13 = vcmp.ge.f32.partialorder %v4430_v18, 0.0  ;;  %v1824_v32 = vmul.f32 0.01, %v4430_v18 }
 0x540   :  { %v4432_v45 = vpop.f32.mrf.mxu0 }
 0x541   :  { %v4433_v1 = vadd.f32 %v4432_v45, %v4431_v56  ;;  %v1840_v34 = vsel %vm1808_vm13, %v4430_v18, %v1824_v32 }
 0x542   :  { %v4434_v37 = vpop.f32.mrf.mxu0  ;;  %v1849_v38 = vpack.c.bf16 %v1840_v34, %v1839_v36  ;;  %v5095_v36 = vld [vmem:[%s6508_s5 + $0x178] sm:$0xff]  }
 0x543   :  { %v1825_v3 = vmul.f32 0.01, %v4433_v1  ;;  %vm1809_vm14 = vcmp.ge.f32.partialorder %v4433_v1, 0.0  ;;  %v5096_v34 = vld [vmem:[%s6508_s5 + $0x138] sm:$0xff]  }
 0x544   :  { %v4435_v2 = vpop.f32.mrf.mxu0  ;;  %4794 = vmatprep.mubr.bf16.mxu1 %v1849_v38 }
 0x545   :  { %v4436_v6 = vadd.f32 %v4435_v2, %v4434_v37  ;;  %v1841_v23 = vsel %vm1809_vm14, %v4433_v1, %v1825_v3  ;;  %v5097_v37 = vld [vmem:[%s6508_s5 + $0x170] sm:$0xff]  }
 0x546   :  { %v4816_v29 = vpop.f32.mrf.mxu0  ;;  %v5098_v3 = vld [vmem:[%s6508_s5 + $0x130] sm:$0xff]  }
 0x547   :  { %vm1810_vm15 = vcmp.ge.f32.partialorder %v4436_v6, 0.0  ;;  %v1826_v10 = vmul.f32 0.01, %v4436_v6 }
 0x548   :  { %v2112_v54 = vpop.f32.mrf.mxu0 }
 0x549   :  { %v1842_v17 = vsel %vm1810_vm15, %v4436_v6, %v1826_v10  ;;  %v5099_v6 = vld [vmem:[%s6508_s5 + $0x168] sm:$0xff]  }
 0x54a   :  { %v4817_v16 = vpop.f32.mrf.mxu0  ;;  %v1850_v50 = vpack.c.bf16 %v1842_v17, %v1841_v23  ;;  %v5101_v23 = vld [vmem:[%s6508_s5 + $0x160] sm:$0xff]  }
 0x54b   :  { %v2176_v9 = vpack.c.bf16 %v4817_v16, %v4816_v29  ;;  %v5102_v16 = vld [vmem:[%s6508_s5 + $0x120] sm:$0xff]  }
 0x54c   :  { %4795 = vmatmul.mubr.bf16.gmra.mxu1 %v1850_v50  ;;  %v2115_v13 = vpop.f32.mrf.mxu0  ;;  %v5103_v50 = vld [vmem:[%s6508_s5 + $0x158] sm:$0xff]  }
 0x54d   :  { %4846 = vmatprep.mubr.bf16.mxu1 %v5079_v30  ;;  %v2175_v51 = vpack.c.bf16 %v2115_v13, %v2112_v54  ;;  %v5100_v54 = vld [vmem:[%s6508_s5 + $0x128] sm:$0xff]  }
 0x54e   :  { %v4820_v58 = vpop.f32.mrf.mxu0 }
 0x550   :  { %v2128_v31 = vpop.f32.mrf.mxu0 }
 0x552   :  { %v4821_v4 = vpop.f32.mrf.mxu0 }
 0x553   :  { %v2178_v12 = vpack.c.bf16 %v4821_v4, %v4820_v58 }
 0x554   :  { %v2131_v27 = vpop.f32.mrf.mxu0 }
 0x555   :  { %v2177_v41 = vpack.c.bf16 %v2131_v27, %v2128_v31  ;;  %v5104_v31 = vld [vmem:[%s6508_s5 + $0x118] sm:$0xff]   ;;  %v4151_v27 = vld [vmem:[%s6511_s8 + $0x1] ss:$0 sm:$0xff] }
 0x556   :  { %v4824_v46 = vpop.f32.mrf.mxu0 }
 0x558   :  { %v2144_v49 = vpop.f32.mrf.mxu0 }
 0x55a   :  { %v4825_v48 = vpop.f32.mrf.mxu0 }
 0x55b   :  { %v2180_v20 = vpack.c.bf16 %v4825_v48, %v4824_v46 }
 0x55c   :  { %v2147_v25 = vpop.f32.mrf.mxu0 }
 0x55d   :  { %v2179_v44 = vpack.c.bf16 %v2147_v25, %v2144_v49 }
 0x55e   :  { %v4828_v21 = vpop.f32.mrf.mxu0 }
 0x560   :  { %v2160_v26 = vpop.f32.mrf.mxu0 }
 0x562   :  { %v4829_v14 = vpop.f32.mrf.mxu0 }
 0x563   :  { %v2182_v53 = vpack.c.bf16 %v4829_v14, %v4828_v21 }
 0x564   :  { %v2163_v22 = vpop.f32.mrf.mxu0 }
 0x565   :  { %v2181_v52 = vpack.c.bf16 %v2163_v22, %v2160_v26  ;;  %4830 = vmatprep.subr.bf16.mxu1 %v2182_v53 }
 0x566   :  { %4831 = vmatpush3.bf16.msra.mxu1 %v2182_v53 }
 0x567   :  { %4832 = vmatprep.subr.bf16.mxu1 %v2181_v52 }
 0x56a   :  { %4833 = vmatpush3.bf16.msra.mxu1 %v2181_v52 }
 0x56b   :  { %4834 = vmatprep.subr.bf16.mxu1 %v2180_v20 }
 0x56e   :  { %4835 = vmatpush3.bf16.msra.mxu1 %v2180_v20 }
 0x56f   :  { %4836 = vmatprep.subr.bf16.mxu1 %v2179_v44 }
 0x572   :  { %4837 = vmatpush3.bf16.msra.mxu1 %v2179_v44 }
 0x573   :  { %4838 = vmatprep.subr.bf16.mxu1 %v2178_v12 }
 0x576   :  { %4839 = vmatpush3.bf16.msra.mxu1 %v2178_v12 }
 0x577   :  { %4840 = vmatprep.subr.bf16.mxu1 %v2177_v41 }
 0x57a   :  { %4841 = vmatpush3.bf16.msra.mxu1 %v2177_v41 }
 0x57b   :  { %4842 = vmatprep.subr.bf16.mxu1 %v2176_v9 }
 0x57e   :  { %4843 = vmatpush3.bf16.msra.mxu1 %v2176_v9 }
 0x57f   :  { %4844 = vmatprep.subr.bf16.mxu1 %v2175_v51 }
 0x582   :  { %4845 = vmatpush3.bf16.msra.mxu1 %v2175_v51 }
 0x583   :  { %4485 = vmatprep.subr.bf16.mxu1 %v5095_v36 }
 0x585   :  { %4847 = vmatmul.mubr.bf16.vlgmr.msra.gmra.mxu1 %v5080_v57 }
 0x586   :  { %4850 = vmatprep.mubr.bf16.mxu1 %v5081_v42  ;;  %4486 = vmatpush3.bf16.msra.mxu1 %v5096_v34 }
 0x587   :  { %4487 = vmatprep.subr.bf16.mxu1 %v5097_v37 }
 0x58a   :  { %4488 = vmatpush3.bf16.msra.mxu1 %v5098_v3 }
 0x58b   :  { %4489 = vmatprep.subr.bf16.mxu1 %v5099_v6 }
 0x58d   :  { %4851 = vmatmul.mubr.bf16.gmra.mxu1 %v5082_v59 }
 0x58e   :  { %4854 = vmatprep.mubr.bf16.mxu1 %v5083_v61  ;;  %4490 = vmatpush3.bf16.msra.mxu1 %v5100_v54 }
 0x58f   :  { %4491 = vmatprep.subr.bf16.mxu1 %v5101_v23 }
 0x592   :  { %4492 = vmatpush3.bf16.msra.mxu1 %v5102_v16 }
 0x593   :  { %4493 = vmatprep.subr.bf16.mxu1 %v5103_v50 }
 0x595   :  { %4855 = vmatmul.mubr.bf16.gmra.mxu1 %v5084_v24 }
 0x596   :  { %4858 = vmatprep.mubr.bf16.mxu1 %v5085_v8  ;;  %4494 = vmatpush3.bf16.msra.mxu1 %v5104_v31 }
 0x59d   :  { %4859 = vmatmul.mubr.bf16.gmra.mxu1 %v5086_v62 }
 0x5dc   :  { %v5995_v11 = vpop.f32.mrf.mxu1 }
 0x5de   :  { %v5997_v33 = vpop.f32.mrf.mxu1 }
 0x5e0   :  { %v5999_v15 = vpop.f32.mrf.mxu1 }
 0x5e2   :  { %v6001_v5 = vpop.f32.mrf.mxu1 }
 0x5ec   :  { %v6003_v28 = vpop.f32.mrf.mxu1 }
 0x5ee   :  { %v6005_v7 = vpop.f32.mrf.mxu1 }
 0x5f0   :  { %v6007_v55 = vpop.f32.mrf.mxu1 }
 0x5f1   :  { %v2454_v16 = vpack.c.bf16 %v6007_v55, %v6003_v28 }
 0x5f2   :  { %v6009_v19 = vpop.f32.mrf.mxu1 }
 0x5f3   :  { %v2452_v31 = vpack.c.bf16 %v6009_v19, %v6005_v7 }
 0x5fc   :  { %v6011_v43 = vpop.f32.mrf.mxu1 }
 0x5fe   :  { %v6013_v40 = vpop.f32.mrf.mxu1 }
 0x600   :  { %v6015_v60 = vpop.f32.mrf.mxu1 }
 0x602   :  { %v6017_v63 = vpop.f32.mrf.mxu1 }
 0x60c   :  { %v6019_v35 = vpop.f32.mrf.mxu1 }
 0x60e   :  { %v6021_v39 = vpop.f32.mrf.mxu1 }
 0x610   :  { %v6023_v47 = vpop.f32.mrf.mxu1 }
 0x611   :  { %v2462_v24 = vpack.c.bf16 %v6023_v47, %v6019_v35 }
 0x612   :  { %v6025_v18 = vpop.f32.mrf.mxu1 }
 0x645   :  { %v6027_v56 = vpop.f32.mrf.mxu1 }
 0x646   :  { %v2282_v34 = vadd.f32 %v6027_v56, %v4151_v27 }
 0x647   :  { %v6029_v32 = vpop.f32.mrf.mxu1 }
 0x648   :  { %v2274_v56 = vadd.f32 %v4151_v27, %v6029_v32  ;;  %v2456_v32 = vpack.c.bf16 %v6017_v63, %v6013_v40 }
 0x649   :  { %v6031_v45 = vpop.f32.mrf.mxu1 }
 0x64a   :  { %v2285_v8 = vadd.f32 %v6031_v45, %v4151_v27  ;;  %v2460_v45 = vpack.c.bf16 %v6025_v18, %v6021_v39 }
 0x64b   :  { %v6033_v1 = vpop.f32.mrf.mxu1 }
 0x64d   :  { %v4852_v38 = vpop.f32.mrf.mxu1 }
 0x64e   :  { %v2298_v12 = vadd.f32 %v4852_v38, %v4151_v27  ;;  %v2277_v38 = vadd.f32 %v4151_v27, %v6033_v1 }
 0x64f   :  { %v2289_v2 = vpop.f32.mrf.mxu1 }
 0x650   :  { %v2290_v42 = vadd.f32 %v4151_v27, %v2289_v2 }
 0x651   :  { %v4853_v29 = vpop.f32.mrf.mxu1 }
 0x652   :  { %v2301_v44 = vadd.f32 %v4853_v29, %v4151_v27  ;;  %v2458_v29 = vpack.c.bf16 %v6015_v60, %v6011_v43 }
 0x653   :  { %v2292_v10 = vpop.f32.mrf.mxu1 }
 0x654   :  { %v2293_v9 = vadd.f32 %v4151_v27, %v2292_v10 }
 0x655   :  { %v4856_v17 = vpop.f32.mrf.mxu1 }
 0x656   :  { %v2314_v22 = vadd.f32 %v4856_v17, %v4151_v27 }
 0x657   :  { %v2305_v30 = vpop.f32.mrf.mxu1 }
 0x658   :  { %v2306_v20 = vadd.f32 %v4151_v27, %v2305_v30 }
 0x659   :  { %v4857_v13 = vpop.f32.mrf.mxu1 }
 0x65a   :  { %v2317_v14 = vadd.f32 %v4857_v13, %v4151_v27 }
 0x65b   :  { %v2308_v58 = vpop.f32.mrf.mxu1 }
 0x65c   :  { %v2309_v52 = vadd.f32 %v4151_v27, %v2308_v58 }
 0x65d   :  { %v4860_v4 = vpop.f32.mrf.mxu1 }
 0x65e   :  { %v2330_v46 = vadd.f32 %v4860_v4, %v4151_v27 }
 0x65f   :  { %v2321_v49 = vpop.f32.mrf.mxu1 }
 0x660   :  { %v2322_v48 = vadd.f32 %v4151_v27, %v2321_v49  ;;  %5183 = vtanh.f32 %v2330_v46  ;;  %v2450_v49 = vpack.c.bf16 %v5999_v15, %v5995_v11 }
 0x661   :  { %v4861_v25 = vpop.f32.mrf.mxu1 }
 0x662   :  { %v2333_v21 = vadd.f32 %v4861_v25, %v4151_v27  ;;  %v2448_v25 = vpack.c.bf16 %v6001_v5, %v5997_v33 }
 0x663   :  { %v2324_v26 = vpop.f32.mrf.mxu1 }
 0x664   :  { %5185 = vtanh.f32 %v2333_v21  ;;  %v2325_v53 = vadd.f32 %v4151_v27, %v2324_v26  ;;  %v5087_v21 = vld [vmem:[%s6505_s2] sm:$0xff]   ;;  %v5088_v26 = vld [vmem:[%s6505_s2 + $0x8] sm:$0xff]  }
 0x665   :  { %5187 = vtanh.f32 %v2322_v48 }
 0x666   :  { %5189 = vtanh.f32 %v2325_v53  ;;  %v5090_v53 = vld [vmem:[%s6505_s2 + $0x18] sm:$0xff]  }
 0x667   :  { %5191 = vtanh.f32 %v2317_v14  ;;  %v5089_v14 = vld [vmem:[%s6505_s2 + $0x10] sm:$0xff]  }
 0x668   :  { %5193 = vtanh.f32 %v2314_v22  ;;  %v5091_v22 = vld [vmem:[%s6505_s2 + $0x20] sm:$0xff]  }
 0x669   :  { %5195 = vtanh.f32 %v2309_v52  ;;  %v5092_v52 = vld [vmem:[%s6505_s2 + $0x28] sm:$0xff]  }
 0x66a   :  { %5197 = vtanh.f32 %v2306_v20  ;;  %v5093_v20 = vld [vmem:[%s6505_s2 + $0x30] sm:$0xff]  }
 0x66b   :  { %5199 = vtanh.f32 %v2301_v44  ;;  %v5094_v44 = vld [vmem:[%s6505_s2 + $0x38] sm:$0xff]  }
 0x66c   :  { %5201 = vtanh.f32 %v2298_v12  ;;  %v5105_v12 = vld [vmem:[%s6508_s5 + $0x150] sm:$0xff]  }
 0x66d   :  { %v6068_v41 = vpop.eup %5183  ;;  %5203 = vtanh.f32 %v2293_v9  ;;  %v5106_v9 = vld [vmem:[%s6508_s5 + $0x110] sm:$0xff]   ;;  %4495 = vmatprep.subr.bf16.mxu1 %v5105_v12 }
 0x66e   :  { %5205 = vtanh.f32 %v2290_v42  ;;  %4496 = vmatpush3.bf16.msra.mxu1 %v5106_v9  ;;  %v5107_v42 = vld [vmem:[%s6508_s5 + $0x148] sm:$0xff]  }
 0x66f   :  { %5207 = vtanh.f32 %v2285_v8  ;;  %4497 = vmatprep.subr.bf16.mxu1 %v5107_v42  ;;  %v5110_v8 = vld [vmem:[%s6508_s5 + $0x100] sm:$0xff]   ;;  %v5113_v42 = vld [vmem:[#allocation9 + $0xa8] sm:$0xff]  }
 0x670   :  { %5209 = vtanh.f32 %v2282_v34  ;;  %v5111_v34 = vld [vmem:[#allocation9 + $0xb8] sm:$0xff]  }
 0x671   :  { %v6070_v51 = vpop.eup %5185  ;;  %5211 = vtanh.f32 %v2277_v38  ;;  %v5120_v38 = vld [vmem:[#allocation8 + $0xb0] sm:$0xff]  }
 0x672   :  { %v6072_v57 = vpop.eup %5187  ;;  %v6076_v59 = vpack.c.bf16 %v6070_v51, %v6068_v41  ;;  %5213 = vtanh.f32 %v2274_v56  ;;  %v5121_v56 = vld [vmem:[#allocation8 + $0xa8] sm:$0xff]  }
 0x673   :  { %v6078_v61 = vpop.eup %5189 }
 0x674   :  { %2512 = vmatprep.subr.bf16.mxu0 %v6076_v59  ;;  %v6086_v62 = vpack.c.bf16 %v6078_v61, %v6072_v57  ;;  %v6088_v36 = vpop.eup %5191 }
 0x675   :  { %2513 = vmatpush1.bf16.msra.mxu0 %v2462_v24  ;;  %v6092_v37 = vpop.eup %5193  ;;  %v5109_v24 = vld [vmem:[%s6508_s5 + $0x140] sm:$0xff]  }
 0x676   :  { %2514 = vmatprep.subr.bf16.mxu0 %v6086_v62  ;;  %v6099_v2 = vpack.c.bf16 %v6088_v36, %v6092_v37  ;;  %v6101_v3 = vpop.eup %5195 }
 0x677   :  { %v6105_v6 = vpop.eup %5197 }
 0x678   :  { %v6111_v1 = vpack.c.bf16 %v6101_v3, %v6105_v6  ;;  %v6113_v10 = vpop.eup %5199 }
 0x679   :  { %2515 = vmatpush1.bf16.msra.mxu0 %v2460_v45  ;;  %v6116_v54 = vpop.eup %5201  ;;  %v5119_v45 = vld [vmem:[#allocation8 + $0xb8] sm:$0xff]  }
 0x67a   :  { %2516 = vmatprep.subr.bf16.mxu0 %v6099_v2  ;;  %v6122_v23 = vpack.c.bf16 %v6113_v10, %v6116_v54  ;;  %v6124_v17 = vpop.eup %5203 }
 0x67b   :  { %v6127_v30 = vpop.eup %5205 }
 0x67c   :  { %v6133_v50 = vpack.c.bf16 %v6124_v17, %v6127_v30  ;;  %v6135_v13 = vpop.eup %5207 }
 0x67d   :  { %2517 = vmatpush1.bf16.msra.mxu0 %v2458_v29  ;;  %v6138_v58 = vpop.eup %5209 }
 0x67e   :  { %2518 = vmatprep.subr.bf16.mxu0 %v6111_v1  ;;  %v6144_v4 = vpack.c.bf16 %v6135_v13, %v6138_v58  ;;  %v5212_v27 = vpop.eup %5211 }
 0x67f   :  { %v5214_v46 = vpop.eup %5213 }
 0x680   :  { %v6149_v48 = vpack.c.bf16 %v5212_v27, %v5214_v46 }
 0x681   :  { %2519 = vmatpush1.bf16.msra.mxu0 %v2456_v32 }
 0x682   :  { %2520 = vmatprep.subr.bf16.mxu0 %v6122_v23 }
 0x685   :  { %2521 = vmatpush1.bf16.msra.mxu0 %v2454_v16 }
 0x686   :  { %2522 = vmatprep.subr.bf16.mxu0 %v6133_v50 }
 0x689   :  { %2523 = vmatpush1.bf16.msra.mxu0 %v2452_v31 }
 0x68a   :  { %2524 = vmatprep.subr.bf16.mxu0 %v6144_v4 }
 0x68d   :  { %2525 = vmatpush1.bf16.msra.mxu0 %v2450_v49 }
 0x68e   :  { %2526 = vmatprep.subr.bf16.mxu0 %v6149_v48 }
 0x691   :  { %2527 = vmatpush1.bf16.msra.mxu0 %v2448_v25 }
 0x692   :  { %4862 = vmatprep.subr.bf16.mxu0 %v5119_v45 }
 0x694   :  { %2545 = vmatmul.mubr.bf16.vlgmr.msra.gmra.mxu0 %v5087_v21 }
 0x695   :  { %2554 = vmatprep.mubr.bf16.mxu0 %v5398_v0  ;;  %4863 = vmatpush3.bf16.msra.mxu0 %v5119_v45  ;;  %v5114_v45 = vld [vmem:[#allocation9 + $0xa0] sm:$0xff]  }
 0x696   :  { %4864 = vmatprep.subr.bf16.mxu0 %v5120_v38 }
 0x699   :  { %4865 = vmatpush3.bf16.msra.mxu0 %v5120_v38 }
 0x69a   :  { %4866 = vmatprep.subr.bf16.mxu0 %v5121_v56 }
 0x69c   :  { %2555 = vmatmul.mubr.bf16.gmra.mxu0 %v5088_v26 }
 0x69d   :  { %2564 = vmatprep.mubr.bf16.mxu0 %v5398_v0  ;;  %4867 = vmatpush3.bf16.msra.mxu0 %v5121_v56 }
 0x6a4   :  { %2565 = vmatmul.mubr.bf16.gmra.mxu0 %v5089_v14 }
 0x6a5   :  { %2574 = vmatprep.mubr.bf16.mxu0 %v5398_v0 }
 0x6ac   :  { %2575 = vmatmul.mubr.bf16.gmra.mxu0 %v5090_v53 }
 0x6ad   :  { %2584 = vmatprep.mubr.bf16.mxu0 %v5398_v0 }
 0x6b4   :  { %2585 = vmatmul.mubr.bf16.gmra.mxu0 %v5091_v22 }
 0x6b5   :  { %2594 = vmatprep.mubr.bf16.mxu0 %v5398_v0 }
 0x6bc   :  { %2595 = vmatmul.mubr.bf16.gmra.mxu0 %v5092_v52 }
 0x6bd   :  { %2604 = vmatprep.mubr.bf16.mxu0 %v5398_v0 }
 0x6c4   :  { %2605 = vmatmul.mubr.bf16.gmra.mxu0 %v5093_v20  ;;  %v5112_v20 = vld [vmem:[#allocation9 + $0xb0] sm:$0xff]  }
 0x6c5   :  { %2614 = vmatprep.mubr.bf16.mxu0 %v5398_v0  ;;  %v5108_v0 = vld [vmem:[%s6508_s5 + $0x108] sm:$0xff]   ;;  %s5401_s5 = smov [#allocation12]  }
 0x6c6   :  { %4498 = vmatpush3.bf16.msra.mxu1 %v5108_v0  ;;  %s4013_s30 = sshll.u32 %s5401_s5, 4  ;;  %s4014_s30 = int_to_ptr.vmem [resolvable:$true] %s4013_s30 }
 0x6c7   :  { %4499 = vmatprep.subr.bf16.mxu1 %v5109_v24  ;;  %s5361_s15 = scalar_lea.vmem %s4014_s30, 2048  ;;  %p5366_p12 = scmp.lt.s32.totalorder %s4014_s30, %s4014_s30 }
 0x6c8   :  { %p5362_p11 = scmp.ne.s32.totalorder %s4014_s30, %s5361_s15  ;;  %p5367_p13 = scmp.lt.s32.totalorder %s5361_s15, %s5361_s15 }
 0x6ca   :  { %4500 = vmatpush3.bf16.msra.mxu1 %v5110_v8  ;;  %p5368_p0 = por %p5367_p13, %p5366_p12 }
 0x6cb   :  { %4894 = vmatprep.subr.bf16.mxu1 %v5111_v34 }
 0x6cc   :  { %2615 = vmatmul.mubr.bf16.gmra.mxu0 %v5094_v44  ;;  %p5369_p1 = pnand %p5368_p0, %p5362_p11 }
 0x754   :  { %v2546_v29 = vpop.f32.mrf.mxu0 }
 0x755   :  { %v2625_v26 = vadd.f32 %v2546_v29, %v5997_v33 }
 0x756   :  { %v2548_v32 = vpop.f32.mrf.mxu0 }
 0x757   :  { %v2626_v25 = vadd.f32 %v5214_v46, %v2548_v32 }
 0x758   :  { %v2550_v16 = vpop.f32.mrf.mxu0 }
 0x759   :  { %v2627_v31 = vadd.f32 %v2550_v16, %v6001_v5 }
 0x75a   :  { %v2552_v49 = vpop.f32.mrf.mxu0 }
 0x75b   :  { %v2628_v21 = vadd.f32 %v5212_v27, %v2552_v49  ;;  %v2657_v22 = vpack.c.bf16 %v2627_v31, %v2625_v26  ;;  %v5116_v49 = vld [vmem:[#allocation9 + $0x90] sm:$0xff]  }
 0x75c   :  { %v2556_v14 = vpop.f32.mrf.mxu0 }
 0x75d   :  { %v2658_v53 = vpack.c.bf16 %v2628_v21, %v2626_v25  ;;  %v2629_v33 = vadd.f32 %v5995_v11, %v2556_v14 }
 0x75e   :  { %v2558_v52 = vpop.f32.mrf.mxu0 }
 0x75f   :  { %2834 = vmatprep.mubr.bf16.mxu1 %v2658_v53  ;;  %v2630_v5 = vadd.f32 %v6138_v58, %v2558_v52  ;;  %v5115_v58 = vld [vmem:[#allocation9 + $0x98] sm:$0xff]  }
 0x760   :  { %v2560_v44 = vpop.f32.mrf.mxu0  ;;  %2835 = vmatmul.mubr.bf16.vlgmr.msra.gmra.mxu1 %v2657_v22 }
 0x761   :  { %4895 = vmatpush3.bf16.msra.mxu1 %v5111_v34  ;;  %v2631_v12 = vadd.f32 %v5999_v15, %v2560_v44 }
 0x762   :  { %v2562_v9 = vpop.f32.mrf.mxu0  ;;  %4896 = vmatprep.subr.bf16.mxu1 %v5112_v20 }
 0x763   :  { %v2632_v27 = vadd.f32 %v6135_v13, %v2562_v9  ;;  %v2659_v24 = vpack.c.bf16 %v2631_v12, %v2629_v33 }
 0x764   :  { %v2566_v46 = vpop.f32.mrf.mxu0 }
 0x765   :  { %v2660_v0 = vpack.c.bf16 %v2632_v27, %v2630_v5  ;;  %4897 = vmatpush3.bf16.msra.mxu1 %v5112_v20  ;;  %v2633_v56 = vadd.f32 %v2566_v46, %v6005_v7  ;;  %v5118_v20 = vld [vmem:[#allocation9 + $0x80] sm:$0xff]  }
 0x766   :  { %v2568_v8 = vpop.f32.mrf.mxu0  ;;  %4898 = vmatprep.subr.bf16.mxu1 %v5113_v42 }
 0x767   :  { %2842 = vmatprep.mubr.bf16.mxu1 %v2660_v0  ;;  %v2634_v13 = vadd.f32 %v6127_v30, %v2568_v8  ;;  %v5117_v30 = vld [vmem:[#allocation9 + $0x88] sm:$0xff]  }
 0x768   :  { %v2570_v34 = vpop.f32.mrf.mxu0  ;;  %2843 = vmatmul.mubr.bf16.gmra.mxu1 %v2659_v24 }
 0x769   :  { %4899 = vmatpush3.bf16.msra.mxu1 %v5113_v42  ;;  %v2635_v15 = vadd.f32 %v2570_v34, %v6009_v19 }
 0x76a   :  { %v2572_v38 = vpop.f32.mrf.mxu0  ;;  %4900 = vmatprep.subr.bf16.mxu1 %v5114_v45 }
 0x76b   :  { %v2636_v11 = vadd.f32 %v6124_v17, %v2572_v38  ;;  %v2661_v16 = vpack.c.bf16 %v2635_v15, %v2633_v56 }
 0x76c   :  { %v2576_v29 = vpop.f32.mrf.mxu0 }
 0x76d   :  { %v2662_v32 = vpack.c.bf16 %v2636_v11, %v2634_v13  ;;  %4901 = vmatpush3.bf16.msra.mxu1 %v5114_v45  ;;  %v2637_v26 = vadd.f32 %v6003_v28, %v2576_v29 }
 0x76e   :  { %v2578_v31 = vpop.f32.mrf.mxu0  ;;  %4902 = vmatprep.subr.bf16.mxu1 %v5115_v58 }
 0x76f   :  { %2850 = vmatprep.mubr.bf16.mxu1 %v2662_v32  ;;  %v2638_v17 = vadd.f32 %v6116_v54, %v2578_v31 }
 0x770   :  { %v2580_v25 = vpop.f32.mrf.mxu0  ;;  %2851 = vmatmul.mubr.bf16.gmra.mxu1 %v2661_v16 }
 0x771   :  { %4903 = vmatpush3.bf16.msra.mxu1 %v5115_v58  ;;  %v2639_v19 = vadd.f32 %v6007_v55, %v2580_v25 }
 0x772   :  { %v2582_v21 = vpop.f32.mrf.mxu0  ;;  %4904 = vmatprep.subr.bf16.mxu1 %v5116_v49 }
 0x773   :  { %v2640_v7 = vadd.f32 %v6113_v10, %v2582_v21  ;;  %v2663_v22 = vpack.c.bf16 %v2639_v19, %v2637_v26 }
 0x774   :  { %v2586_v14 = vpop.f32.mrf.mxu0 }
 0x775   :  { %v2664_v53 = vpack.c.bf16 %v2640_v7, %v2638_v17  ;;  %4905 = vmatpush3.bf16.msra.mxu1 %v5116_v49  ;;  %v2641_v28 = vadd.f32 %v2586_v14, %v6013_v40 }
 0x776   :  { %v2588_v52 = vpop.f32.mrf.mxu0  ;;  %4906 = vmatprep.subr.bf16.mxu1 %v5117_v30 }
 0x777   :  { %2858 = vmatprep.mubr.bf16.mxu1 %v2664_v53  ;;  %v2642_v54 = vadd.f32 %v6105_v6, %v2588_v52 }
 0x778   :  { %v2590_v44 = vpop.f32.mrf.mxu0  ;;  %2859 = vmatmul.mubr.bf16.gmra.mxu1 %v2663_v22 }
 0x779   :  { %4907 = vmatpush3.bf16.msra.mxu1 %v5117_v30  ;;  %v2643_v55 = vadd.f32 %v2590_v44, %v6017_v63 }
 0x77a   :  { %v2592_v12 = vpop.f32.mrf.mxu0  ;;  %4908 = vmatprep.subr.bf16.mxu1 %v5118_v20 }
 0x77b   :  { %v2644_v10 = vadd.f32 %v6101_v3, %v2592_v12  ;;  %v2665_v5 = vpack.c.bf16 %v2643_v55, %v2641_v28 }
 0x77c   :  { %v2596_v9 = vpop.f32.mrf.mxu0 }
 0x77d   :  { %v2666_v42 = vpack.c.bf16 %v2644_v10, %v2642_v54  ;;  %4909 = vmatpush3.bf16.msra.mxu1 %v5118_v20  ;;  %v2645_v6 = vadd.f32 %v6011_v43, %v2596_v9 }
 0x77e   :  { %v2598_v27 = vpop.f32.mrf.mxu0 }
 0x77f   :  { %2866 = vmatprep.mubr.bf16.mxu1 %v2666_v42  ;;  %v2646_v63 = vadd.f32 %v6092_v37, %v2598_v27 }
 0x780   :  { %v2600_v33 = vpop.f32.mrf.mxu0  ;;  %2867 = vmatmul.mubr.bf16.gmra.mxu1 %v2665_v5 }
 0x781   :  { %v2647_v46 = vadd.f32 %v6015_v60, %v2600_v33 }
 0x782   :  { %v2602_v0 = vpop.f32.mrf.mxu0 }
 0x783   :  { %v2648_v24 = vadd.f32 %v6088_v36, %v2602_v0  ;;  %v2667_v40 = vpack.c.bf16 %v2647_v46, %v2645_v6 }
 0x784   :  { %v2606_v3 = vpop.f32.mrf.mxu0 }
 0x785   :  { %v2668_v8 = vpack.c.bf16 %v2648_v24, %v2646_v63  ;;  %v2649_v37 = vadd.f32 %v2606_v3, %v6021_v39  ;;  %v5122_v39 = vld [vmem:[#allocation8 + $0xa0] sm:$0xff]  }
 0x786   :  { %v2608_v45 = vpop.f32.mrf.mxu0  ;;  %4868 = vmatprep.subr.bf16.mxu0 %v5122_v39 }
 0x787   :  { %2874 = vmatprep.mubr.bf16.mxu1 %v2668_v8  ;;  %v2650_v58 = vadd.f32 %v6072_v57, %v2608_v45  ;;  %4869 = vmatpush3.bf16.msra.mxu0 %v5122_v39 }
 0x788   :  { %v2610_v34 = vpop.f32.mrf.mxu0  ;;  %2875 = vmatmul.mubr.bf16.gmra.mxu1 %v2667_v40 }
 0x789   :  { %v2651_v15 = vadd.f32 %v2610_v34, %v6025_v18 }
 0x78a   :  { %v2612_v38 = vpop.f32.mrf.mxu0 }
 0x78b   :  { %v2652_v60 = vadd.f32 %v6078_v61, %v2612_v38  ;;  %v2669_v11 = vpack.c.bf16 %v2651_v15, %v2649_v37 }
 0x78c   :  { %v2616_v13 = vpop.f32.mrf.mxu0 }
 0x78d   :  { %v2670_v36 = vpack.c.bf16 %v2652_v60, %v2650_v58  ;;  %v2653_v57 = vadd.f32 %v6019_v35, %v2616_v13  ;;  %v5125_v35 = vld [vmem:[#allocation8 + $0x88] sm:$0xff]  }
 0x78e   :  { %v2618_v43 = vpop.f32.mrf.mxu0 }
 0x78f   :  { %2882 = vmatprep.mubr.bf16.mxu1 %v2670_v36  ;;  %v2654_v16 = vadd.f32 %v6068_v41, %v2618_v43  ;;  %v5124_v41 = vld [vmem:[#allocation8 + $0x90] sm:$0xff]  }
 0x790   :  { %v2620_v56 = vpop.f32.mrf.mxu0  ;;  %2883 = vmatmul.mubr.bf16.gmra.mxu1 %v2669_v11 }
 0x791   :  { %v2655_v29 = vadd.f32 %v6023_v47, %v2620_v56  ;;  %v5123_v47 = vld [vmem:[#allocation8 + $0x98] sm:$0xff]  }
 0x792   :  { %v2622_v32 = vpop.f32.mrf.mxu0  ;;  %4870 = vmatprep.subr.bf16.mxu0 %v5123_v47 }
 0x793   :  { %v2656_v18 = vadd.f32 %v6070_v51, %v2622_v32  ;;  %v2671_v61 = vpack.c.bf16 %v2655_v29, %v2653_v57  ;;  %4871 = vmatpush3.bf16.msra.mxu0 %v5123_v47  ;;  %v5126_v51 = vld [vmem:[#allocation8 + $0x80] sm:$0xff]  }
 0x794   :  { %4872 = vmatprep.subr.bf16.mxu0 %v5124_v41 }
 0x795   :  { %v2672_v31 = vpack.c.bf16 %v2656_v18, %v2654_v16 }
 0x797   :  { %2890 = vmatprep.mubr.bf16.mxu1 %v2672_v31  ;;  %4873 = vmatpush3.bf16.msra.mxu0 %v5124_v41 }
 0x798   :  { %2891 = vmatmul.mubr.bf16.gmra.mxu1 %v2671_v61  ;;  %4874 = vmatprep.subr.bf16.mxu0 %v5125_v35 }
 0x799   :  { %4910 = vmatprep.mubr.bf16.mxu1 %v6149_v48 }
 0x79b   :  { %4875 = vmatpush3.bf16.msra.mxu0 %v5125_v35 }
 0x79c   :  { %4876 = vmatprep.subr.bf16.mxu0 %v5126_v51 }
 0x79f   :  { %4877 = vmatpush3.bf16.msra.mxu0 %v5126_v51 }
 0x7a0   :  { %4911 = vmatmul.mubr.bf16.vlgmr.msra.gmra.mxu1 %v6144_v4 }
 0x7a1   :  { %4914 = vmatprep.mubr.bf16.mxu1 %v6133_v50 }
 0x7a8   :  { %4915 = vmatmul.mubr.bf16.gmra.mxu1 %v6122_v23 }
 0x7a9   :  { %4918 = vmatprep.mubr.bf16.mxu1 %v6111_v1 }
 0x7b0   :  { %4919 = vmatmul.mubr.bf16.gmra.mxu1 %v6099_v2 }
 0x7b1   :  { %4922 = vmatprep.mubr.bf16.mxu1 %v6086_v62 }
 0x7b8   :  { %4923 = vmatmul.mubr.bf16.gmra.mxu1 %v6076_v59 }
 0x820   :  { %v4501_v50 = vpop.f32.mrf.mxu1 }
 0x822   :  { %v4502_v4 = vpop.f32.mrf.mxu1 }
 0x823   :  { %v4503_v23 = vadd.f32 %v4502_v4, %v4501_v50 }
 0x824   :  { %v4504_v48 = vpop.f32.mrf.mxu1 }
 0x825   :  { %v2915_v1 = vmul.f32 0.01, %v4503_v23  ;;  %vm2899_vm0 = vcmp.ge.f32.partialorder %v4503_v23, 0.0 }
 0x826   :  { %v4505_v49 = vpop.f32.mrf.mxu1 }
 0x827   :  { %v4506_v25 = vadd.f32 %v4505_v49, %v4504_v48  ;;  %v2931_v17 = vsel %vm2899_vm0, %v4503_v23, %v2915_v1  ;;  %vm5400_vm0 = vmmov 0  }
 0x828   :  { %v4507_v19 = vpop.f32.mrf.mxu1 }
 0x829   :  { %vm2900_vm1 = vcmp.ge.f32.partialorder %v4506_v25, 0.0  ;;  %v2916_v21 = vmul.f32 0.01, %v4506_v25 }
 0x82a   :  { %v4508_v30 = vpop.f32.mrf.mxu1 }
 0x82b   :  { %v4509_v2 = vadd.f32 %v4508_v30, %v4507_v19  ;;  %v2932_v7 = vsel %vm2900_vm1, %v4506_v25, %v2916_v21 }
 0x82c   :  { %v4510_v62 = vpop.f32.mrf.mxu1  ;;  %v2947_v26 = vpack.c.bf16 %v2932_v7, %v2931_v17 }
 0x82d   :  { %v2917_v59 = vmul.f32 0.01, %v4509_v2  ;;  %vm2901_vm2 = vcmp.ge.f32.partialorder %v4509_v2, 0.0 }
 0x82e   :  { %v4511_v14 = vpop.f32.mrf.mxu1  ;;  %4878 = vmatprep.mubr.bf16.mxu0 %v2947_v26 }
 0x82f   :  { %v4512_v53 = vadd.f32 %v4511_v14, %v4510_v62  ;;  %v2933_v44 = vsel %vm2901_vm2, %v4509_v2, %v2917_v59 }
 0x830   :  { %v4513_v22 = vpop.f32.mrf.mxu1 }
 0x831   :  { %vm2902_vm3 = vcmp.ge.f32.partialorder %v4512_v53, 0.0  ;;  %v2918_v52 = vmul.f32 0.01, %v4512_v53 }
 0x832   :  { %v4514_v20 = vpop.f32.mrf.mxu1 }
 0x833   :  { %v2934_v55 = vsel %vm2902_vm3, %v4512_v53, %v2918_v52  ;;  %v4515_v12 = vadd.f32 %v4514_v20, %v4513_v22 }
 0x834   :  { %v2948_v54 = vpack.c.bf16 %v2934_v55, %v2933_v44  ;;  %v4516_v10 = vpop.f32.mrf.mxu1 }
 0x835   :  { %v2919_v9 = vmul.f32 0.01, %v4515_v12  ;;  %vm2903_vm4 = vcmp.ge.f32.partialorder %v4515_v12, 0.0 }
 0x836   :  { %v4517_v28 = vpop.f32.mrf.mxu1  ;;  %4879 = vmatmul.mubr.bf16.vlgmr.msra.gmra.mxu0 %v2948_v54 }
 0x837   :  { %v4518_v42 = vadd.f32 %v4517_v28, %v4516_v10  ;;  %v2935_v0 = vsel %vm2903_vm4, %v4515_v12, %v2919_v9  ;;  %v5127_v10 = vld [vmem:[%s6506_s3] sm:$0xff]  }
 0x838   :  { %v4519_v5 = vpop.f32.mrf.mxu1 }
 0x839   :  { %vm2904_vm5 = vcmp.ge.f32.partialorder %v4518_v42, 0.0  ;;  %v2920_v27 = vmul.f32 0.01, %v4518_v42 }
 0x83a   :  { %v4520_v33 = vpop.f32.mrf.mxu1 }
 0x83b   :  { %v4521_v46 = vadd.f32 %v4520_v33, %v4519_v5  ;;  %v2936_v63 = vsel %vm2904_vm5, %v4518_v42, %v2920_v27 }
 0x83c   :  { %v4522_v24 = vpop.f32.mrf.mxu1  ;;  %v2949_v6 = vpack.c.bf16 %v2936_v63, %v2935_v0 }
 0x83d   :  { %v2921_v8 = vmul.f32 0.01, %v4521_v46  ;;  %vm2905_vm6 = vcmp.ge.f32.partialorder %v4521_v46, 0.0 }
 0x83e   :  { %v4523_v3 = vpop.f32.mrf.mxu1  ;;  %4882 = vmatprep.mubr.bf16.mxu0 %v2949_v6 }
 0x83f   :  { %v4524_v40 = vadd.f32 %v4523_v3, %v4522_v24  ;;  %v2937_v38 = vsel %vm2905_vm6, %v4521_v46, %v2921_v8 }
 0x840   :  { %v4525_v45 = vpop.f32.mrf.mxu1 }
 0x841   :  { %vm2906_vm7 = vcmp.ge.f32.partialorder %v4524_v40, 0.0  ;;  %v2922_v34 = vmul.f32 0.01, %v4524_v40 }
 0x842   :  { %v4526_v15 = vpop.f32.mrf.mxu1 }
 0x843   :  { %v2938_v58 = vsel %vm2906_vm7, %v4524_v40, %v2922_v34  ;;  %v4527_v60 = vadd.f32 %v4526_v15, %v4525_v45 }
 0x844   :  { %v2950_v37 = vpack.c.bf16 %v2938_v58, %v2937_v38  ;;  %v4528_v13 = vpop.f32.mrf.mxu1 }
 0x845   :  { %v2923_v11 = vmul.f32 0.01, %v4527_v60  ;;  %vm2907_vm8 = vcmp.ge.f32.partialorder %v4527_v60, 0.0 }
 0x846   :  { %v4529_v36 = vpop.f32.mrf.mxu1  ;;  %4883 = vmatmul.mubr.bf16.gmra.mxu0 %v2950_v37 }
 0x847   :  { %v4530_v43 = vadd.f32 %v4529_v36, %v4528_v13  ;;  %v2939_v18 = vsel %vm2907_vm8, %v4527_v60, %v2923_v11  ;;  %v5128_v11 = vld [vmem:[%s6506_s3 + $0x8] sm:$0xff]  }
 0x848   :  { %v4531_v56 = vpop.f32.mrf.mxu1 }
 0x849   :  { %vm2908_vm9 = vcmp.ge.f32.partialorder %v4530_v43, 0.0  ;;  %v2924_v29 = vmul.f32 0.01, %v4530_v43 }
 0x84a   :  { %v4532_v32 = vpop.f32.mrf.mxu1 }
 0x84b   :  { %v4533_v16 = vadd.f32 %v4532_v32, %v4531_v56  ;;  %v2940_v57 = vsel %vm2908_vm9, %v4530_v43, %v2924_v29  ;;  %v5129_v43 = vld [vmem:[%s6506_s3 + $0x10] sm:$0xff]   ;;  %v5130_v56 = vld [vmem:[%s6506_s3 + $0x18] sm:$0xff]   ;;  %v5131_v29 = vld [vmem:[%s6506_s3 + $0x20] sm:$0xff]  }
 0x84c   :  { %v4534_v31 = vpop.f32.mrf.mxu1  ;;  %v2951_v61 = vpack.c.bf16 %v2940_v57, %v2939_v18  ;;  %v5132_v32 = vld [vmem:[%s6506_s3 + $0x28] sm:$0xff]   ;;  %v5134_v18 = vld [vmem:[%s6506_s3 + $0x38] sm:$0xff]  }
 0x84d   :  { %v2925_v47 = vmul.f32 0.01, %v4533_v16  ;;  %vm2909_vm10 = vcmp.ge.f32.partialorder %v4533_v16, 0.0  ;;  %v5135_v57 = vld [vmem:[#allocation11 + $0x78] sm:$0xff]  }
 0x84e   :  { %v4535_v39 = vpop.f32.mrf.mxu1  ;;  %4886 = vmatprep.mubr.bf16.mxu0 %v2951_v61  ;;  %4597 = vmatprep.subr.bf16.mxu1 %v5135_v57  ;;  %v5137_v61 = vld [vmem:[#allocation11 + $0x70] sm:$0xff]  }
 0x84f   :  { %v4536_v41 = vadd.f32 %v4535_v39, %v4534_v31  ;;  %v2941_v4 = vsel %vm2909_vm10, %v4533_v16, %v2925_v47  ;;  %v5133_v16 = vld [vmem:[%s6506_s3 + $0x30] sm:$0xff]   ;;  %v5136_v31 = vld [vmem:[#allocation11 + $0x38] sm:$0xff]   ;;  %v5139_v47 = vld [vmem:[#allocation11 + $0x68] sm:$0xff]  }
 0x850   :  { %v4537_v35 = vpop.f32.mrf.mxu1  ;;  %4598 = vmatpush3.bf16.msra.mxu1 %v5136_v31  ;;  %v5138_v39 = vld [vmem:[#allocation11 + $0x30] sm:$0xff]  }
 0x851   :  { %vm2910_vm11 = vcmp.ge.f32.partialorder %v4536_v41, 0.0  ;;  %v2926_v51 = vmul.f32 0.01, %v4536_v41  ;;  %4599 = vmatprep.subr.bf16.mxu1 %v5137_v61 }
 0x852   :  { %v4538_v50 = vpop.f32.mrf.mxu1 }
 0x853   :  { %v2942_v23 = vsel %vm2910_vm11, %v4536_v41, %v2926_v51  ;;  %v4539_v48 = vadd.f32 %v4538_v50, %v4537_v35  ;;  %v5140_v41 = vld [vmem:[#allocation11 + $0x28] sm:$0xff]   ;;  %v5141_v51 = vld [vmem:[#allocation11 + $0x60] sm:$0xff]  }
 0x854   :  { %v2952_v49 = vpack.c.bf16 %v2942_v23, %v2941_v4  ;;  %v4540_v1 = vpop.f32.mrf.mxu1  ;;  %4600 = vmatpush3.bf16.msra.mxu1 %v5138_v39  ;;  %v5142_v50 = vld [vmem:[#allocation11 + $0x20] sm:$0xff]   ;;  %v5143_v23 = vld [vmem:[#allocation11 + $0x58] sm:$0xff]  }
 0x855   :  { %v2927_v19 = vmul.f32 0.01, %v4539_v48  ;;  %vm2911_vm12 = vcmp.ge.f32.partialorder %v4539_v48, 0.0  ;;  %4601 = vmatprep.subr.bf16.mxu1 %v5139_v47 }
 0x856   :  { %v4541_v25 = vpop.f32.mrf.mxu1  ;;  %4887 = vmatmul.mubr.bf16.gmra.mxu0 %v2952_v49 }
 0x857   :  { %v4542_v21 = vadd.f32 %v4541_v25, %v4540_v1  ;;  %v2943_v62 = vsel %vm2911_vm12, %v4539_v48, %v2927_v19  ;;  %v5144_v48 = vld [vmem:[#allocation11 + $0x18] sm:$0xff]   ;;  %v5145_v1 = vld [vmem:[#allocation11 + $0x50] sm:$0xff]  }
 0x858   :  { %v4543_v30 = vpop.f32.mrf.mxu1  ;;  %4602 = vmatpush3.bf16.msra.mxu1 %v5140_v41  ;;  %v5146_v25 = vld [vmem:[#allocation11 + $0x10] sm:$0xff]  }
 0x859   :  { %vm2912_vm13 = vcmp.ge.f32.partialorder %v4542_v21, 0.0  ;;  %v2928_v2 = vmul.f32 0.01, %v4542_v21  ;;  %4603 = vmatprep.subr.bf16.mxu1 %v5141_v51 }
 0x85a   :  { %v4544_v17 = vpop.f32.mrf.mxu1 }
 0x85b   :  { %v4545_v7 = vadd.f32 %v4544_v17, %v4543_v30  ;;  %v2944_v26 = vsel %vm2912_vm13, %v4542_v21, %v2928_v2  ;;  %v5147_v21 = vld [vmem:[#allocation11 + $0x48] sm:$0xff]   ;;  %v5149_v17 = vld [vmem:[#allocation11 + $0x40] sm:$0xff]  }
 0x85c   :  { %v4546_v14 = vpop.f32.mrf.mxu1  ;;  %v2953_v59 = vpack.c.bf16 %v2944_v26, %v2943_v62  ;;  %4604 = vmatpush3.bf16.msra.mxu1 %v5142_v50  ;;  %v5148_v30 = vld [vmem:[#allocation11 + $0x8] sm:$0xff]   ;;  %v5150_v62 = vld [vmem:[#allocation11] sm:$0xff]  }
 0x85d   :  { %v2929_v22 = vmul.f32 0.01, %v4545_v7  ;;  %vm2913_vm14 = vcmp.ge.f32.partialorder %v4545_v7, 0.0  ;;  %4605 = vmatprep.subr.bf16.mxu1 %v5143_v23 }
 0x85e   :  { %v4547_v53 = vpop.f32.mrf.mxu1  ;;  %4890 = vmatprep.mubr.bf16.mxu0 %v2953_v59 }
 0x85f   :  { %v4548_v52 = vadd.f32 %v4547_v53, %v4546_v14  ;;  %v2945_v12 = vsel %vm2913_vm14, %v4545_v7, %v2929_v22 }
 0x860   :  { %v4912_v20 = vpop.f32.mrf.mxu1  ;;  %4606 = vmatpush3.bf16.msra.mxu1 %v5144_v48 }
 0x861   :  { %vm2914_vm15 = vcmp.ge.f32.partialorder %v4548_v52, 0.0  ;;  %v2930_v44 = vmul.f32 0.01, %v4548_v52  ;;  %4607 = vmatprep.subr.bf16.mxu1 %v5145_v1 }
 0x862   :  { %v3216_v55 = vpop.f32.mrf.mxu1 }
 0x863   :  { %v2946_v54 = vsel %vm2914_vm15, %v4548_v52, %v2930_v44 }
 0x864   :  { %v2954_v28 = vpack.c.bf16 %v2946_v54, %v2945_v12  ;;  %v4913_v9 = vpop.f32.mrf.mxu1  ;;  %4608 = vmatpush3.bf16.msra.mxu1 %v5146_v25 }
 0x865   :  { %v3280_v13 = vpack.c.bf16 %v4913_v9, %v4912_v20  ;;  %4609 = vmatprep.subr.bf16.mxu1 %v5147_v21 }
 0x866   :  { %4891 = vmatmul.mubr.bf16.gmra.mxu0 %v2954_v28  ;;  %v3219_v42 = vpop.f32.mrf.mxu1 }
 0x867   :  { %4942 = vmatprep.mubr.bf16.mxu0 %v5127_v10  ;;  %v3279_v36 = vpack.c.bf16 %v3219_v42, %v3216_v55 }
 0x868   :  { %v4916_v5 = vpop.f32.mrf.mxu1  ;;  %4610 = vmatpush3.bf16.msra.mxu1 %v5148_v30 }
 0x869   :  { %4611 = vmatprep.subr.bf16.mxu1 %v5149_v17 }
 0x86a   :  { %v3232_v27 = vpop.f32.mrf.mxu1 }
 0x86c   :  { %v4917_v33 = vpop.f32.mrf.mxu1  ;;  %4612 = vmatpush3.bf16.msra.mxu1 %v5150_v62 }
 0x86d   :  { %v3282_v60 = vpack.c.bf16 %v4917_v33, %v4916_v5 }
 0x86e   :  { %v3235_v46 = vpop.f32.mrf.mxu1 }
 0x86f   :  { %v3281_v37 = vpack.c.bf16 %v3235_v46, %v3232_v27 }
 0x870   :  { %v4920_v0 = vpop.f32.mrf.mxu1 }
 0x872   :  { %v3248_v63 = vpop.f32.mrf.mxu1 }
 0x874   :  { %v4921_v24 = vpop.f32.mrf.mxu1 }
 0x875   :  { %v3284_v38 = vpack.c.bf16 %v4921_v24, %v4920_v0 }
 0x876   :  { %v3251_v6 = vpop.f32.mrf.mxu1 }
 0x877   :  { %v3283_v58 = vpack.c.bf16 %v3251_v6, %v3248_v63 }
 0x878   :  { %v4924_v3 = vpop.f32.mrf.mxu1 }
 0x87a   :  { %v3264_v8 = vpop.f32.mrf.mxu1 }
 0x87c   :  { %v4925_v40 = vpop.f32.mrf.mxu1 }
 0x87d   :  { %v3286_v45 = vpack.c.bf16 %v4925_v40, %v4924_v3 }
 0x87e   :  { %v3267_v34 = vpop.f32.mrf.mxu1 }
 0x87f   :  { %v3285_v15 = vpack.c.bf16 %v3267_v34, %v3264_v8  ;;  %4926 = vmatprep.subr.bf16.mxu0 %v3286_v45 }
 0x880   :  { %4927 = vmatpush3.bf16.msra.mxu0 %v3286_v45 }
 0x881   :  { %4928 = vmatprep.subr.bf16.mxu0 %v3285_v15 }
 0x884   :  { %4929 = vmatpush3.bf16.msra.mxu0 %v3285_v15 }
 0x885   :  { %4930 = vmatprep.subr.bf16.mxu0 %v3284_v38 }
 0x888   :  { %4931 = vmatpush3.bf16.msra.mxu0 %v3284_v38 }
 0x889   :  { %4932 = vmatprep.subr.bf16.mxu0 %v3283_v58 }
 0x88c   :  { %4933 = vmatpush3.bf16.msra.mxu0 %v3283_v58 }
 0x88d   :  { %4934 = vmatprep.subr.bf16.mxu0 %v3282_v60 }
 0x890   :  { %4935 = vmatpush3.bf16.msra.mxu0 %v3282_v60 }
 0x891   :  { %4936 = vmatprep.subr.bf16.mxu0 %v3281_v37 }
 0x894   :  { %4937 = vmatpush3.bf16.msra.mxu0 %v3281_v37 }
 0x895   :  { %4938 = vmatprep.subr.bf16.mxu0 %v3280_v13 }
 0x898   :  { %4939 = vmatpush3.bf16.msra.mxu0 %v3280_v13 }
 0x899   :  { %4940 = vmatprep.subr.bf16.mxu0 %v3279_v36 }
 0x89c   :  { %4941 = vmatpush3.bf16.msra.mxu0 %v3279_v36 }
 0x89f   :  { %4943 = vmatmul.mubr.bf16.vlgmr.msra.gmra.mxu0 %v5128_v11 }
 0x8a0   :  { %4946 = vmatprep.mubr.bf16.mxu0 %v5129_v43 }
 0x8a7   :  { %4947 = vmatmul.mubr.bf16.gmra.mxu0 %v5130_v56 }
 0x8a8   :  { %4950 = vmatprep.mubr.bf16.mxu0 %v5131_v29 }
 0x8af   :  { %4951 = vmatmul.mubr.bf16.gmra.mxu0 %v5132_v32 }
 0x8b0   :  { %4954 = vmatprep.mubr.bf16.mxu0 %v5133_v16 }
 0x8b7   :  { %4955 = vmatmul.mubr.bf16.gmra.mxu0 %v5134_v18 }
 0x8f6   :  { %v4880_v35 = vpop.f32.mrf.mxu0 }
 0x8f8   :  { %v3054_v4 = vpop.f32.mrf.mxu0 }
 0x8fa   :  { %v4881_v49 = vpop.f32.mrf.mxu0 }
 0x8fc   :  { %v3057_v19 = vpop.f32.mrf.mxu0 }
 0x8fd   :  { %v3504_v7 = vadd.f32 %v3057_v19, %v3054_v4 }
 0x8ff   :  { %v3505_v14 = vadd.f32 %v4880_v35, %v3504_v7 }
 0x901   :  { %v3506_v53 = vadd.f32 %v4881_v49, %v3505_v14 }
 0x906   :  { %v4884_v2 = vpop.f32.mrf.mxu0 }
 0x908   :  { %v3070_v26 = vpop.f32.mrf.mxu0 }
 0x909   :  { %v3507_v52 = vadd.f32 %v3506_v53, %v3070_v26 }
 0x90a   :  { %v4885_v59 = vpop.f32.mrf.mxu0 }
 0x90c   :  { %v3073_v22 = vpop.f32.mrf.mxu0 }
 0x90d   :  { %v3508_v20 = vadd.f32 %v3507_v52, %v3073_v22 }
 0x90f   :  { %v3509_v12 = vadd.f32 %v4884_v2, %v3508_v20 }
 0x911   :  { %v3510_v10 = vadd.f32 %v4885_v59, %v3509_v12 }
 0x916   :  { %v4888_v44 = vpop.f32.mrf.mxu0 }
 0x918   :  { %v3086_v55 = vpop.f32.mrf.mxu0 }
 0x919   :  { %v3511_v9 = vadd.f32 %v3510_v10, %v3086_v55  ;;  %v6324_v10 = vld [vmem:[%s6511_s8 + $0x2] ss:$0 sm:$0xff] }
 0x91a   :  { %v4889_v54 = vpop.f32.mrf.mxu0 }
 0x91c   :  { %v3089_v28 = vpop.f32.mrf.mxu0 }
 0x91d   :  { %v3512_v42 = vadd.f32 %v3511_v9, %v3089_v28 }
 0x91f   :  { %v3513_v5 = vadd.f32 %v4888_v44, %v3512_v42 }
 0x921   :  { %v3514_v46 = vadd.f32 %v4889_v54, %v3513_v5 }
 0x926   :  { %v4892_v27 = vpop.f32.mrf.mxu0 }
 0x928   :  { %v3102_v33 = vpop.f32.mrf.mxu0 }
 0x929   :  { %v3515_v63 = vadd.f32 %v3514_v46, %v3102_v33 }
 0x92a   :  { %v4893_v0 = vpop.f32.mrf.mxu0 }
 0x92c   :  { %v3105_v24 = vpop.f32.mrf.mxu0 }
 0x92d   :  { %v3516_v6 = vadd.f32 %v3515_v63, %v3105_v24 }
 0x92f   :  { %v3517_v3 = vadd.f32 %v4892_v27, %v3516_v6 }
 0x931   :  { %v3518_v8 = vadd.f32 %v4893_v0, %v3517_v3 }
 0x933   :  { %v3519_v40 = vrot.slane %v3518_v8, 4 }
 0x935   :  { %v3520_v45 = vadd.f32 %v3519_v40, %v3518_v8 }
 0x937   :  { %v3521_v34 = vrot.slane %v3520_v45, 2 }
 0x939   :  { %v3522_v15 = vadd.f32 %v3521_v34, %v3520_v45 }
 0x93b   :  { %v3523_v38 = vrot.slane %v3522_v15, 1 }
 0x93d   :  { %v3524_v58 = vadd.f32 %v3523_v38, %v3522_v15 }
 0x93f   :  { %v3525_v60 = vmul.f32 0.0078125, %v3524_v58 }
 0x941   :  { %v6265_v37 = vsub.f32 %v3054_v4, %v3525_v60  ;;  %v6267_v13 = vsub.f32 %v3057_v19, %v3525_v60  ;;  %v6269_v36 = vsub.f32 %v4880_v35, %v3525_v60  ;;  %v6275_v56 = vsub.f32 %v4881_v49, %v3525_v60 }
 0x942   :  { %v6277_v29 = vsub.f32 %v3070_v26, %v3525_v60  ;;  %v6281_v18 = vsub.f32 %v3073_v22, %v3525_v60  ;;  %v6285_v61 = vsub.f32 %v4884_v2, %v3525_v60  ;;  %v6289_v41 = vsub.f32 %v4885_v59, %v3525_v60 }
 0x943   :  { %v3542_v11 = vmul.f32 %v6265_v37, %v6265_v37  ;;  %v3543_v43 = vmul.f32 %v6267_v13, %v6267_v13  ;;  %v3544_v32 = vmul.f32 %v6269_v36, %v6269_v36  ;;  %v3545_v57 = vmul.f32 %v6275_v56, %v6275_v56 }
 0x944   :  { %v3546_v39 = vmul.f32 %v6277_v29, %v6277_v29  ;;  %v3547_v35 = vmul.f32 %v6281_v18, %v6281_v18  ;;  %v6293_v50 = vsub.f32 %v3086_v55, %v3525_v60  ;;  %v3548_v4 = vmul.f32 %v6285_v61, %v6285_v61 }
 0x945   :  { %v3558_v16 = vadd.f32 %v3543_v43, %v3542_v11  ;;  %v6297_v48 = vsub.f32 %v3089_v28, %v3525_v60  ;;  %v3549_v49 = vmul.f32 %v6289_v41, %v6289_v41  ;;  %v6301_v25 = vsub.f32 %v4888_v44, %v3525_v60 }
 0x946   :  { %v3550_v19 = vmul.f32 %v6293_v50, %v6293_v50  ;;  %v6305_v30 = vsub.f32 %v4889_v54, %v3525_v60  ;;  %v6309_v7 = vsub.f32 %v3102_v33, %v3525_v60  ;;  %v3539_v14 = vsub.f32 %v3105_v24, %v3525_v60 }
 0x947   :  { %v3559_v31 = vadd.f32 %v3558_v16, %v3544_v32  ;;  %v3551_v2 = vmul.f32 %v6297_v48, %v6297_v48  ;;  %v3552_v62 = vmul.f32 %v6301_v25, %v6301_v25  ;;  %v6315_v22 = vsub.f32 %v4892_v27, %v3525_v60 }
 0x948   :  { %v3553_v59 = vmul.f32 %v6305_v30, %v6305_v30  ;;  %v3554_v52 = vmul.f32 %v6309_v7, %v6309_v7  ;;  %v6319_v44 = vsub.f32 %v4893_v0, %v3525_v60  ;;  %v3555_v55 = vmul.f32 %v3539_v14, %v3539_v14 }
 0x949   :  { %v3560_v47 = vadd.f32 %v3559_v31, %v3545_v57  ;;  %v3556_v28 = vmul.f32 %v6315_v22, %v6315_v22 }
 0x94a   :  { %v3557_v27 = vmul.f32 %v6319_v44, %v6319_v44 }
 0x94b   :  { %v3561_v51 = vadd.f32 %v3560_v47, %v3546_v39 }
 0x94d   :  { %v3562_v23 = vadd.f32 %v3561_v51, %v3547_v35 }
 0x94f   :  { %v3563_v1 = vadd.f32 %v3562_v23, %v3548_v4 }
 0x951   :  { %v3564_v21 = vadd.f32 %v3563_v1, %v3549_v49 }
 0x953   :  { %v3565_v17 = vadd.f32 %v3564_v21, %v3550_v19  ;;  %v6345_v19 = vld [vmem:[%s6512_s9] ss:$0 sm:$0xff] }
 0x955   :  { %v3566_v26 = vadd.f32 %v3565_v17, %v3551_v2 }
 0x957   :  { %v3567_v53 = vadd.f32 %v3566_v26, %v3552_v62 }
 0x959   :  { %v3568_v20 = vadd.f32 %v3567_v53, %v3553_v59  ;;  %v6359_v59 = vld [vmem:[%s6513_s10] ss:$0 sm:$0xff] }
 0x95b   :  { %v3569_v12 = vadd.f32 %v3568_v20, %v3554_v52 }
 0x95d   :  { %v3570_v9 = vadd.f32 %v3569_v12, %v3555_v55 }
 0x95f   :  { %v4944_v54 = vpop.f32.mrf.mxu0  ;;  %v3571_v33 = vadd.f32 %v3570_v9, %v3556_v28 }
 0x960   :  { %v3386_v16 = vadd.f32 %v4944_v54, %v6324_v10 }
 0x961   :  { %v3377_v42 = vpop.f32.mrf.mxu0  ;;  %v3572_v0 = vadd.f32 %v3571_v33, %v3557_v27 }
 0x962   :  { %v3378_v5 = vadd.f32 %v6324_v10, %v3377_v42 }
 0x963   :  { %v4945_v46 = vpop.f32.mrf.mxu0  ;;  %v3573_v6 = vrot.slane %v3572_v0, 4 }
 0x964   :  { %5215 = vtanh.f32 %v3378_v5  ;;  %v3389_v31 = vadd.f32 %v4945_v46, %v6324_v10 }
 0x965   :  { %v3380_v63 = vpop.f32.mrf.mxu0  ;;  %v3574_v3 = vadd.f32 %v3573_v6, %v3572_v0 }
 0x966   :  { %v3381_v24 = vadd.f32 %v6324_v10, %v3380_v63 }
 0x967   :  { %v3575_v8 = vrot.slane %v3574_v3, 2  ;;  %v4948_v34 = vpop.f32.mrf.mxu0 }
 0x968   :  { %5217 = vtanh.f32 %v3381_v24  ;;  %v3402_v4 = vadd.f32 %v4948_v34, %v6324_v10 }
 0x969   :  { %v3576_v40 = vadd.f32 %v3575_v8, %v3574_v3  ;;  %v3393_v60 = vpop.f32.mrf.mxu0 }
 0x96a   :  { %v3394_v47 = vadd.f32 %v6324_v10, %v3393_v60 }
 0x96b   :  { %v3577_v45 = vrot.slane %v3576_v40, 1  ;;  %v4949_v57 = vpop.f32.mrf.mxu0 }
 0x96c   :  { %v3405_v23 = vadd.f32 %v4949_v57, %v6324_v10 }
 0x96d   :  { %v3578_v15 = vadd.f32 %v3577_v45, %v3576_v40  ;;  %v3396_v39 = vpop.f32.mrf.mxu0 }
 0x96e   :  { %v3397_v51 = vadd.f32 %v6324_v10, %v3396_v39 }
 0x96f   :  { %v3579_v58 = vmul.f32 0.0078125, %v3578_v15  ;;  %v6335_v35 = vpop.f32.mrf.mxu0 }
 0x971   :  { %v5216_v38 = vpop.eup %5215  ;;  %v3580_v43 = vadd.f32 0.0001, %v3579_v58  ;;  %v3409_v49 = vpop.f32.mrf.mxu0 }
 0x972   :  { %v3410_v24 = vadd.f32 %v6324_v10, %v3409_v49 }
 0x973   :  { %5219 = vrsqrt.f32 %v3580_v43  ;;  %v6352_v62 = vpop.f32.mrf.mxu0 }
 0x974   :  { %5221 = vtanh.f32 %v3386_v16 }
 0x975   :  { %v5218_v11 = vpop.eup %5217  ;;  %5223 = vtanh.f32 %v3389_v31  ;;  %v3412_v5 = vpop.f32.mrf.mxu0 }
 0x976   :  { %v3709_v32 = vpack.c.bf16 %v5218_v11, %v5216_v38  ;;  %5225 = vtanh.f32 %v3394_v47  ;;  %v3413_v40 = vadd.f32 %v6324_v10, %v3412_v5 }
 0x977   :  { %5227 = vtanh.f32 %v3397_v51 }
 0x978   :  { %3891 = vmatprep.mubr.bf16.mxu1 %v3709_v32  ;;  %5229 = vtanh.f32 %v3402_v4  ;;  %v4956_v32 = vpop.f32.mrf.mxu0 }
 0x979   :  { %5231 = vtanh.f32 %v3405_v23 }
 0x97a   :  { %5233 = vtanh.f32 %v3410_v24 }
 0x97b   :  { %5235 = vtanh.f32 %v3413_v40  ;;  %v6448_v40 = vld [vmem:[%s6515_s12] ss:$0 sm:$0xff] }
 0x980   :  { %v6340_v1 = vpop.eup %5219 }
 0x981   :  { %v3595_v21 = vmul.f32 %v6340_v1, %v3539_v14  ;;  %v3582_v2 = vmul.f32 %v6340_v1, %v6265_v37  ;;  %v3583_v17 = vmul.f32 %v6340_v1, %v6267_v13  ;;  %v3584_v26 = vmul.f32 %v6340_v1, %v6269_v36  ;;  %v5222_v12 = vpop.eup %5221 }
 0x982   :  { %v3585_v53 = vmul.f32 %v6340_v1, %v6275_v56  ;;  %v3586_v14 = vmul.f32 %v6340_v1, %v6277_v29  ;;  %v3587_v37 = vmul.f32 %v6340_v1, %v6281_v18  ;;  %v3588_v13 = vmul.f32 %v6340_v1, %v6285_v61  ;;  %v5224_v28 = vpop.eup %5223 }
 0x983   :  { %v3618_v52 = vmul.f32 %v6345_v19, %v3595_v21  ;;  %v3605_v36 = vmul.f32 %v6345_v19, %v3582_v2  ;;  %v3606_v20 = vmul.f32 %v6345_v19, %v3583_v17  ;;  %v3607_v55 = vmul.f32 %v6345_v19, %v3584_v26  ;;  %v5226_v60 = vpop.eup %5225 }
 0x984   :  { %v3608_v56 = vmul.f32 %v6345_v19, %v3585_v53  ;;  %v3609_v54 = vmul.f32 %v6345_v19, %v3586_v14  ;;  %v3610_v29 = vmul.f32 %v6345_v19, %v3587_v37  ;;  %v3589_v18 = vmul.f32 %v6340_v1, %v6289_v41  ;;  %v5228_v43 = vpop.eup %5227 }
 0x985   :  { %v6379_v61 = vadd.f32 %v6359_v59, %v3618_v52  ;;  %v3628_v9 = vadd.f32 %v6359_v59, %v3605_v36  ;;  %v3629_v42 = vadd.f32 %v6359_v59, %v3606_v20  ;;  %v3630_v27 = vadd.f32 %v6359_v59, %v3607_v55 }
 0x986   :  { %v3631_v33 = vadd.f32 %v6359_v59, %v3608_v56  ;;  %v6386_v46 = vadd.f32 %v6359_v59, %v3609_v54  ;;  %v6389_v0 = vadd.f32 %v6359_v59, %v3610_v29  ;;  %v3611_v41 = vmul.f32 %v6345_v19, %v3588_v13 }
 0x987   :  { %3657 = vst [vmem:[#allocation12 + $0x68] sm:$0xff] %v6379_v61  ;;  %3644 = vst [vmem:[#allocation12] sm:$0xff] %v3628_v9  ;;  %v3708_v63 = vpack.c.bf16 %v3629_v42, %v3628_v9  ;;  %v3612_v6 = vmul.f32 %v6345_v19, %v3589_v18  ;;  %v3590_v3 = vmul.f32 %v6340_v1, %v6293_v50 }
 0x988   :  { %3645 = vst [vmem:[#allocation12 + $0x8] sm:$0xff] %v3629_v42  ;;  %3646 = vst [vmem:[#allocation12 + $0x10] sm:$0xff] %v3630_v27  ;;  %v3711_v8 = vpack.c.bf16 %v5224_v28, %v5222_v12  ;;  %v6401_v45 = vadd.f32 %v6359_v59, %v3611_v41  ;;  %v3591_v34 = vmul.f32 %v6340_v1, %v6297_v48 }
 0x989   :  { %3647 = vst [vmem:[#allocation12 + $0x18] sm:$0xff] %v3631_v33  ;;  %3648 = vst [vmem:[#allocation12 + $0x20] sm:$0xff] %v6386_v46  ;;  %3892 = vmatmul.mubr.bf16.vlgmr.msra.gmra.mxu1 %v3708_v63  ;;  %v3635_v15 = vadd.f32 %v6359_v59, %v3612_v6  ;;  %v3613_v38 = vmul.f32 %v6345_v19, %v3590_v3  ;;  %v3592_v50 = vmul.f32 %v6340_v1, %v6301_v25  ;;  %v5399_v63 = vmov 0.0  }
 0x98a   :  { %3649 = vst [vmem:[#allocation12 + $0x28] sm:$0xff] %v6389_v0  ;;  %v3593_v58 = vmul.f32 %v6340_v1, %v6305_v30  ;;  %3899 = vmatprep.mubr.bf16.mxu1 %v3711_v8  ;;  %3650 = vst [vmem:[#allocation12 + $0x30] sm:$0xff] %v6401_v45  ;;  %v3614_v11 = vmul.f32 %v6345_v19, %v3591_v34  ;;  %v3594_v48 = vmul.f32 %v6340_v1, %v6309_v7  ;;  %v5230_v30 = vpop.eup %5229 }
 0x98b   :  { %3651 = vst [vmem:[#allocation12 + $0x38] sm:$0xff] %v3635_v15  ;;  %v3636_v16 = vadd.f32 %v6359_v59, %v3613_v38  ;;  %v3615_v25 = vmul.f32 %v6345_v19, %v3592_v50  ;;  %v3596_v47 = vmul.f32 %v6340_v1, %v6315_v22  ;;  %v3597_v7 = vmul.f32 %v6340_v1, %v6319_v44  ;;  %v5232_v51 = vpop.eup %5231  ;;  %v3425_v22 = vpop.f32.mrf.mxu0 }
 0x98c   :  { %v3616_v57 = vmul.f32 %v6345_v19, %v3593_v58  ;;  %v3637_v31 = vadd.f32 %v6359_v59, %v3614_v11  ;;  %v3617_v39 = vmul.f32 %v6345_v19, %v3594_v48  ;;  %v3713_v49 = vpack.c.bf16 %v5228_v43, %v5226_v60  ;;  %v5234_v52 = vpop.eup %5233  ;;  %4958 = vmatprep.subr.bf16.mxu0 %v5399_v63 }
 0x98d   :  { %3652 = vst [vmem:[#allocation12 + $0x40] sm:$0xff] %v3636_v16  ;;  %v3638_v4 = vadd.f32 %v6359_v59, %v3615_v25  ;;  %v3619_v2 = vmul.f32 %v6345_v19, %v3596_v47  ;;  %v3620_v17 = vmul.f32 %v6345_v19, %v3597_v7  ;;  %v3710_v26 = vpack.c.bf16 %v3631_v33, %v3630_v27  ;;  %v4957_v14 = vpop.f32.mrf.mxu0  ;;  %v5236_v20 = vpop.eup %5235 }
 0x98e   :  { %v3639_v23 = vadd.f32 %v6359_v59, %v3616_v57  ;;  %3653 = vst [vmem:[#allocation12 + $0x48] sm:$0xff] %v3637_v31  ;;  %v3640_v21 = vadd.f32 %v6359_v59, %v3617_v39  ;;  %v3418_v53 = vadd.f32 %v6335_v35, %v6324_v10  ;;  %v3421_v19 = vadd.f32 %v6352_v62, %v6324_v10 }
 0x98f   :  { %3654 = vst [vmem:[#allocation12 + $0x50] sm:$0xff] %v3638_v4  ;;  %v3642_v44 = vadd.f32 %v6359_v59, %v3619_v2  ;;  %v3643_v1 = vadd.f32 %v6359_v59, %v3620_v17  ;;  %v3712_v37 = vpack.c.bf16 %v6389_v0, %v6386_v46  ;;  %v3428_v13 = vpop.f32.mrf.mxu0  ;;  %v3715_v36 = vpack.c.bf16 %v5232_v51, %v5230_v30 }
 0x990   :  { %3655 = vst [vmem:[#allocation12 + $0x58] sm:$0xff] %v3639_v23  ;;  %3656 = vst [vmem:[#allocation12 + $0x60] sm:$0xff] %v3640_v21  ;;  %5237 = vtanh.f32 %v3418_v53  ;;  %v3426_v59 = vadd.f32 %v6324_v10, %v3425_v22  ;;  %v3429_v55 = vadd.f32 %v6324_v10, %v3428_v13  ;;  %v3717_v35 = vpack.c.bf16 %v5236_v20, %v5234_v52 }
 0x991   :  { %3900 = vmatmul.mubr.bf16.gmra.mxu1 %v3710_v26  ;;  %3658 = vst [vmem:[#allocation12 + $0x70] sm:$0xff] %v3642_v44  ;;  %3659 = vst [vmem:[#allocation12 + $0x78] sm:$0xff] %v3643_v1  ;;  %5239 = vtanh.f32 %v3421_v19  ;;  %v3714_v62 = vpack.c.bf16 %v3635_v15, %v6401_v45  ;;  %v3434_v12 = vadd.f32 %v4956_v32, %v6324_v10  ;;  %4974 = vmatprep.mubr.msk.bf16.mxu0 %vm5400_vm0, %v5399_v63 }
 0x992   :  { %3907 = vmatprep.mubr.bf16.mxu1 %v3713_v49  ;;  %5241 = vtanh.f32 %v3426_v59  ;;  %v3437_v54 = vadd.f32 %v4957_v14, %v6324_v10  ;;  %v3716_v18 = vpack.c.bf16 %v3637_v31, %v3636_v16  ;;  %v3718_v27 = vpack.c.bf16 %v3639_v23, %v3638_v4 }
 0x993   :  { %5243 = vtanh.f32 %v3429_v55  ;;  %v3720_v0 = vpack.c.bf16 %v6379_v61, %v3640_v21  ;;  %v3722_v10 = vpack.c.bf16 %v3643_v1, %v3642_v44 }
 0x994   :  { %5245 = vtanh.f32 %v3434_v12 }
 0x995   :  { %5247 = vtanh.f32 %v3437_v54 }
 0x999   :  { %3908 = vmatmul.mubr.bf16.gmra.mxu1 %v3712_v37 }
 0x99a   :  { %3915 = vmatprep.mubr.bf16.mxu1 %v3715_v36 }
 0x99d   :  { %v5238_v56 = vpop.eup %5237 }
 0x99e   :  { %v5240_v29 = vpop.eup %5239 }
 0x99f   :  { %v3719_v28 = vpack.c.bf16 %v5240_v29, %v5238_v56  ;;  %v5242_v9 = vpop.eup %5241 }
 0x9a0   :  { %v5244_v42 = vpop.eup %5243 }
 0x9a1   :  { %3916 = vmatmul.mubr.bf16.gmra.mxu1 %v3714_v62  ;;  %v3721_v5 = vpack.c.bf16 %v5244_v42, %v5242_v9  ;;  %v5246_v33 = vpop.eup %5245 }
 0x9a2   :  { %3923 = vmatprep.mubr.bf16.mxu1 %v3717_v35  ;;  %v5248_v46 = vpop.eup %5247 }
 0x9a3   :  { %v3723_v41 = vpack.c.bf16 %v5248_v46, %v5246_v33 }
 0x9a9   :  { %3924 = vmatmul.mubr.bf16.gmra.mxu1 %v3716_v18 }
 0x9aa   :  { %3931 = vmatprep.mubr.bf16.mxu1 %v3719_v28 }
 0x9b1   :  { %3932 = vmatmul.mubr.bf16.gmra.mxu1 %v3718_v27 }
 0x9b2   :  { %3939 = vmatprep.mubr.bf16.mxu1 %v3721_v5 }
 0x9b9   :  { %3940 = vmatmul.mubr.bf16.gmra.mxu1 %v3720_v0 }
 0x9ba   :  { %3947 = vmatprep.mubr.bf16.mxu1 %v3723_v41 }
 0x9c1   :  { %3948 = vmatmul.mubr.bf16.gmra.mxu1 %v3722_v10 }
 0xa49   :  { %v4613_v24 = vpop.f32.mrf.mxu1 }
 0xa4b   :  { %v4614_v6 = vpop.f32.mrf.mxu1 }
 0xa4c   :  { %v4615_v3 = vadd.f32 %v4614_v6, %v4613_v24 }
 0xa4d   :  { %v4616_v8 = vpop.f32.mrf.mxu1 }
 0xa4e   :  { %v6451_v15 = vadd.f32 %v4615_v3, %v6448_v40 }
 0xa4f   :  { %v4617_v61 = vpop.f32.mrf.mxu1 }
 0xa50   :  { %v4618_v45 = vadd.f32 %v4617_v61, %v4616_v8 }
 0xa51   :  { %v4619_v34 = vpop.f32.mrf.mxu1 }
 0xa52   :  { %v6454_v38 = vadd.f32 %v4618_v45, %v6448_v40 }
 0xa53   :  { %v4620_v50 = vpop.f32.mrf.mxu1 }
 0xa54   :  { %v3957_v58 = vpack.c.bf16 %v6454_v38, %v6451_v15  ;;  %v4621_v60 = vadd.f32 %v4620_v50, %v4619_v34 }
 0xa55   :  { %v4622_v11 = vpop.f32.mrf.mxu1 }
 0xa56   :  { %v6459_v16 = vadd.f32 %v4621_v60, %v6448_v40 }
 0xa57   :  { %v4623_v48 = vpop.f32.mrf.mxu1 }
 0xa58   :  { %v4624_v43 = vadd.f32 %v4623_v48, %v4622_v11 }
 0xa59   :  { %v4625_v32 = vpop.f32.mrf.mxu1 }
 0xa5a   :  { %v6462_v25 = vadd.f32 %v4624_v43, %v6448_v40 }
 0xa5b   :  { %v4626_v57 = vpop.f32.mrf.mxu1 }
 0xa5c   :  { %v3958_v30 = vpack.c.bf16 %v6462_v25, %v6459_v16  ;;  %v4627_v31 = vadd.f32 %v4626_v57, %v4625_v32 }
 0xa5d   :  { %v4628_v39 = vpop.f32.mrf.mxu1 }
 0xa5e   :  { %v3910_v60 = vadd.f32 %v4627_v31, %v6448_v40 }
 0xa5f   :  { %v4629_v47 = vpop.f32.mrf.mxu1 }
 0xa60   :  { %v4630_v3 = vadd.f32 %v4629_v47, %v4628_v39 }
 0xa61   :  { %v4631_v7 = vpop.f32.mrf.mxu1 }
 0xa62   :  { %v3913_v34 = vadd.f32 %v4630_v3, %v6448_v40 }
 0xa63   :  { %v4632_v51 = vpop.f32.mrf.mxu1 }
 0xa64   :  { %v4633_v24 = vadd.f32 %v4632_v51, %v4631_v7  ;;  %v3959_v11 = vpack.c.bf16 %v3913_v34, %v3910_v60 }
 0xa65   :  { %v4634_v4 = vpop.f32.mrf.mxu1 }
 0xa66   :  { %v3918_v45 = vadd.f32 %v4633_v24, %v6448_v40 }
 0xa67   :  { %v4635_v23 = vpop.f32.mrf.mxu1 }
 0xa68   :  { %v4636_v0 = vadd.f32 %v4635_v23, %v4634_v4 }
 0xa69   :  { %v4637_v49 = vpop.f32.mrf.mxu1 }
 0xa6a   :  { %v3921_v8 = vadd.f32 %v4636_v0, %v6448_v40 }
 0xa6b   :  { %v4638_v21 = vpop.f32.mrf.mxu1 }
 0xa6c   :  { %v4639_v33 = vadd.f32 %v4638_v21, %v4637_v49  ;;  %v3960_v50 = vpack.c.bf16 %v3921_v8, %v3918_v45 }
 0xa6d   :  { %v4640_v2 = vpop.f32.mrf.mxu1 }
 0xa6e   :  { %v3926_v6 = vadd.f32 %v4639_v33, %v6448_v40 }
 0xa6f   :  { %v4641_v17 = vpop.f32.mrf.mxu1 }
 0xa70   :  { %v4642_v42 = vadd.f32 %v4641_v17, %v4640_v2 }
 0xa71   :  { %v4643_v26 = vpop.f32.mrf.mxu1 }
 0xa72   :  { %v3929_v41 = vadd.f32 %v4642_v42, %v6448_v40 }
 0xa73   :  { %v4644_v22 = vpop.f32.mrf.mxu1 }
 0xa74   :  { %v4645_v28 = vadd.f32 %v4644_v22, %v4643_v26  ;;  %v3961_v61 = vpack.c.bf16 %v3929_v41, %v3926_v6 }
 0xa75   :  { %v4646_v44 = vpop.f32.mrf.mxu1 }
 0xa76   :  { %v3934_v46 = vadd.f32 %v4645_v28, %v6448_v40 }
 0xa77   :  { %v4647_v1 = vpop.f32.mrf.mxu1 }
 0xa78   :  { %v4648_v54 = vadd.f32 %v4647_v1, %v4646_v44 }
 0xa79   :  { %v4649_v53 = vpop.f32.mrf.mxu1 }
 0xa7a   :  { %v3937_v5 = vadd.f32 %v4648_v54, %v6448_v40 }
 0xa7b   :  { %v4650_v14 = vpop.f32.mrf.mxu1 }
 0xa7c   :  { %v4651_v62 = vadd.f32 %v4650_v14, %v4649_v53  ;;  %v3962_v10 = vpack.c.bf16 %v3937_v5, %v3934_v46 }
 0xa7d   :  { %v4652_v19 = vpop.f32.mrf.mxu1 }
 0xa7e   :  { %v3942_v9 = vadd.f32 %v4651_v62, %v6448_v40 }
 0xa7f   :  { %v4653_v37 = vpop.f32.mrf.mxu1 }
 0xa80   :  { %v4654_v55 = vadd.f32 %v4653_v37, %v4652_v19 }
 0xa81   :  { %v4655_v13 = vpop.f32.mrf.mxu1 }
 0xa82   :  { %v3945_v29 = vadd.f32 %v4654_v55, %v6448_v40 }
 0xa83   :  { %v4656_v52 = vpop.f32.mrf.mxu1 }
 0xa84   :  { %v4657_v59 = vadd.f32 %v4656_v52, %v4655_v13  ;;  %v3963_v27 = vpack.c.bf16 %v3945_v29, %v3942_v9 }
 0xa85   :  { %v4658_v36 = vpop.f32.mrf.mxu1 }
 0xa86   :  { %v3950_v12 = vadd.f32 %v4657_v59, %v6448_v40 }
 0xa87   :  { %v4659_v20 = vpop.f32.mrf.mxu1 }
 0xa88   :  { %v4660_v35 = vadd.f32 %v4659_v20, %v4658_v36 }
 0xa8a   :  { %v3953_v56 = vadd.f32 %v4660_v35, %v6448_v40  ;;  %v3956_v40 = vld [vmem:[%s6507_s4] sm:$0xf] }
 0xa8c   :  { %v3964_v18 = vpack.c.bf16 %v3953_v56, %v3950_v12 }
 0xa8e   :  { %4959 = vmatpush3.bf16.msra.mxu0 %v3964_v18 }
 0xa8f   :  { %4960 = vmatprep.subr.bf16.mxu0 %v5399_v63 }
 0xa92   :  { %4961 = vmatpush3.bf16.msra.mxu0 %v3963_v27 }
 0xa93   :  { %4962 = vmatprep.subr.bf16.mxu0 %v5399_v63 }
 0xa96   :  { %4963 = vmatpush3.bf16.msra.mxu0 %v3962_v10 }
 0xa97   :  { %4964 = vmatprep.subr.bf16.mxu0 %v5399_v63 }
 0xa9a   :  { %4965 = vmatpush3.bf16.msra.mxu0 %v3961_v61 }
 0xa9b   :  { %4966 = vmatprep.subr.bf16.mxu0 %v5399_v63 }
 0xa9e   :  { %4967 = vmatpush3.bf16.msra.mxu0 %v3960_v50 }
 0xa9f   :  { %4968 = vmatprep.subr.bf16.mxu0 %v5399_v63 }
 0xaa2   :  { %4969 = vmatpush3.bf16.msra.mxu0 %v3959_v11 }
 0xaa3   :  { %4970 = vmatprep.subr.bf16.mxu0 %v5399_v63 }
 0xaa6   :  { %4971 = vmatpush3.bf16.msra.mxu0 %v3958_v30 }
 0xaa7   :  { %4972 = vmatprep.subr.bf16.mxu0 %v5399_v63 }
 0xaaa   :  { %4973 = vmatpush3.bf16.msra.mxu0 %v3957_v58 }
 0xaad   :  { %4975 = vmatmul.mubr.bf16.vlgmr.msra.gmra.mxu0 %v3956_v40 }
 0xaae   :  { %5372 = shalt.err (!%p5369_p1)
}
 0xaaf   :  { %4019 = dma.vmem_to_hbm [thread:$0]  %s4014_s30, 2048, %s6517_s14, [#allocation5], %s5390_s16, %s5390_s16, %s5391_s17  }
 0xb6d   :  { %v3999_v63 = vpop.f32.mrf.mxu0 }
 0xb6e   :  { %4005 = vst [vmem:[%s6516_s13] sm:$0xff] %v3999_v63 }
 0xb6f   :  { %v4976_v15 = vpop.f32.mrf.mxu0 }
 0xb71   :  { %v4002_v38 = vpop.f32.mrf.mxu0 }
 0xb73   :  { %v4977_v58 = vpop.f32.mrf.mxu0 }
 0xb74   :  { %5387 = dma.done.wait [#allocation5], 2048  }
 0xb75   :  { %5388 = vsyncadd [#allocation5], 4294965248 }
 0xb76   :  { %4025 = vsyncpa [#allocation4], 1 }
 0xb77   :  { %4026 = vsyncpa [#allocation7], 1 }
 0xb78   :  { %4027 = vsyncpa [#allocation10], 1 }
 0xb79   :  { %4028 = vsyncpa [#allocation5], 1 }

</bundles_post_ra>
